<compile_context>
chip_gen: v6e
topology: v6e:2x2x1
jax: 0.10.0
libtpu: 0.0.40
codegen_flags: <defaults>
</compile_context>

<pallas_src>
import math

import jax
import jax.numpy as jnp
from jax import lax
from jax.experimental import pallas as pl
from jax.experimental.pallas import tpu as pltpu

# Dimensions baked into the PyTorch module.
D = 891       # 9 * 11 * 9
DP = 896      # padded feature dim (7 * 128) for aligned lane tiles
HID = 128     # fc1 / fc2 hidden width
CH = 512      # feature-map channels


def _dgcn_cls_kernel(region_ref, pc_ref,
                     wf_ref, b1_ref, b2_ref, b3_ref,
                     wot_ref, bo_ref,
                     bg1_ref, wg2t_ref, bg2_ref,
                     wc0_ref, wcr_ref, bc_ref,
                     out_ref):
    f32 = jnp.float32
    bf16 = jnp.bfloat16
    BtP, Dp = region_ref.shape
    Bt = pc_ref.shape[0]
    P = BtP // Bt

    x_flat = region_ref[...]                                          # (Bt*P, DP) bf16

    # ---- one fused MXU matmul for q | k | v | x @ Wg1 (N = 1280 lanes) ----
    fused = jnp.dot(x_flat, wf_ref[...], preferred_element_type=f32)  # (Bt*P, 1280) f32
    q3 = (fused[:, 0:HID] + b1_ref[...]).reshape(Bt, P, HID)          # 1/sqrt(128) pre-folded
    k3 = (fused[:, HID:2 * HID] + b2_ref[...]).reshape(Bt, P, HID)
    v3 = (fused[:, 2 * HID:2 * HID + P] + b3_ref[...]).reshape(Bt, P, P)
    xw1_3 = fused[:, 3 * HID:].reshape(Bt, P, Dp)                     # (Bt, P, DP)

    # ---- single-head attention (scale folded into fc1 weights/bias) ----
    scores = jnp.einsum('bph,bqh->bpq', q3, k3, preferred_element_type=f32)   # (Bt,P,P)
    m = jnp.max(scores, axis=-1, keepdims=True)
    e = jnp.exp(scores - m)
    p_attn = e * pl.reciprocal(jnp.sum(e, axis=-1, keepdims=True), approx=True)
    att = jnp.einsum('bpq,bqk->bpk', p_attn, v3, preferred_element_type=f32)  # [b, q, k]

    # ---- batched MHA output_linear on att^T + adjacency normalization ----
    row = lax.broadcasted_iota(jnp.int32, (P, P), 0)
    col = lax.broadcasted_iota(jnp.int32, (P, P), 1)
    eye2 = row == col
    # att^T via one batched contraction with the identity: att_t[b,k,q] =
    # sum_h eye[k,h] * att[b,q,h] = att[b,q,k]. Uses the same batched-matmul
    # pattern as the score einsum, so no per-sample 8x8 transposes.
    eye3 = jnp.broadcast_to(jnp.where(eye2, 1.0, 0.0).astype(f32), (Bt, P, P))
    att_t = jnp.einsum('bkh,bqh->bkq', eye3, att, preferred_element_type=f32)
    corr = (jnp.dot(att_t.reshape(BtP, P), wot_ref[...],
                    preferred_element_type=f32).reshape(Bt, P, P)
            + bo_ref[...])                                            # (Bt, P, P)

    # DenseGCNConv adjacency: self-loops = 1, clamp(deg, 1), symmetric norm.
    adj = jnp.where(eye2, jnp.float32(1.0), corr)
    dis_row = lax.rsqrt(jnp.maximum(jnp.sum(adj, axis=-1, keepdims=True), 1.0))   # (Bt,P,1)
    dis_col = lax.rsqrt(jnp.maximum(jnp.sum(adj, axis=-1), 1.0))[:, None, :]      # (Bt,1,P)
    adj_n = (dis_row * adj * dis_col).astype(bf16)                    # (Bt, P, P) bf16

    # ---- GCN layer 1 + relu (dropout = identity) ----
    h = jnp.maximum(
        jnp.einsum('bpq,bqd->bpd', adj_n, xw1_3.astype(bf16),
                   preferred_element_type=f32) + bg1_ref[...], 0.0)   # (Bt,P,DP) f32

    # ---- GCN layer 2 + relu (dropout = identity) ----
    h_flat = h.reshape(BtP, Dp).astype(bf16)         # reshape in f32 (free view), then cast
    hw2 = jnp.dot(h_flat, wg2t_ref[...], preferred_element_type=f32)  # (Bt*P, DP)
    h2 = jnp.maximum(
        jnp.einsum('bpq,bqd->bpd', adj_n, hw2.reshape(Bt, P, Dp).astype(bf16),
                   preferred_element_type=f32) + bg2_ref[...], 0.0)   # (Bt,P,DP) f32

    # ---- pooling + classifier ----
    # Padded columns 891..895 of h2 are exactly zero (zero-padded weights,
    # zero-padded biases, ReLU), so dividing the row sum by 891 is unbiased.
    pooled_node = jnp.sum(h2, axis=-1) * jnp.float32(1.0 / D)         # (Bt, P)
    res = (pc_ref[...] * wc0_ref[...]
           + jnp.dot(pooled_node, wcr_ref[...], preferred_element_type=f32)
           + bc_ref[...])                                             # (Bt, 2)
    out_ref[...] = res


def init_params(key, part_num):
    """Deterministic synthetic parameters matching the PyTorch module's shapes."""
    def linear(k, out_f, in_f, bias=True):
        kw, kb = jax.random.split(k)
        bound = 1.0 / math.sqrt(in_f)
        w = jax.random.uniform(kw, (out_f, in_f), jnp.float32, -bound, bound)
        b = (jax.random.uniform(kb, (out_f,), jnp.float32, -bound, bound)
             if bias else None)
        return w, b

    P = part_num
    ks = jax.random.split(key, 8)
    fc1 = linear(ks[0], 128, D)
    fc2 = linear(ks[1], 128, D)
    fc3 = linear(ks[2], P, D)
    out_lin = linear(ks[3], P, P)                        # MHA output_linear (d_model = P)
    gw1, _ = linear(ks[4], D, D, bias=False)             # DenseGCNConv lin (no bias)
    gb1 = jax.random.uniform(jax.random.fold_in(ks[4], 1), (D,), jnp.float32, -0.1, 0.1)
    gw2, _ = linear(ks[5], D, D, bias=False)
    gb2 = jax.random.uniform(jax.random.fold_in(ks[5], 1), (D,), jnp.float32, -0.1, 0.1)
    fc_cls = linear(ks[6], 2, P + 1)
    return dict(fc1=fc1, fc2=fc2, fc3=fc3, out_lin=out_lin,
                gcn1=(gw1, gb1), gcn2=(gw2, gb2), fc_cls=fc_cls)


def prepare_params(params, part_num):
    """One-time kernel weight prep: transpose, pad 891 -> 896, fold the
    1/sqrt(128) attention scale into fc1, fuse fc1|fc2|fc3|Wg1 into one bf16
    matrix. Call once; reuse the result across forward calls."""
    P = part_num
    pad_d = DP - D
    (w1, b1) = params["fc1"]
    (w2, b2) = params["fc2"]
    (w3, b3) = params["fc3"]
    (wo, bo) = params["out_lin"]
    (wg1, bg1) = params["gcn1"]
    (wg2, bg2) = params["gcn2"]
    (wc, bc) = params["fc_cls"]

    scale = 1.0 / math.sqrt(HID)

    def pad_rows(wt):                                    # (D, out) -> (DP, out), zero rows
        return jnp.pad(wt, ((0, pad_d), (0, 0)))

    w1t = pad_rows(w1.T * scale)                                   # (DP, 128)
    w2t = pad_rows(w2.T)                                           # (DP, 128)
    w3t = jnp.pad(pad_rows(w3.T), ((0, 0), (0, HID - P)))          # (DP, 128), zero cols
    wg1t = jnp.pad(wg1.T, ((0, pad_d), (0, pad_d)))                # (DP, DP)
    w_fused = jnp.concatenate([w1t, w2t, w3t, wg1t], axis=1).astype(jnp.bfloat16)

    wct = wc.T                                                     # (P+1, 2)
    return dict(
        w_fused=w_fused,
        b1=(b1 * scale).reshape(1, -1).astype(jnp.float32),
        b2=b2.reshape(1, -1).astype(jnp.float32),
        b3=b3.reshape(1, -1).astype(jnp.float32),
        wot=wo.T.astype(jnp.float32),
        bo=bo.reshape(1, -1).astype(jnp.float32),
        bg1=jnp.pad(bg1, (0, pad_d)).reshape(1, -1).astype(jnp.float32),
        wg2t=jnp.pad(wg2.T, ((0, pad_d), (0, pad_d))).astype(jnp.bfloat16),
        bg2=jnp.pad(bg2, (0, pad_d)).reshape(1, -1).astype(jnp.float32),
        wc0=wct[0:1].astype(jnp.float32),
        wcr=wct[1:].astype(jnp.float32),
        bc=bc.reshape(1, -1).astype(jnp.float32),
    )


_CONST_ORDER = ("w_fused", "b1", "b2", "b3", "wot", "bo",
                "bg1", "wg2t", "bg2", "wc0", "wcr", "bc")


def _default_batch_tile():
    """M = Bt * part_num rows for the heavy matmuls: 256 on v6e/v7x (256-wide
    MXU), 128 on v4/v5-class chips (128-wide MXU)."""
    try:
        kind = jax.devices()[0].device_kind.lower()
    except Exception:
        return 16
    if any(tag in kind for tag in ("v2", "v3", "v4", "v5")):
        return 16
    return 32


def dgcn_cls_forward(feature_map, weighted_feature, prepped, part_num, *, batch_tile=None):
    P = part_num
    if batch_tile is None:
        batch_tile = _default_batch_tile()

    region = weighted_feature.reshape(-1, P, D).astype(jnp.float32)
    B = region.shape[0]

    # Samples per grid step: either Bt == Bpad (single block) or Bt is a
    # multiple of 8, so the (8,128) block constraints always hold.
    Bt = min(B, batch_tile)
    if Bt < B:
        Bt = max(8, (Bt // 8) * 8)
    Bpad = ((B + Bt - 1) // Bt) * Bt

    pad_d = DP - D
    region_p = jnp.pad(region, ((0, Bpad - B), (0, 0), (0, pad_d)))
    # Flatten + bf16-cast in the wrapper so the kernel input already has the
    # heavy-matmul layout (no in-kernel bf16 reshape repack).
    region_flat = region_p.reshape(Bpad * P, DP).astype(jnp.bfloat16)

    # feature_map pooling hoisted out of the kernel: mean over all 512*891 values.
    pooled_comp = feature_map.reshape(B, -1).astype(jnp.float32).mean(axis=1)
    pooled_comp = jnp.pad(pooled_comp, (0, Bpad - B)).reshape(Bpad, 1)

    const_args = [prepped[name] for name in _CONST_ORDER]

    def const_spec(a):
        n = a.ndim
        return pl.BlockSpec(a.shape, lambda b, _n=n: (0,) * _n)

    in_specs = ([pl.BlockSpec((Bt * P, DP), lambda b: (b, 0)),
                 pl.BlockSpec((Bt, 1), lambda b: (b, 0))]
                + [const_spec(a) for a in const_args])

    out = pl.pallas_call(
        _dgcn_cls_kernel,
        out_shape=jax.ShapeDtypeStruct((Bpad, 2), jnp.float32),
        grid=(Bpad // Bt,),
        in_specs=in_specs,
        out_specs=pl.BlockSpec((Bt, 2), lambda b: (b, 0)),
        compiler_params=pltpu.CompilerParams(
            dimension_semantics=("parallel",),
            vmem_limit_bytes=32 * 1024 * 1024),
    )(region_flat, pooled_comp, *const_args)
    return out[:B]


def dgcn_cls_reference(feature_map, weighted_feature, params, part_num):
    """Plain-JAX replica of the PyTorch forward (eval mode) for verification."""
    P = part_num
    x = weighted_feature.reshape(-1, P, D).astype(jnp.float32)
    fm = feature_map.reshape(-1, CH, D).astype(jnp.float32)
    (w1, b1) = params["fc1"]
    (w2, b2) = params["fc2"]
    (w3, b3) = params["fc3"]
    (wo, bo) = params["out_lin"]
    (wg1, bg1) = params["gcn1"]
    (wg2, bg2) = params["gcn2"]
    (wc, bc) = params["fc_cls"]

    q = x @ w1.T + b1
    k = x @ w2.T + b2
    v = x @ w3.T + b3
    scores = jnp.einsum("bpd,bqd->bpq", q, k) / math.sqrt(q.shape[-1])
    p = jax.nn.softmax(scores, axis=-1)
    att = jnp.einsum("bpq,bqd->bpd", p, v)
    corr = jnp.swapaxes(att, 1, 2) @ wo.T + bo

    eye = jnp.eye(P, dtype=bool)

    def gcn(xin, adj, wg, bg):
        adj = jnp.where(eye[None], 1.0, adj)
        deg = jnp.clip(jnp.sum(adj, axis=-1), 1.0, None)
        dis = deg ** -0.5
        adj_n = dis[:, :, None] * adj * dis[:, None, :]
        return jnp.einsum("bpq,bqd->bpd", adj_n, xin @ wg.T) + bg

    h = jax.nn.relu(gcn(x, corr, wg1, bg1))
    h2 = jax.nn.relu(gcn(h, corr, wg2, bg2))

    pooled_node = h2.mean(axis=-1)                       # (B, P)
    pooled_comp = fm.mean(axis=(1, 2))[:, None]          # (B, 1)
    final = jnp.concatenate([pooled_comp, pooled_node], axis=1)
    return final @ wc.T + bc


if __name__ == "__main__":
    part_num = 8
    B = 2
    key = jax.random.PRNGKey(0)
    k_fm, k_wf, k_p = jax.random.split(key, 3)

    # feature_map: reshaped to (-1, 512, 1, 891) inside forward -> (B, 512, 9, 11, 9)
    feature_map = jax.random.normal(k_fm, (B, CH, 9, 11, 9), jnp.float32)
    # weighted_feature: reshaped to (-1, part_num, 891)
    weighted_feature = jax.random.normal(k_wf, (B, part_num, D), jnp.float32)
    params = init_params(k_p, part_num)
    prepped = prepare_params(params, part_num)           # one-time weight prep

    out = dgcn_cls_forward(feature_map, weighted_feature, prepped, part_num)
    out = jax.block_until_ready(out)

    ref = dgcn_cls_reference(feature_map, weighted_feature, params, part_num)
    assert out.shape == (B, 2), out.shape
    # Tolerance covers the accepted bf16 precision tradeoff of the MXU paths.
    assert jnp.allclose(out, ref, atol=3e-2, rtol=3e-2), (out, ref)
    print("KERNEL_OK")
</pallas_src>

<mosaic_0001>
module attributes {stable_mosaic.version = 11 : i64} {
  func.func @_dgcn_cls_kernel(%arg0: i32, %arg1: memref<16x896xbf16, #tpu.memory_space<vmem>>, %arg2: memref<2x1xf32, #tpu.memory_space<vmem>>, %arg3: memref<896x1280xbf16, #tpu.memory_space<vmem>>, %arg4: memref<1x128xf32, #tpu.memory_space<vmem>>, %arg5: memref<1x128xf32, #tpu.memory_space<vmem>>, %arg6: memref<1x8xf32, #tpu.memory_space<vmem>>, %arg7: memref<8x8xf32, #tpu.memory_space<vmem>>, %arg8: memref<1x8xf32, #tpu.memory_space<vmem>>, %arg9: memref<1x896xf32, #tpu.memory_space<vmem>>, %arg10: memref<896x896xbf16, #tpu.memory_space<vmem>>, %arg11: memref<1x896xf32, #tpu.memory_space<vmem>>, %arg12: memref<1x2xf32, #tpu.memory_space<vmem>>, %arg13: memref<8x2xf32, #tpu.memory_space<vmem>>, %arg14: memref<1x2xf32, #tpu.memory_space<vmem>>, %arg15: memref<2x2xf32, #tpu.memory_space<vmem>>) attributes {dimension_semantics = [#tpu.dimension_semantics<parallel>], iteration_bounds = array<i64: 1>, scalar_prefetch = 0 : i64, scratch_operands = 0 : i64, tpu.core_type = #tpu.core_type<tc>, window_params = [{transform_indices = @transform_0, window_bounds = array<i64: 16, 896>}, {transform_indices = @transform_1, window_bounds = array<i64: 2, 1>}, {pipeline_mode = #tpu.pipeline_mode<synchronous>, transform_indices = @transform_2, window_bounds = array<i64: 896, 1280>}, {pipeline_mode = #tpu.pipeline_mode<synchronous>, transform_indices = @transform_3, window_bounds = array<i64: 1, 128>}, {pipeline_mode = #tpu.pipeline_mode<synchronous>, transform_indices = @transform_4, window_bounds = array<i64: 1, 128>}, {pipeline_mode = #tpu.pipeline_mode<synchronous>, transform_indices = @transform_5, window_bounds = array<i64: 1, 8>}, {pipeline_mode = #tpu.pipeline_mode<synchronous>, transform_indices = @transform_6, window_bounds = array<i64: 8, 8>}, {pipeline_mode = #tpu.pipeline_mode<synchronous>, transform_indices = @transform_7, window_bounds = array<i64: 1, 8>}, {pipeline_mode = #tpu.pipeline_mode<synchronous>, transform_indices = @transform_8, window_bounds = array<i64: 1, 896>}, {pipeline_mode = #tpu.pipeline_mode<synchronous>, transform_indices = @transform_9, window_bounds = array<i64: 896, 896>}, {pipeline_mode = #tpu.pipeline_mode<synchronous>, transform_indices = @transform_10, window_bounds = array<i64: 1, 896>}, {pipeline_mode = #tpu.pipeline_mode<synchronous>, transform_indices = @transform_11, window_bounds = array<i64: 1, 2>}, {pipeline_mode = #tpu.pipeline_mode<synchronous>, transform_indices = @transform_12, window_bounds = array<i64: 8, 2>}, {pipeline_mode = #tpu.pipeline_mode<synchronous>, transform_indices = @transform_13, window_bounds = array<i64: 1, 2>}, {transform_indices = @transform_14, window_bounds = array<i64: 2, 2>}]} {
    %c0 = arith.constant 0 : index
    %c0_0 = arith.constant 0 : index
    %0 = vector.load %arg1[%c0, %c0_0] : memref<16x896xbf16, #tpu.memory_space<vmem>>, vector<16x896xbf16>
    %c0_1 = arith.constant 0 : index
    %c0_2 = arith.constant 0 : index
    %1 = vector.load %arg3[%c0_1, %c0_2] : memref<896x1280xbf16, #tpu.memory_space<vmem>>, vector<896x1280xbf16>
    %cst = arith.constant dense<0.000000e+00> : vector<16x1280xf32>
    %2 = tpu.matmul %0, %1, %cst {dimension_numbers = #tpu.dot_dimension_numbers<[1], [0], [0], [1], [0, 0, 1, 1], [], []>} : vector<16x896xbf16>, vector<896x1280xbf16>, vector<16x1280xf32> -> vector<16x1280xf32>
    %3 = vector.extract_strided_slice %2 {offsets = [0, 0], sizes = [16, 128], strides = [1, 1]} : vector<16x1280xf32> to vector<16x128xf32>
    %c0_3 = arith.constant 0 : index
    %c0_4 = arith.constant 0 : index
    %4 = vector.load %arg4[%c0_3, %c0_4] : memref<1x128xf32, #tpu.memory_space<vmem>>, vector<1x128xf32>
    %5 = vector.broadcast %4 : vector<1x128xf32> to vector<16x128xf32>
    %6 = arith.addf %3, %5 : vector<16x128xf32>
    %7 = vector.shape_cast %6 : vector<16x128xf32> to vector<2x8x128xf32>
    %8 = vector.extract_strided_slice %2 {offsets = [0, 128], sizes = [16, 128], strides = [1, 1]} : vector<16x1280xf32> to vector<16x128xf32>
    %c0_5 = arith.constant 0 : index
    %c0_6 = arith.constant 0 : index
    %9 = vector.load %arg5[%c0_5, %c0_6] : memref<1x128xf32, #tpu.memory_space<vmem>>, vector<1x128xf32>
    %10 = vector.broadcast %9 : vector<1x128xf32> to vector<16x128xf32>
    %11 = arith.addf %8, %10 : vector<16x128xf32>
    %12 = vector.shape_cast %11 : vector<16x128xf32> to vector<2x8x128xf32>
    %13 = vector.extract_strided_slice %2 {offsets = [0, 256], sizes = [16, 8], strides = [1, 1]} : vector<16x1280xf32> to vector<16x8xf32>
    %c0_7 = arith.constant 0 : index
    %c0_8 = arith.constant 0 : index
    %14 = vector.load %arg6[%c0_7, %c0_8] : memref<1x8xf32, #tpu.memory_space<vmem>>, vector<1x8xf32>
    %15 = vector.broadcast %14 : vector<1x8xf32> to vector<16x8xf32>
    %16 = arith.addf %13, %15 : vector<16x8xf32>
    %17 = vector.shape_cast %16 : vector<16x8xf32> to vector<2x8x8xf32>
    %18 = vector.extract_strided_slice %2 {offsets = [0, 384], sizes = [16, 896], strides = [1, 1]} : vector<16x1280xf32> to vector<16x896xf32>
    %19 = vector.shape_cast %18 : vector<16x896xf32> to vector<2x8x896xf32>
    "tpu.trace_start"() <{level = 10 : i32, message = "bph,bqh->bpq"}> : () -> ()
    %cst_9 = arith.constant dense<0.000000e+00> : vector<2x8x8xf32>
    %20 = tpu.matmul %7, %12, %cst_9 {dimension_numbers = #tpu.dot_dimension_numbers<[2], [2], [1], [1], [0, 0, 0, 1, 1, 1], [0], [0]>} : vector<2x8x128xf32>, vector<2x8x128xf32>, vector<2x8x8xf32> -> vector<2x8x8xf32>
    "tpu.trace_stop"() : () -> ()
    %cst_10 = arith.constant dense<0xFF800000> : vector<2x8xf32>
    %21 = vector.multi_reduction <maximumf>, %20, %cst_10 [2] : vector<2x8x8xf32> to vector<2x8xf32>
    %22 = vector.shape_cast %21 : vector<2x8xf32> to vector<2x8x1xf32>
    %23 = vector.broadcast %22 : vector<2x8x1xf32> to vector<2x8x8xf32>
    %24 = arith.subf %20, %23 : vector<2x8x8xf32>
    %25 = math.exp %24 : vector<2x8x8xf32>
    %cst_11 = arith.constant dense<0.000000e+00> : vector<2x8xf32>
    %26 = vector.multi_reduction <add>, %25, %cst_11 [2] : vector<2x8x8xf32> to vector<2x8xf32>
    %27 = vector.shape_cast %26 : vector<2x8xf32> to vector<2x8x1xf32>
    %28 = tpu.reciprocal %27 {approx = true} : vector<2x8x1xf32> -> vector<2x8x1xf32>
    %29 = vector.broadcast %28 : vector<2x8x1xf32> to vector<2x8x8xf32>
    %30 = arith.mulf %25, %29 : vector<2x8x8xf32>
    "tpu.trace_start"() <{level = 10 : i32, message = "bpq,bqk->bpk"}> : () -> ()
    %cst_12 = arith.constant dense<0.000000e+00> : vector<2x8x8xf32>
    %31 = tpu.matmul %30, %17, %cst_12 {dimension_numbers = #tpu.dot_dimension_numbers<[2], [1], [1], [2], [0, 0, 0, 1, 1, 2], [0], [0]>} : vector<2x8x8xf32>, vector<2x8x8xf32>, vector<2x8x8xf32> -> vector<2x8x8xf32>
    "tpu.trace_stop"() : () -> ()
    %32 = tpu.iota {dimensions = array<i32: 0>} : vector<8x8xi32>
    %33 = tpu.iota {dimensions = array<i32: 1>} : vector<8x8xi32>
    %34 = arith.cmpi eq, %32, %33 : vector<8x8xi32>
    %cst_13 = arith.constant 1.000000e+00 : f32
    %cst_14 = arith.constant 0.000000e+00 : f32
    %35 = vector.broadcast %cst_13 : f32 to vector<8x8xf32>
    %36 = vector.broadcast %cst_14 : f32 to vector<8x8xf32>
    %37 = arith.select %34, %35, %36 : vector<8x8xi1>, vector<8x8xf32>
    %38 = vector.shape_cast %37 : vector<8x8xf32> to vector<1x8x8xf32>
    %39 = vector.broadcast %38 : vector<1x8x8xf32> to vector<2x8x8xf32>
    "tpu.trace_start"() <{level = 10 : i32, message = "bkh,bqh->bkq"}> : () -> ()
    %cst_15 = arith.constant dense<0.000000e+00> : vector<2x8x8xf32>
    %40 = tpu.matmul %39, %31, %cst_15 {dimension_numbers = #tpu.dot_dimension_numbers<[2], [2], [1], [1], [0, 0, 0, 1, 1, 1], [0], [0]>} : vector<2x8x8xf32>, vector<2x8x8xf32>, vector<2x8x8xf32> -> vector<2x8x8xf32>
    "tpu.trace_stop"() : () -> ()
    %41 = vector.shape_cast %40 : vector<2x8x8xf32> to vector<16x8xf32>
    %c0_16 = arith.constant 0 : index
    %c0_17 = arith.constant 0 : index
    %42 = vector.load %arg7[%c0_16, %c0_17] : memref<8x8xf32, #tpu.memory_space<vmem>>, vector<8x8xf32>
    %cst_18 = arith.constant dense<0.000000e+00> : vector<16x8xf32>
    %43 = tpu.matmul %41, %42, %cst_18 {dimension_numbers = #tpu.dot_dimension_numbers<[1], [0], [0], [1], [0, 0, 1, 1], [], []>} : vector<16x8xf32>, vector<8x8xf32>, vector<16x8xf32> -> vector<16x8xf32>
    %44 = vector.shape_cast %43 : vector<16x8xf32> to vector<2x8x8xf32>
    %c0_19 = arith.constant 0 : index
    %c0_20 = arith.constant 0 : index
    %45 = vector.load %arg8[%c0_19, %c0_20] : memref<1x8xf32, #tpu.memory_space<vmem>>, vector<1x8xf32>
    %46 = vector.shape_cast %45 : vector<1x8xf32> to vector<1x1x8xf32>
    %47 = vector.broadcast %46 : vector<1x1x8xf32> to vector<2x8x8xf32>
    %48 = arith.addf %44, %47 : vector<2x8x8xf32>
    %cst_21 = arith.constant 1.000000e+00 : f32
    %49 = vector.shape_cast %34 : vector<8x8xi1> to vector<1x8x8xi1>
    %50 = vector.broadcast %49 : vector<1x8x8xi1> to vector<2x8x8xi1>
    %51 = vector.broadcast %cst_21 : f32 to vector<2x8x8xf32>
    %52 = arith.select %50, %51, %48 : vector<2x8x8xi1>, vector<2x8x8xf32>
    %cst_22 = arith.constant dense<0.000000e+00> : vector<2x8xf32>
    %53 = vector.multi_reduction <add>, %52, %cst_22 [2] : vector<2x8x8xf32> to vector<2x8xf32>
    %54 = vector.shape_cast %53 : vector<2x8xf32> to vector<2x8x1xf32>
    %cst_23 = arith.constant 1.000000e+00 : f32
    %55 = vector.broadcast %cst_23 : f32 to vector<2x8x1xf32>
    %56 = arith.maximumf %54, %55 : vector<2x8x1xf32>
    %57 = math.rsqrt %56 : vector<2x8x1xf32>
    %cst_24 = arith.constant dense<0.000000e+00> : vector<2x8xf32>
    %58 = vector.multi_reduction <add>, %52, %cst_24 [2] : vector<2x8x8xf32> to vector<2x8xf32>
    %cst_25 = arith.constant 1.000000e+00 : f32
    %59 = vector.broadcast %cst_25 : f32 to vector<2x8xf32>
    %60 = arith.maximumf %58, %59 : vector<2x8xf32>
    %61 = math.rsqrt %60 : vector<2x8xf32>
    %62 = vector.shape_cast %61 : vector<2x8xf32> to vector<2x1x8xf32>
    %63 = vector.broadcast %57 : vector<2x8x1xf32> to vector<2x8x8xf32>
    %64 = arith.mulf %63, %52 : vector<2x8x8xf32>
    %65 = vector.broadcast %62 : vector<2x1x8xf32> to vector<2x8x8xf32>
    %66 = arith.mulf %64, %65 : vector<2x8x8xf32>
    %67 = arith.truncf %66 : vector<2x8x8xf32> to vector<2x8x8xbf16>
    %68 = arith.truncf %19 : vector<2x8x896xf32> to vector<2x8x896xbf16>
    "tpu.trace_start"() <{level = 10 : i32, message = "bpq,bqd->bpd"}> : () -> ()
    %cst_26 = arith.constant dense<0.000000e+00> : vector<2x8x896xf32>
    %69 = tpu.matmul %67, %68, %cst_26 {dimension_numbers = #tpu.dot_dimension_numbers<[2], [1], [1], [2], [0, 0, 0, 1, 1, 2], [0], [0]>} : vector<2x8x8xbf16>, vector<2x8x896xbf16>, vector<2x8x896xf32> -> vector<2x8x896xf32>
    "tpu.trace_stop"() : () -> ()
    %c0_27 = arith.constant 0 : index
    %c0_28 = arith.constant 0 : index
    %70 = vector.load %arg9[%c0_27, %c0_28] : memref<1x896xf32, #tpu.memory_space<vmem>>, vector<1x896xf32>
    %71 = vector.shape_cast %70 : vector<1x896xf32> to vector<1x1x896xf32>
    %72 = vector.broadcast %71 : vector<1x1x896xf32> to vector<2x8x896xf32>
    %73 = arith.addf %69, %72 : vector<2x8x896xf32>
    %cst_29 = arith.constant 0.000000e+00 : f32
    %74 = vector.broadcast %cst_29 : f32 to vector<2x8x896xf32>
    %75 = arith.maximumf %73, %74 : vector<2x8x896xf32>
    %76 = vector.shape_cast %75 : vector<2x8x896xf32> to vector<16x896xf32>
    %77 = arith.truncf %76 : vector<16x896xf32> to vector<16x896xbf16>
    %c0_30 = arith.constant 0 : index
    %c0_31 = arith.constant 0 : index
    %78 = vector.load %arg10[%c0_30, %c0_31] : memref<896x896xbf16, #tpu.memory_space<vmem>>, vector<896x896xbf16>
    %cst_32 = arith.constant dense<0.000000e+00> : vector<16x896xf32>
    %79 = tpu.matmul %77, %78, %cst_32 {dimension_numbers = #tpu.dot_dimension_numbers<[1], [0], [0], [1], [0, 0, 1, 1], [], []>} : vector<16x896xbf16>, vector<896x896xbf16>, vector<16x896xf32> -> vector<16x896xf32>
    %80 = vector.shape_cast %79 : vector<16x896xf32> to vector<2x8x896xf32>
    %81 = arith.truncf %80 : vector<2x8x896xf32> to vector<2x8x896xbf16>
    "tpu.trace_start"() <{level = 10 : i32, message = "bpq,bqd->bpd"}> : () -> ()
    %cst_33 = arith.constant dense<0.000000e+00> : vector<2x8x896xf32>
    %82 = tpu.matmul %67, %81, %cst_33 {dimension_numbers = #tpu.dot_dimension_numbers<[2], [1], [1], [2], [0, 0, 0, 1, 1, 2], [0], [0]>} : vector<2x8x8xbf16>, vector<2x8x896xbf16>, vector<2x8x896xf32> -> vector<2x8x896xf32>
    "tpu.trace_stop"() : () -> ()
    %c0_34 = arith.constant 0 : index
    %c0_35 = arith.constant 0 : index
    %83 = vector.load %arg11[%c0_34, %c0_35] : memref<1x896xf32, #tpu.memory_space<vmem>>, vector<1x896xf32>
    %84 = vector.shape_cast %83 : vector<1x896xf32> to vector<1x1x896xf32>
    %85 = vector.broadcast %84 : vector<1x1x896xf32> to vector<2x8x896xf32>
    %86 = arith.addf %82, %85 : vector<2x8x896xf32>
    %cst_36 = arith.constant 0.000000e+00 : f32
    %87 = vector.broadcast %cst_36 : f32 to vector<2x8x896xf32>
    %88 = arith.maximumf %86, %87 : vector<2x8x896xf32>
    %cst_37 = arith.constant dense<0.000000e+00> : vector<2x8xf32>
    %89 = vector.multi_reduction <add>, %88, %cst_37 [2] : vector<2x8x896xf32> to vector<2x8xf32>
    %cst_38 = arith.constant 0.00112233451 : f32
    %90 = vector.broadcast %cst_38 : f32 to vector<2x8xf32>
    %91 = arith.mulf %89, %90 : vector<2x8xf32>
    %c0_39 = arith.constant 0 : index
    %c0_40 = arith.constant 0 : index
    %92 = vector.load %arg2[%c0_39, %c0_40] : memref<2x1xf32, #tpu.memory_space<vmem>>, vector<2x1xf32>
    %c0_41 = arith.constant 0 : index
    %c0_42 = arith.constant 0 : index
    %93 = vector.load %arg12[%c0_41, %c0_42] : memref<1x2xf32, #tpu.memory_space<vmem>>, vector<1x2xf32>
    %94 = vector.broadcast %92 : vector<2x1xf32> to vector<2x2xf32>
    %95 = vector.broadcast %93 : vector<1x2xf32> to vector<2x2xf32>
    %96 = arith.mulf %94, %95 : vector<2x2xf32>
    %c0_43 = arith.constant 0 : index
    %c0_44 = arith.constant 0 : index
    %97 = vector.load %arg13[%c0_43, %c0_44] : memref<8x2xf32, #tpu.memory_space<vmem>>, vector<8x2xf32>
    %cst_45 = arith.constant dense<0.000000e+00> : vector<2x2xf32>
    %98 = tpu.matmul %91, %97, %cst_45 {dimension_numbers = #tpu.dot_dimension_numbers<[1], [0], [0], [1], [0, 0, 1, 1], [], []>} : vector<2x8xf32>, vector<8x2xf32>, vector<2x2xf32> -> vector<2x2xf32>
    %99 = arith.addf %96, %98 : vector<2x2xf32>
    %c0_46 = arith.constant 0 : index
    %c0_47 = arith.constant 0 : index
    %100 = vector.load %arg14[%c0_46, %c0_47] : memref<1x2xf32, #tpu.memory_space<vmem>>, vector<1x2xf32>
    %101 = vector.broadcast %100 : vector<1x2xf32> to vector<2x2xf32>
    %102 = arith.addf %99, %101 : vector<2x2xf32>
    %c0_48 = arith.constant 0 : index
    %c0_49 = arith.constant 0 : index
    %103 = vector.load %arg15[%c0_48, %c0_49] : memref<2x2xf32, #tpu.memory_space<vmem>>, vector<2x2xf32>
    tpu.vector_store %arg15[%c0_48, %c0_49], %102 {strides = array<i32>} : memref<2x2xf32, #tpu.memory_space<vmem>>, vector<2x2xf32>,
    return
  }
  func.func @transform_0(%arg0: i32) -> (i32, i32) {
    %c0_i32 = arith.constant 0 : i32
    %c0_i32_0 = arith.constant 0 : i32
    return %arg0, %c0_i32 : i32, i32
  }
  func.func @transform_1(%arg0: i32) -> (i32, i32) {
    %c0_i32 = arith.constant 0 : i32
    %c0_i32_0 = arith.constant 0 : i32
    return %arg0, %c0_i32 : i32, i32
  }
  func.func @transform_2(%arg0: i32) -> (i32, i32) {
    %c0_i32 = arith.constant 0 : i32
    %c0_i32_0 = arith.constant 0 : i32
    %c0_i32_1 = arith.constant 0 : i32
    return %c0_i32, %c0_i32_0 : i32, i32
  }
  func.func @transform_3(%arg0: i32) -> (i32, i32) {
    %c0_i32 = arith.constant 0 : i32
    %c0_i32_0 = arith.constant 0 : i32
    %c0_i32_1 = arith.constant 0 : i32
    return %c0_i32, %c0_i32_0 : i32, i32
  }
  func.func @transform_4(%arg0: i32) -> (i32, i32) {
    %c0_i32 = arith.constant 0 : i32
    %c0_i32_0 = arith.constant 0 : i32
    %c0_i32_1 = arith.constant 0 : i32
    return %c0_i32, %c0_i32_0 : i32, i32
  }
  func.func @transform_5(%arg0: i32) -> (i32, i32) {
    %c0_i32 = arith.constant 0 : i32
    %c0_i32_0 = arith.constant 0 : i32
    %c0_i32_1 = arith.constant 0 : i32
    return %c0_i32, %c0_i32_0 : i32, i32
  }
  func.func @transform_6(%arg0: i32) -> (i32, i32) {
    %c0_i32 = arith.constant 0 : i32
    %c0_i32_0 = arith.constant 0 : i32
    %c0_i32_1 = arith.constant 0 : i32
    return %c0_i32, %c0_i32_0 : i32, i32
  }
  func.func @transform_7(%arg0: i32) -> (i32, i32) {
    %c0_i32 = arith.constant 0 : i32
    %c0_i32_0 = arith.constant 0 : i32
    %c0_i32_1 = arith.constant 0 : i32
    return %c0_i32, %c0_i32_0 : i32, i32
  }
  func.func @transform_8(%arg0: i32) -> (i32, i32) {
    %c0_i32 = arith.constant 0 : i32
    %c0_i32_0 = arith.constant 0 : i32
    %c0_i32_1 = arith.constant 0 : i32
    return %c0_i32, %c0_i32_0 : i32, i32
  }
  func.func @transform_9(%arg0: i32) -> (i32, i32) {
    %c0_i32 = arith.constant 0 : i32
    %c0_i32_0 = arith.constant 0 : i32
    %c0_i32_1 = arith.constant 0 : i32
    return %c0_i32, %c0_i32_0 : i32, i32
  }
  func.func @transform_10(%arg0: i32) -> (i32, i32) {
    %c0_i32 = arith.constant 0 : i32
    %c0_i32_0 = arith.constant 0 : i32
    %c0_i32_1 = arith.constant 0 : i32
    return %c0_i32, %c0_i32_0 : i32, i32
  }
  func.func @transform_11(%arg0: i32) -> (i32, i32) {
    %c0_i32 = arith.constant 0 : i32
    %c0_i32_0 = arith.constant 0 : i32
    %c0_i32_1 = arith.constant 0 : i32
    return %c0_i32, %c0_i32_0 : i32, i32
  }
  func.func @transform_12(%arg0: i32) -> (i32, i32) {
    %c0_i32 = arith.constant 0 : i32
    %c0_i32_0 = arith.constant 0 : i32
    %c0_i32_1 = arith.constant 0 : i32
    return %c0_i32, %c0_i32_0 : i32, i32
  }
  func.func @transform_13(%arg0: i32) -> (i32, i32) {
    %c0_i32 = arith.constant 0 : i32
    %c0_i32_0 = arith.constant 0 : i32
    %c0_i32_1 = arith.constant 0 : i32
    return %c0_i32, %c0_i32_0 : i32, i32
  }
  func.func @transform_14(%arg0: i32) -> (i32, i32) {
    %c0_i32 = arith.constant 0 : i32
    %c0_i32_0 = arith.constant 0 : i32
    return %arg0, %c0_i32 : i32, i32
  }
}

</mosaic_0001>

<bundles_post_ra>
// kernel: tpu_custom_call.1
= control target key start
LH: loop header
LB: loop body
LE: loop exit
PB: predicated region body
PF: predicated region fallthrough
CT: control target
= control target key end

     0   :  { %19 = vsyncpa [#allocation3], 0  ;;  %s12816_s0 = inlined_call_operand.hbm [shape: bf16[16,896], index: 0, kind: input, shape index: {}]   ;;  %s12817_s1 = inlined_call_operand.vmem [shape: f32[2,1], index: 1, kind: input, shape index: {}]   ;;  %s12818_s2 = inlined_call_operand.hbm [shape: bf16[896,1280], index: 2, kind: input, shape index: {}]   ;;  %s12819_s3 = inlined_call_operand.hbm [shape: f32[1,128], index: 3, kind: input, shape index: {}]   ;;  %s12820_s4 = inlined_call_operand.hbm [shape: f32[1,128], index: 4, kind: input, shape index: {}]   ;;  %s12821_s5 = inlined_call_operand.hbm [shape: f32[1,8], index: 5, kind: input, shape index: {}]   ;;  %s12822_s6 = inlined_call_operand.hbm [shape: f32[8,8], index: 6, kind: input, shape index: {}]   ;;  %s12823_s7 = inlined_call_operand.hbm [shape: f32[1,8], index: 7, kind: input, shape index: {}]   ;;  %s12824_s8 = inlined_call_operand.hbm [shape: f32[1,896], index: 8, kind: input, shape index: {}]   ;;  %s12825_s9 = inlined_call_operand.hbm [shape: bf16[896,896], index: 9, kind: input, shape index: {}]   ;;  %s12826_s10 = inlined_call_operand.hbm [shape: f32[1,896], index: 10, kind: input, shape index: {}]   ;;  %s12827_s11 = inlined_call_operand.hbm [shape: f32[1,2], index: 11, kind: input, shape index: {}]   ;;  %s12828_s12 = inlined_call_operand.vmem [shape: f32[8,2], index: 12, kind: input, shape index: {}]   ;;  %s12829_s13 = inlined_call_operand.hbm [shape: f32[1,2], index: 13, kind: input, shape index: {}]   ;;  %s12830_s14 = inlined_call_operand.hbm [shape: f32[2,2], index: 14, kind: output, shape index: {}]  }
   0x1   :  { %20 = vsyncpa [#allocation6], 0 }
   0x2   :  { %21 = vsyncpa [#allocation9], 0 }
   0x3   :  { %22 = vsyncpa [#allocation12], 0 }
   0x4   :  { %23 = vsyncpa [#allocation15], 0 }
   0x5   :  { %24 = vsyncpa [#allocation18], 0 }
   0x6   :  { %25 = vsyncpa [#allocation21], 0 }
   0x7   :  { %26 = vsyncpa [#allocation4], 0  ;;  %s12183_s29 = smov [#allocation5]  }
   0x8   :  { %s46_s30 = sshll.u32 %s12183_s29, 4  ;;  %s47_s30 = int_to_ptr.vmem [resolvable:$true] %s46_s30 }
   0x9   :  { %s11915_s15 = scalar_lea.vmem %s47_s30, 71680  ;;  %p11920_p1 = scmp.lt.s32.totalorder %s47_s30, %s47_s30 }
   0xa   :  { %p11916_p0 = scmp.ne.s32.totalorder %s47_s30, %s11915_s15  ;;  %p11921_p2 = scmp.lt.s32.totalorder %s11915_s15, %s11915_s15 }
   0xc   :  { %p11922_p3 = por %p11921_p2, %p11920_p1 }
   0xe   :  { %p11923_p4 = pnand %p11922_p3, %p11916_p0 }
  0x10   :  { %11926 = shalt.err (!%p11923_p4)
}
  0x11   :  { %s12184_s16 = smov 640   ;;  %s12185_s17 = smov 40  }
  0x12   :  { %52 = dma.hbm_to_vmem [thread:$0]  %s12818_s2, 71680, %s47_s30, [#allocation6], %s12184_s16, %s12184_s16, %s12185_s17  }
  0x13   :  { %s12186_s20 = smov [#allocation8]   ;;  %s12187_s22 = smov [#allocation11]  }
  0x14   :  { %s69_s21 = sshll.u32 %s12186_s20, 4  ;;  %s89_s23 = sshll.u32 %s12187_s22, 4  ;;  %s70_s21 = int_to_ptr.vmem [resolvable:$true] %s69_s21  ;;  %s90_s23 = int_to_ptr.vmem [resolvable:$true] %s89_s23 }
  0x15   :  { %s11935_s24 = scalar_lea.vmem %s70_s21, 16  ;;  %s11939_s25 = scalar_lea.vmem %s70_s21, 32 }
  0x16   :  { %p11936_p5 = scmp.ne.s32.totalorder %s70_s21, %s11935_s24  ;;  %p11940_p6 = scmp.lt.s32.totalorder %s70_s21, %s70_s21 }
  0x17   :  { %p11941_p7 = scmp.lt.s32.totalorder %s11939_s25, %s11935_s24 }
  0x19   :  { %p11942_p8 = por %p11941_p7, %p11940_p6 }
  0x1b   :  { %p11943_p9 = pnand %p11942_p8, %p11936_p5 }
  0x1d   :  { %11946 = shalt.err (!%p11943_p9)
}
  0x1e   :  { %72 = dma.hbm_to_vmem [thread:$0]  %s12820_s4, 16, %s70_s21, [#allocation9]  }
  0x1f   :  { %s11955_s28 = scalar_lea.vmem %s90_s23, 128  ;;  %p11960_p11 = scmp.lt.s32.totalorder %s90_s23, %s90_s23 }
  0x20   :  { %p11956_p10 = scmp.ne.s32.totalorder %s90_s23, %s11955_s28  ;;  %p11961_p12 = scmp.lt.s32.totalorder %s11955_s28, %s11955_s28 }
  0x22   :  { %p11962_p13 = por %p11961_p12, %p11960_p11 }
  0x24   :  { %p11963_p0 = pnand %p11962_p13, %p11956_p10 }
  0x26   :  { %11966 = shalt.err (!%p11963_p0)
}
  0x27   :  { %92 = dma.hbm_to_vmem [thread:$0]  %s12822_s6, 128, %s90_s23, [#allocation12]  }
  0x28   :  { %s12188_s30 = smov [#allocation14]   ;;  %s12189_s16 = smov [#allocation17]  }
  0x29   :  { %s109_s15 = sshll.u32 %s12188_s30, 4  ;;  %s131_s17 = sshll.u32 %s12189_s16, 4  ;;  %s110_s15 = int_to_ptr.vmem [resolvable:$true] %s109_s15  ;;  %s132_s17 = int_to_ptr.vmem [resolvable:$true] %s131_s17 }
  0x2a   :  { %s11975_s18 = scalar_lea.vmem %s110_s15, 112  ;;  %s11979_s4 = scalar_lea.vmem %s110_s15, 128 }
  0x2b   :  { %p11976_p1 = scmp.ne.s32.totalorder %s110_s15, %s11975_s18  ;;  %p11980_p2 = scmp.lt.s32.totalorder %s110_s15, %s110_s15 }
  0x2c   :  { %p11981_p3 = scmp.lt.s32.totalorder %s11979_s4, %s11975_s18 }
  0x2e   :  { %p11982_p4 = por %p11981_p3, %p11980_p2 }
  0x30   :  { %p11983_p5 = pnand %p11982_p4, %p11976_p1 }
  0x32   :  { %11986 = shalt.err (!%p11983_p5)
}
  0x33   :  { %112 = dma.hbm_to_vmem [thread:$0]  %s12824_s8, 112, %s110_s15, [#allocation15]  }
  0x34   :  { %s11995_s21 = scalar_lea.vmem %s132_s17, 112  ;;  %s11999_s6 = scalar_lea.vmem %s132_s17, 128 }
  0x35   :  { %p11996_p6 = scmp.ne.s32.totalorder %s132_s17, %s11995_s21  ;;  %p12000_p7 = scmp.lt.s32.totalorder %s132_s17, %s132_s17 }
  0x36   :  { %p12001_p8 = scmp.lt.s32.totalorder %s11999_s6, %s11995_s21 }
  0x38   :  { %p12002_p9 = por %p12001_p8, %p12000_p7 }
  0x3a   :  { %p12003_p10 = pnand %p12002_p9, %p11996_p6 }
  0x3c   :  { %12006 = shalt.err (!%p12003_p10)
}
  0x3d   :  { %134 = dma.hbm_to_vmem [thread:$0]  %s12826_s10, 112, %s132_s17, [#allocation18]  }
  0x3e   :  { %s12190_s24 = smov [#allocation2]  }
  0x3f   :  { %s32_s25 = sshll.u32 %s12190_s24, 4  ;;  %s33_s25 = int_to_ptr.vmem [resolvable:$true] %s32_s25 }
  0x40   :  { %s12015_s26 = scalar_lea.vmem %s33_s25, 896  ;;  %p12020_p12 = scmp.lt.s32.totalorder %s33_s25, %s33_s25 }
  0x41   :  { %p12016_p11 = scmp.ne.s32.totalorder %s33_s25, %s12015_s26  ;;  %p12021_p13 = scmp.lt.s32.totalorder %s12015_s26, %s12015_s26 }
  0x43   :  { %p12022_p0 = por %p12021_p13, %p12020_p12 }
  0x45   :  { %p12023_p1 = pnand %p12022_p0, %p12016_p11 }
  0x47   :  { %12026 = shalt.err (!%p12023_p1)
}
  0x48   :  { %s12191_s8 = smov 448   ;;  %s12192_s27 = smov 28  }
  0x49   :  { %38 = dma.hbm_to_vmem [thread:$0]  %s12816_s0, 896, %s33_s25, [#allocation3], %s12191_s8, %s12191_s8, %s12192_s27  }
  0x4a   :  { %s12193_s10 = smov [#allocation7]   ;;  %s12194_s30 = smov [#allocation10]  }
  0x4b   :  { %s59_s29 = sshll.u32 %s12193_s10, 4  ;;  %s79_s15 = sshll.u32 %s12194_s30, 4  ;;  %s60_s29 = int_to_ptr.vmem [resolvable:$true] %s59_s29  ;;  %s80_s15 = int_to_ptr.vmem [resolvable:$true] %s79_s15 }
  0x4c   :  { %s12035_s16 = scalar_lea.vmem %s60_s29, 16  ;;  %s12039_s17 = scalar_lea.vmem %s60_s29, 32 }
  0x4d   :  { %p12036_p2 = scmp.ne.s32.totalorder %s60_s29, %s12035_s16  ;;  %p12040_p3 = scmp.lt.s32.totalorder %s60_s29, %s60_s29 }
  0x4e   :  { %p12041_p4 = scmp.lt.s32.totalorder %s12039_s17, %s12035_s16 }
  0x50   :  { %p12042_p5 = por %p12041_p4, %p12040_p3 }
  0x52   :  { %p12043_p6 = pnand %p12042_p5, %p12036_p2 }
  0x54   :  { %12046 = shalt.err (!%p12043_p6)
}
  0x55   :  { %62 = dma.hbm_to_vmem [thread:$0]  %s12819_s3, 16, %s60_s29, [#allocation6]  }
  0x56   :  { %s12055_s19 = scalar_lea.vmem %s80_s15, 16  ;;  %s12059_s0 = scalar_lea.vmem %s80_s15, 32 }
  0x57   :  { %p12056_p7 = scmp.ne.s32.totalorder %s80_s15, %s12055_s19  ;;  %p12060_p8 = scmp.lt.s32.totalorder %s80_s15, %s80_s15 }
  0x58   :  { %p12061_p9 = scmp.lt.s32.totalorder %s12059_s0, %s12055_s19 }
  0x5a   :  { %p12062_p10 = por %p12061_p9, %p12060_p8 }
  0x5c   :  { %p12063_p11 = pnand %p12062_p10, %p12056_p7 }
  0x5e   :  { %12066 = shalt.err (!%p12063_p11)
}
  0x5f   :  { %82 = dma.hbm_to_vmem [thread:$0]  %s12821_s5, 16, %s80_s15, [#allocation9]  }
  0x60   :  { %s12195_s6 = smov [#allocation13]   ;;  %s12196_s23 = smov [#allocation16]  }
  0x61   :  { %s99_s22 = sshll.u32 %s12195_s6, 4  ;;  %s118_s24 = sshll.u32 %s12196_s23, 4  ;;  %s100_s22 = int_to_ptr.vmem [resolvable:$true] %s99_s22  ;;  %s119_s24 = int_to_ptr.vmem [resolvable:$true] %s118_s24 }
  0x62   :  { %s12075_s25 = scalar_lea.vmem %s100_s22, 16  ;;  %s12079_s3 = scalar_lea.vmem %s100_s22, 32 }
  0x63   :  { %p12076_p12 = scmp.ne.s32.totalorder %s100_s22, %s12075_s25  ;;  %p12080_p13 = scmp.lt.s32.totalorder %s100_s22, %s100_s22 }
  0x64   :  { %p12081_p0 = scmp.lt.s32.totalorder %s12079_s3, %s12075_s25 }
  0x66   :  { %p12082_p1 = por %p12081_p0, %p12080_p13 }
  0x68   :  { %p12083_p2 = pnand %p12082_p1, %p12076_p12 }
  0x6a   :  { %12086 = shalt.err (!%p12083_p2)
}
  0x6b   :  { %102 = dma.hbm_to_vmem [thread:$0]  %s12823_s7, 16, %s100_s22, [#allocation12]  }
  0x6c   :  { %s12095_s2 = scalar_lea.vmem %s119_s24, 50176  ;;  %p12100_p4 = scmp.lt.s32.totalorder %s119_s24, %s119_s24 }
  0x6d   :  { %p12096_p3 = scmp.ne.s32.totalorder %s119_s24, %s12095_s2  ;;  %p12101_p5 = scmp.lt.s32.totalorder %s12095_s2, %s12095_s2 }
  0x6f   :  { %p12102_p6 = por %p12101_p5, %p12100_p4 }
  0x71   :  { %p12103_p7 = pnand %p12102_p6, %p12096_p3 }
  0x73   :  { %12106 = shalt.err (!%p12103_p7)
}
  0x74   :  { %124 = dma.hbm_to_vmem [thread:$0]  %s12825_s9, 50176, %s119_s24, [#allocation15], %s12191_s8, %s12191_s8, %s12192_s27  }
  0x75   :  { %s12197_s29 = smov [#allocation19]   ;;  %s12198_s15 = smov [#allocation20]  }
  0x76   :  { %s141_s30 = sshll.u32 %s12197_s29, 4  ;;  %s153_s16 = sshll.u32 %s12198_s15, 4  ;;  %s142_s30 = int_to_ptr.vmem [resolvable:$true] %s141_s30  ;;  %s154_s16 = int_to_ptr.vmem [resolvable:$true] %s153_s16 }
  0x77   :  { %s12115_s7 = scalar_lea.vmem %s142_s30, 16  ;;  %s12119_s17 = scalar_lea.vmem %s142_s30, 32 }
  0x78   :  { %p12116_p8 = scmp.ne.s32.totalorder %s142_s30, %s12115_s7  ;;  %p12120_p9 = scmp.lt.s32.totalorder %s142_s30, %s142_s30 }
  0x79   :  { %p12121_p10 = scmp.lt.s32.totalorder %s12119_s17, %s12115_s7 }
  0x7b   :  { %p12122_p11 = por %p12121_p10, %p12120_p9 }
  0x7d   :  { %p12123_p12 = pnand %p12122_p11, %p12116_p8 }
  0x7f   :  { %12126 = shalt.err (!%p12123_p12)
}
  0x80   :  { %144 = dma.hbm_to_vmem [thread:$0]  %s12827_s11, 16, %s142_s30, [#allocation18]  }
  0x81   :  { %s12135_s19 = scalar_lea.vmem %s154_s16, 16  ;;  %s12139_s9 = scalar_lea.vmem %s154_s16, 32 }
  0x82   :  { %p12136_p13 = scmp.ne.s32.totalorder %s154_s16, %s12135_s19  ;;  %p12140_p0 = scmp.lt.s32.totalorder %s154_s16, %s154_s16 }
  0x83   :  { %p12141_p1 = scmp.lt.s32.totalorder %s12139_s9, %s12135_s19 }
  0x85   :  { %p12142_p2 = por %p12141_p1, %p12140_p0 }
  0x87   :  { %p12143_p3 = pnand %p12142_p2, %p12136_p13 }
  0x89   :  { %12146 = shalt.err (!%p12143_p3)
}
  0x8a   :  { %156 = dma.hbm_to_vmem [thread:$0]  %s12829_s13, 16, %s154_s16, [#allocation21]  }
  0x8b   :  { %12167 = dma.done.wait [#allocation3], 896  }
  0x8c   :  { %12168 = vsyncadd [#allocation3], 4294966400 }
  0x8d   :  { %12169 = dma.done.wait [#allocation6], 71696  }
  0x8e   :  { %12170 = vsyncadd [#allocation6], 4294895600 }
  0x8f   :  { %12171 = dma.done.wait [#allocation9], 32  }
  0x90   :  { %12172 = vsyncadd [#allocation9], 4294967264 }
  0x91   :  { %12173 = dma.done.wait [#allocation12], 144  }
  0x92   :  { %12174 = vsyncadd [#allocation12], 4294967152 }
  0x93   :  { %12175 = dma.done.wait [#allocation15], 50288  }
  0x94   :  { %12176 = vsyncadd [#allocation15], 4294917008 }
  0x95   :  { %12177 = dma.done.wait [#allocation18], 128  }
  0x96   :  { %12178 = vsyncadd [#allocation18], 4294967168 }
  0x97   :  { %12179 = dma.done.wait [#allocation21], 16  }
  0x98   :  { %12180 = vsyncadd [#allocation21], 4294967280  ;;  %v12199_v0 = vmov 0   ;;  %v10470_v1 = vld [vmem:[#allocation5 + $0x234] ss:$40 sps:$4 sm:$0xff]   ;;  %vm12201_vm0 = vmmov 0  }
  0x99   :  { %10469 = vset.pattern.permute.xlu0 %v12199_v0  ;;  %v10472_v2 = vld [vmem:[#allocation5 + $0x734] ss:$40 sps:$4 sm:$0xff]   ;;  %3598 = vmatprep.subr.bf16.mxu0 %v10470_v1  ;;  %v10474_v3 = vld [vmem:[#allocation5 + $0x230] ss:$40 sps:$4 sm:$0xff]   ;;  %v10476_v5 = vld [vmem:[#allocation5 + $0x1e4] ss:$40 sps:$4 sm:$0xff]  }
  0x9a   :  { %v10475_v4 = vld [vmem:[#allocation5 + $0x730] ss:$40 sps:$4 sm:$0xff]   ;;  %3641 = vmatprep.subr.bf16.mxu1 %v10472_v2  ;;  %3599 = vmatpush1.bf16.msra.mxu0 %v10474_v3  ;;  %v10478_v6 = vld [vmem:[#allocation5 + $0x6e4] ss:$40 sps:$4 sm:$0xff]   ;;  %v10480_v7 = vld [vmem:[#allocation5 + $0x1e0] ss:$40 sps:$4 sm:$0xff]  }
  0x9b   :  { %3642 = vmatpush1.bf16.msra.mxu1 %v10475_v4  ;;  %3600 = vmatprep.subr.bf16.mxu0 %v10476_v5  ;;  %v10481_v8 = vld [vmem:[#allocation5 + $0x6e0] ss:$40 sps:$4 sm:$0xff]   ;;  %v10482_v9 = vld [vmem:[#allocation5 + $0x194] ss:$40 sps:$4 sm:$0xff]   ;;  %v10486_v11 = vld [vmem:[#allocation5 + $0x190] ss:$40 sps:$4 sm:$0xff]  }
  0x9c   :  { %3643 = vmatprep.subr.bf16.mxu1 %v10478_v6  ;;  %v10484_v10 = vld [vmem:[#allocation5 + $0x694] ss:$40 sps:$4 sm:$0xff]   ;;  %v10487_v12 = vld [vmem:[#allocation5 + $0x690] ss:$40 sps:$4 sm:$0xff]   ;;  %v10488_v13 = vld [vmem:[#allocation5 + $0x144] ss:$40 sps:$4 sm:$0xff]  }
  0x9d   :  { %v10490_v14 = vld [vmem:[#allocation5 + $0x644] ss:$40 sps:$4 sm:$0xff]   ;;  %v10492_v15 = vld [vmem:[#allocation5 + $0x140] ss:$40 sps:$4 sm:$0xff]   ;;  %v10494_v17 = vld [vmem:[#allocation5 + $0xf4] ss:$40 sps:$4 sm:$0xff]  }
  0x9e   :  { %3601 = vmatpush1.bf16.msra.mxu0 %v10480_v7  ;;  %v10493_v16 = vld [vmem:[#allocation5 + $0x640] ss:$40 sps:$4 sm:$0xff]   ;;  %v10496_v18 = vld [vmem:[#allocation5 + $0x5f4] ss:$40 sps:$4 sm:$0xff]   ;;  %v10498_v19 = vld [vmem:[#allocation5 + $0xf0] ss:$40 sps:$4 sm:$0xff]  }
  0x9f   :  { %3644 = vmatpush1.bf16.msra.mxu1 %v10481_v8  ;;  %3602 = vmatprep.subr.bf16.mxu0 %v10482_v9  ;;  %v10499_v20 = vld [vmem:[#allocation5 + $0x5f0] ss:$40 sps:$4 sm:$0xff]   ;;  %v10500_v21 = vld [vmem:[#allocation5 + $0xa4] ss:$40 sps:$4 sm:$0xff]   ;;  %v10504_v23 = vld [vmem:[#allocation5 + $0xa0] ss:$40 sps:$4 sm:$0xff]  }
  0xa0   :  { %3645 = vmatprep.subr.bf16.mxu1 %v10484_v10  ;;  %v10502_v22 = vld [vmem:[#allocation5 + $0x5a4] ss:$40 sps:$4 sm:$0xff]   ;;  %v10505_v24 = vld [vmem:[#allocation5 + $0x5a0] ss:$40 sps:$4 sm:$0xff]   ;;  %v10506_v25 = vld [vmem:[#allocation5 + $0x54] ss:$40 sps:$4 sm:$0xff]  }
  0xa1   :  { %v10508_v26 = vld [vmem:[#allocation5 + $0x554] ss:$40 sps:$4 sm:$0xff]   ;;  %v10510_v27 = vld [vmem:[#allocation5 + $0x50] ss:$40 sps:$4 sm:$0xff]   ;;  %v10512_v29 = vld [vmem:[#allocation5 + $0x4] ss:$40 sps:$4 sm:$0xff]  }
  0xa2   :  { %3603 = vmatpush1.bf16.msra.mxu0 %v10486_v11  ;;  %v10511_v28 = vld [vmem:[#allocation5 + $0x550] ss:$40 sps:$4 sm:$0xff]   ;;  %v10514_v30 = vld [vmem:[#allocation5 + $0x504] ss:$40 sps:$4 sm:$0xff]   ;;  %v10516_v31 = vld [vmem:[#allocation5] ss:$40 sps:$4 sm:$0xff]  }
  0xa3   :  { %3646 = vmatpush1.bf16.msra.mxu1 %v10487_v12  ;;  %3604 = vmatprep.subr.bf16.mxu0 %v10488_v13  ;;  %v10517_v32 = vld [vmem:[#allocation5 + $0x500] ss:$40 sps:$4 sm:$0xff]   ;;  %v10518_v33 = vld [vmem:[#allocation5 + $0x4b4] ss:$40 sps:$4 sm:$0xff]   ;;  %v10522_v35 = vld [vmem:[#allocation5 + $0x4b0] ss:$40 sps:$4 sm:$0xff]  }
  0xa4   :  { %3647 = vmatprep.subr.bf16.mxu1 %v10490_v14  ;;  %v10520_v34 = vld [vmem:[#allocation5 + $0x9b4] ss:$40 sps:$4 sm:$0xff]   ;;  %v10523_v36 = vld [vmem:[#allocation5 + $0x9b0] ss:$40 sps:$4 sm:$0xff]   ;;  %v10524_v37 = vld [vmem:[#allocation5 + $0x464] ss:$40 sps:$4 sm:$0xff]  }
  0xa5   :  { %v10526_v38 = vld [vmem:[#allocation5 + $0x964] ss:$40 sps:$4 sm:$0xff]   ;;  %v10528_v39 = vld [vmem:[#allocation5 + $0x460] ss:$40 sps:$4 sm:$0xff]   ;;  %v10530_v41 = vld [vmem:[#allocation5 + $0x414] ss:$40 sps:$4 sm:$0xff]  }
  0xa6   :  { %3605 = vmatpush1.bf16.msra.mxu0 %v10492_v15  ;;  %v10529_v40 = vld [vmem:[#allocation5 + $0x960] ss:$40 sps:$4 sm:$0xff]   ;;  %v10532_v42 = vld [vmem:[#allocation5 + $0x914] ss:$40 sps:$4 sm:$0xff]   ;;  %v10534_v43 = vld [vmem:[#allocation5 + $0x410] ss:$40 sps:$4 sm:$0xff]  }
  0xa7   :  { %3648 = vmatpush1.bf16.msra.mxu1 %v10493_v16  ;;  %3606 = vmatprep.subr.bf16.mxu0 %v10494_v17  ;;  %v10535_v44 = vld [vmem:[#allocation5 + $0x910] ss:$40 sps:$4 sm:$0xff]   ;;  %v10536_v45 = vld [vmem:[#allocation5 + $0x3c4] ss:$40 sps:$4 sm:$0xff]   ;;  %v10540_v47 = vld [vmem:[#allocation5 + $0x3c0] ss:$40 sps:$4 sm:$0xff]  }
  0xa8   :  { %3649 = vmatprep.subr.bf16.mxu1 %v10496_v18  ;;  %v10538_v46 = vld [vmem:[#allocation5 + $0x8c4] ss:$40 sps:$4 sm:$0xff]   ;;  %v10541_v48 = vld [vmem:[#allocation5 + $0x8c0] ss:$40 sps:$4 sm:$0xff]   ;;  %v10542_v50 = vld [vmem:[#allocation5 + $0x374] ss:$40 sps:$4 sm:$0xff]  }
  0xa9   :  { %v12321_v49 = vld [vmem:[#allocation2 + $0x4] ss:$28 sps:$4 sm:$0xff]   ;;  %v12323_v51 = vld [vmem:[#allocation2 + $0xc] ss:$28 sps:$4 sm:$0xff]   ;;  %vm5145_vm1 = vcmask 1043456   ;;  %vm4625_vm2 = vcmask 64512  }
  0xaa   :  { %3607 = vmatpush1.bf16.msra.mxu0 %v10498_v19  ;;  %v10544_v52 = vld [vmem:[#allocation5 + $0x874] ss:$40 sps:$4 sm:$0xff]   ;;  %3630 = vmatprep.mubr.bf16.mxu0 %v12321_v49  ;;  %v10546_v53 = vld [vmem:[#allocation5 + $0x370] ss:$40 sps:$4 sm:$0xff]   ;;  %v10548_v55 = vld [vmem:[#allocation5 + $0x324] ss:$40 sps:$4 sm:$0xff]  }
  0xab   :  { %3650 = vmatpush1.bf16.msra.mxu1 %v10499_v20  ;;  %3608 = vmatprep.subr.bf16.mxu0 %v10500_v21  ;;  %v10547_v54 = vld [vmem:[#allocation5 + $0x870] ss:$40 sps:$4 sm:$0xff]   ;;  %v10550_v56 = vld [vmem:[#allocation5 + $0x824] ss:$40 sps:$4 sm:$0xff]   ;;  %v10552_v57 = vld [vmem:[#allocation5 + $0x320] ss:$40 sps:$4 sm:$0xff]  }
  0xac   :  { %3651 = vmatprep.subr.bf16.mxu1 %v10502_v22  ;;  %3673 = vmatprep.mubr.bf16.mxu1 %v12323_v51  ;;  %v10553_v58 = vld [vmem:[#allocation5 + $0x820] ss:$40 sps:$4 sm:$0xff]   ;;  %v10554_v59 = vld [vmem:[#allocation5 + $0x2d4] ss:$40 sps:$4 sm:$0xff]   ;;  %v10558_v61 = vld [vmem:[#allocation5 + $0x2d0] ss:$40 sps:$4 sm:$0xff]  }
  0xad   :  { %v10556_v60 = vld [vmem:[#allocation5 + $0x7d4] ss:$40 sps:$4 sm:$0xff]   ;;  %v10559_v62 = vld [vmem:[#allocation5 + $0x7d0] ss:$40 sps:$4 sm:$0xff]   ;;  %v10560_v63 = vld [vmem:[#allocation5 + $0x284] ss:$40 sps:$4 sm:$0xff]  }
  0xae   :  { %3609 = vmatpush1.bf16.msra.mxu0 %v10504_v23  ;;  %v10562_v1 = vld [vmem:[#allocation5 + $0x784] ss:$40 sps:$4 sm:$0xff]   ;;  %v10564_v2 = vld [vmem:[#allocation5 + $0x280] ss:$40 sps:$4 sm:$0xff]   ;;  %v10574_v4 = vld [vmem:[#allocation5 + $0xc34] ss:$40 sps:$4 sm:$0xff]  }
  0xaf   :  { %3652 = vmatpush1.bf16.msra.mxu1 %v10505_v24  ;;  %3610 = vmatprep.subr.bf16.mxu0 %v10506_v25  ;;  %v10565_v3 = vld [vmem:[#allocation5 + $0x780] ss:$40 sps:$4 sm:$0xff]   ;;  %v10577_v5 = vld [vmem:[#allocation5 + $0x1134] ss:$40 sps:$4 sm:$0xff]   ;;  %v12329_v7 = vld [vmem:[#allocation2 + $0x8] ss:$28 sps:$4 sm:$0xff]  }
  0xb0   :  { %3653 = vmatprep.subr.bf16.mxu1 %v10508_v26  ;;  %v12327_v6 = vld [vmem:[#allocation2] ss:$28 sps:$4 sm:$0xff]   ;;  %v10572_v8 = vld [vmem:[#allocation5 + $0xc30] ss:$40 sps:$4 sm:$0xff]   ;;  %v10586_v14 = vld [vmem:[#allocation5 + $0xb94] ss:$40 sps:$4 sm:$0xff]  }
  0xb1   :  { %v10575_v9 = vld [vmem:[#allocation5 + $0x1130] ss:$40 sps:$4 sm:$0xff]   ;;  %v10580_v10 = vld [vmem:[#allocation5 + $0xbe4] ss:$40 sps:$4 sm:$0xff]   ;;  %v10578_v12 = vld [vmem:[#allocation5 + $0xbe0] ss:$40 sps:$4 sm:$0xff]  }
  0xb2   :  { %3611 = vmatpush1.bf16.msra.mxu0 %v10510_v27  ;;  %v10583_v11 = vld [vmem:[#allocation5 + $0x10e4] ss:$40 sps:$4 sm:$0xff]   ;;  %v10581_v13 = vld [vmem:[#allocation5 + $0x10e0] ss:$40 sps:$4 sm:$0xff]   ;;  %v10589_v15 = vld [vmem:[#allocation5 + $0x1094] ss:$40 sps:$4 sm:$0xff]  }
  0xb3   :  { %3654 = vmatpush1.bf16.msra.mxu1 %v10511_v28  ;;  %3612 = vmatprep.subr.bf16.mxu0 %v10512_v29  ;;  %v10584_v16 = vld [vmem:[#allocation5 + $0xb90] ss:$40 sps:$4 sm:$0xff]   ;;  %v10592_v18 = vld [vmem:[#allocation5 + $0xb44] ss:$40 sps:$4 sm:$0xff]   ;;  %v10590_v20 = vld [vmem:[#allocation5 + $0xb40] ss:$40 sps:$4 sm:$0xff]  }
  0xb4   :  { %3655 = vmatprep.subr.bf16.mxu1 %v10514_v30  ;;  %v10587_v17 = vld [vmem:[#allocation5 + $0x1090] ss:$40 sps:$4 sm:$0xff]   ;;  %v10595_v19 = vld [vmem:[#allocation5 + $0x1044] ss:$40 sps:$4 sm:$0xff]   ;;  %v10593_v21 = vld [vmem:[#allocation5 + $0x1040] ss:$40 sps:$4 sm:$0xff]  }
  0xb5   :  { %v10598_v22 = vld [vmem:[#allocation5 + $0xaf4] ss:$40 sps:$4 sm:$0xff]   ;;  %v10596_v24 = vld [vmem:[#allocation5 + $0xaf0] ss:$40 sps:$4 sm:$0xff]   ;;  %v10604_v26 = vld [vmem:[#allocation5 + $0xaa4] ss:$40 sps:$4 sm:$0xff]  }
  0xb6   :  { %3613 = vmatpush1.bf16.msra.mxu0 %v10516_v31  ;;  %v10601_v23 = vld [vmem:[#allocation5 + $0xff4] ss:$40 sps:$4 sm:$0xff]   ;;  %v10599_v25 = vld [vmem:[#allocation5 + $0xff0] ss:$40 sps:$4 sm:$0xff]   ;;  %v10607_v27 = vld [vmem:[#allocation5 + $0xfa4] ss:$40 sps:$4 sm:$0xff]  }
  0xb7   :  { %3656 = vmatpush1.bf16.msra.mxu1 %v10517_v32  ;;  %3614 = vmatprep.subr.bf16.mxu0 %v10518_v33  ;;  %v10602_v28 = vld [vmem:[#allocation5 + $0xaa0] ss:$40 sps:$4 sm:$0xff]   ;;  %v10610_v30 = vld [vmem:[#allocation5 + $0xa54] ss:$40 sps:$4 sm:$0xff]   ;;  %v10608_v32 = vld [vmem:[#allocation5 + $0xa50] ss:$40 sps:$4 sm:$0xff]  }
  0xb8   :  { %3657 = vmatprep.subr.bf16.mxu1 %v10520_v34  ;;  %v10605_v29 = vld [vmem:[#allocation5 + $0xfa0] ss:$40 sps:$4 sm:$0xff]   ;;  %v10613_v31 = vld [vmem:[#allocation5 + $0xf54] ss:$40 sps:$4 sm:$0xff]   ;;  %v10611_v33 = vld [vmem:[#allocation5 + $0xf50] ss:$40 sps:$4 sm:$0xff]  }
  0xb9   :  { %v10616_v34 = vld [vmem:[#allocation5 + $0xa04] ss:$40 sps:$4 sm:$0xff]   ;;  %vm5066_vm4 = vcmask 1041409   ;;  %vm9240_vm5 = vcmask 9216  }
  0xba   :  { %3615 = vmatpush2.bf16.msra.mxu0 %v10522_v35  ;;  %v10619_v35 = vld [vmem:[#allocation5 + $0xf04] ss:$40 sps:$4 sm:$0xff]  }
  0xbb   :  { %3658 = vmatpush2.bf16.msra.mxu1 %v10523_v36  ;;  %3616 = vmatprep.subr.bf16.mxu0 %v10524_v37  ;;  %v12334_v36 = vld [vmem:[#allocation2 + $0x14] ss:$28 sps:$4 sm:$0xff]   ;;  %v10614_v37 = vld [vmem:[#allocation5 + $0xa00] ss:$40 sps:$4 sm:$0xff]  }
  0xbc   :  { %3659 = vmatprep.subr.bf16.mxu1 %v10526_v38  ;;  %v10617_v38 = vld [vmem:[#allocation5 + $0xf00] ss:$40 sps:$4 sm:$0xff]  }
  0xbe   :  { %3617 = vmatpush2.bf16.msra.mxu0 %v10528_v39  ;;  %v10622_v39 = vld [vmem:[#allocation5 + $0xeb4] ss:$40 sps:$4 sm:$0xff]  }
  0xbf   :  { %3660 = vmatpush2.bf16.msra.mxu1 %v10529_v40  ;;  %3618 = vmatprep.subr.bf16.mxu0 %v10530_v41  ;;  %v10626_v40 = vld [vmem:[#allocation5 + $0x23c] ss:$40 sps:$4 sm:$0xff]   ;;  %v10620_v41 = vld [vmem:[#allocation5 + $0xeb0] ss:$40 sps:$4 sm:$0xff]  }
  0xc0   :  { %3661 = vmatprep.subr.bf16.mxu1 %v10532_v42  ;;  %v12337_v42 = vld [vmem:[#allocation2 + $0x18] ss:$28 sps:$4 sm:$0xff]  }
  0xc2   :  { %3619 = vmatpush2.bf16.msra.mxu0 %v10534_v43  ;;  %v10624_v43 = vld [vmem:[#allocation5 + $0x238] ss:$40 sps:$4 sm:$0xff]  }
  0xc3   :  { %3662 = vmatpush2.bf16.msra.mxu1 %v10535_v44  ;;  %3620 = vmatprep.subr.bf16.mxu0 %v10536_v45  ;;  %v10629_v44 = vld [vmem:[#allocation5 + $0xe64] ss:$40 sps:$4 sm:$0xff]  }
  0xc4   :  { %3663 = vmatprep.subr.bf16.mxu1 %v10538_v46  ;;  %v10632_v45 = vld [vmem:[#allocation5 + $0x1ec] ss:$40 sps:$4 sm:$0xff]   ;;  %v10627_v46 = vld [vmem:[#allocation5 + $0xe60] ss:$40 sps:$4 sm:$0xff]  }
  0xc6   :  { %3621 = vmatpush2.bf16.msra.mxu0 %v10540_v47  ;;  %v10630_v47 = vld [vmem:[#allocation5 + $0x1e8] ss:$40 sps:$4 sm:$0xff]  }
  0xc7   :  { %3664 = vmatpush2.bf16.msra.mxu1 %v10541_v48  ;;  %3622 = vmatprep.subr.bf16.mxu0 %v10542_v50  ;;  %v10635_v48 = vld [vmem:[#allocation5 + $0xe14] ss:$40 sps:$4 sm:$0xff]  }
  0xc8   :  { %3665 = vmatprep.subr.bf16.mxu1 %v10544_v52  ;;  %v10638_v50 = vld [vmem:[#allocation5 + $0x19c] ss:$40 sps:$4 sm:$0xff]   ;;  %v10633_v52 = vld [vmem:[#allocation5 + $0xe10] ss:$40 sps:$4 sm:$0xff]  }
  0xca   :  { %3623 = vmatpush2.bf16.msra.mxu0 %v10546_v53  ;;  %v10636_v53 = vld [vmem:[#allocation5 + $0x198] ss:$40 sps:$4 sm:$0xff]  }
  0xcb   :  { %3666 = vmatpush2.bf16.msra.mxu1 %v10547_v54  ;;  %3624 = vmatprep.subr.bf16.mxu0 %v10548_v55  ;;  %v10641_v54 = vld [vmem:[#allocation5 + $0xdc4] ss:$40 sps:$4 sm:$0xff]  }
  0xcc   :  { %3667 = vmatprep.subr.bf16.mxu1 %v10550_v56  ;;  %v10644_v55 = vld [vmem:[#allocation5 + $0x14c] ss:$40 sps:$4 sm:$0xff]   ;;  %v10639_v56 = vld [vmem:[#allocation5 + $0xdc0] ss:$40 sps:$4 sm:$0xff]  }
  0xce   :  { %3625 = vmatpush2.bf16.msra.mxu0 %v10552_v57  ;;  %v10642_v57 = vld [vmem:[#allocation5 + $0x148] ss:$40 sps:$4 sm:$0xff]  }
  0xcf   :  { %3668 = vmatpush2.bf16.msra.mxu1 %v10553_v58  ;;  %3626 = vmatprep.subr.bf16.mxu0 %v10554_v59  ;;  %v10647_v58 = vld [vmem:[#allocation5 + $0xd74] ss:$40 sps:$4 sm:$0xff]  }
  0xd0   :  { %3669 = vmatprep.subr.bf16.mxu1 %v10556_v60  ;;  %v10650_v59 = vld [vmem:[#allocation5 + $0xfc] ss:$40 sps:$4 sm:$0xff]   ;;  %v10645_v60 = vld [vmem:[#allocation5 + $0xd70] ss:$40 sps:$4 sm:$0xff]  }
  0xd2   :  { %3627 = vmatpush2.bf16.msra.mxu0 %v10558_v61  ;;  %v10653_v61 = vld [vmem:[#allocation5 + $0xd24] ss:$40 sps:$4 sm:$0xff]  }
  0xd3   :  { %3670 = vmatpush2.bf16.msra.mxu1 %v10559_v62  ;;  %3628 = vmatprep.subr.bf16.mxu0 %v10560_v63  ;;  %v10656_v62 = vld [vmem:[#allocation5 + $0xac] ss:$40 sps:$4 sm:$0xff]   ;;  %v10651_v63 = vld [vmem:[#allocation5 + $0xd20] ss:$40 sps:$4 sm:$0xff]  }
  0xd4   :  { %3671 = vmatprep.subr.bf16.mxu1 %v10562_v1  ;;  %v10654_v1 = vld [vmem:[#allocation5 + $0xa8] ss:$40 sps:$4 sm:$0xff]  }
  0xd6   :  { %3629 = vmatpush2.bf16.msra.mxu0 %v10564_v2  ;;  %v10659_v2 = vld [vmem:[#allocation5 + $0xcd4] ss:$40 sps:$4 sm:$0xff]  }
  0xd7   :  { %3672 = vmatpush2.bf16.msra.mxu1 %v10565_v3  ;;  %3684 = vmatprep.subr.bf16.mxu0 %v10574_v4  ;;  %v10662_v3 = vld [vmem:[#allocation5 + $0x5c] ss:$40 sps:$4 sm:$0xff]   ;;  %v10657_v4 = vld [vmem:[#allocation5 + $0xcd0] ss:$40 sps:$4 sm:$0xff]  }
  0xd8   :  { %3727 = vmatprep.subr.bf16.mxu1 %v10577_v5  ;;  %v10660_v5 = vld [vmem:[#allocation5 + $0x58] ss:$40 sps:$4 sm:$0xff]  }
  0xd9   :  { %3631 = vmatmul.mubr.bf16.vlgmr.msra.gmra.mxu0 %v12327_v6 }
  0xda   :  { %3674 = vmatmul.mubr.bf16.vlgmr.msra.gmra.mxu1 %v12329_v7  ;;  %3685 = vmatpush1.bf16.msra.mxu0 %v10572_v8  ;;  %v10665_v8 = vld [vmem:[#allocation5 + $0xc84] ss:$40 sps:$4 sm:$0xff]  }
  0xdb   :  { %3728 = vmatpush1.bf16.msra.mxu1 %v10575_v9  ;;  %3686 = vmatprep.subr.bf16.mxu0 %v10580_v10  ;;  %v10668_v9 = vld [vmem:[#allocation5 + $0xc] ss:$40 sps:$4 sm:$0xff]   ;;  %v10663_v10 = vld [vmem:[#allocation5 + $0xc80] ss:$40 sps:$4 sm:$0xff]  }
  0xdc   :  { %3729 = vmatprep.subr.bf16.mxu1 %v10583_v11  ;;  %3759 = vmatprep.mubr.bf16.mxu1 %v12199_v0  ;;  %v10666_v11 = vld [vmem:[#allocation5 + $0x8] ss:$40 sps:$4 sm:$0xff]  }
  0xdd   :  { %3716 = vmatprep.mubr.bf16.mxu0 %v12334_v36 }
  0xde   :  { %3687 = vmatpush1.bf16.msra.mxu0 %v10578_v12  ;;  %v10674_v12 = vld [vmem:[#allocation5 + $0x4bc] ss:$40 sps:$4 sm:$0xff]  }
  0xdf   :  { %3730 = vmatpush1.bf16.msra.mxu1 %v10581_v13  ;;  %3688 = vmatprep.subr.bf16.mxu0 %v10586_v14  ;;  %v10677_v13 = vld [vmem:[#allocation5 + $0x73c] ss:$40 sps:$4 sm:$0xff]   ;;  %v12341_v14 = vld [vmem:[#allocation2 + $0x10] ss:$28 sps:$4 sm:$0xff]  }
  0xe0   :  { %3731 = vmatprep.subr.bf16.mxu1 %v10589_v15  ;;  %v10672_v15 = vld [vmem:[#allocation5 + $0x4b8] ss:$40 sps:$4 sm:$0xff]  }
  0xe2   :  { %3689 = vmatpush1.bf16.msra.mxu0 %v10584_v16  ;;  %v10675_v16 = vld [vmem:[#allocation5 + $0x738] ss:$40 sps:$4 sm:$0xff]  }
  0xe3   :  { %3732 = vmatpush1.bf16.msra.mxu1 %v10587_v17  ;;  %3690 = vmatprep.subr.bf16.mxu0 %v10592_v18  ;;  %v10680_v17 = vld [vmem:[#allocation5 + $0x46c] ss:$40 sps:$4 sm:$0xff]  }
  0xe4   :  { %3733 = vmatprep.subr.bf16.mxu1 %v10595_v19  ;;  %v10683_v18 = vld [vmem:[#allocation5 + $0x6ec] ss:$40 sps:$4 sm:$0xff]   ;;  %v10678_v19 = vld [vmem:[#allocation5 + $0x468] ss:$40 sps:$4 sm:$0xff]  }
  0xe6   :  { %3691 = vmatpush1.bf16.msra.mxu0 %v10590_v20  ;;  %v10681_v20 = vld [vmem:[#allocation5 + $0x6e8] ss:$40 sps:$4 sm:$0xff]  }
  0xe7   :  { %3734 = vmatpush1.bf16.msra.mxu1 %v10593_v21  ;;  %3692 = vmatprep.subr.bf16.mxu0 %v10598_v22  ;;  %v10686_v21 = vld [vmem:[#allocation5 + $0x41c] ss:$40 sps:$4 sm:$0xff]  }
  0xe8   :  { %3735 = vmatprep.subr.bf16.mxu1 %v10601_v23  ;;  %v10689_v22 = vld [vmem:[#allocation5 + $0x69c] ss:$40 sps:$4 sm:$0xff]   ;;  %v10684_v23 = vld [vmem:[#allocation5 + $0x418] ss:$40 sps:$4 sm:$0xff]  }
  0xea   :  { %3693 = vmatpush1.bf16.msra.mxu0 %v10596_v24  ;;  %v10687_v24 = vld [vmem:[#allocation5 + $0x698] ss:$40 sps:$4 sm:$0xff]  }
  0xeb   :  { %3736 = vmatpush1.bf16.msra.mxu1 %v10599_v25  ;;  %3694 = vmatprep.subr.bf16.mxu0 %v10604_v26  ;;  %v10692_v25 = vld [vmem:[#allocation5 + $0x3cc] ss:$40 sps:$4 sm:$0xff]  }
  0xec   :  { %3737 = vmatprep.subr.bf16.mxu1 %v10607_v27  ;;  %v10695_v26 = vld [vmem:[#allocation5 + $0x64c] ss:$40 sps:$4 sm:$0xff]   ;;  %v10690_v27 = vld [vmem:[#allocation5 + $0x3c8] ss:$40 sps:$4 sm:$0xff]  }
  0xee   :  { %3695 = vmatpush1.bf16.msra.mxu0 %v10602_v28  ;;  %v10693_v28 = vld [vmem:[#allocation5 + $0x648] ss:$40 sps:$4 sm:$0xff]  }
  0xef   :  { %3738 = vmatpush1.bf16.msra.mxu1 %v10605_v29  ;;  %3696 = vmatprep.subr.bf16.mxu0 %v10610_v30  ;;  %v10698_v29 = vld [vmem:[#allocation5 + $0x37c] ss:$40 sps:$4 sm:$0xff]  }
  0xf0   :  { %3739 = vmatprep.subr.bf16.mxu1 %v10613_v31  ;;  %v10701_v30 = vld [vmem:[#allocation5 + $0x5fc] ss:$40 sps:$4 sm:$0xff]   ;;  %v10696_v31 = vld [vmem:[#allocation5 + $0x378] ss:$40 sps:$4 sm:$0xff]  }
  0xf2   :  { %3697 = vmatpush1.bf16.msra.mxu0 %v10608_v32  ;;  %v10704_v32 = vld [vmem:[#allocation5 + $0x32c] ss:$40 sps:$4 sm:$0xff]  }
  0xf3   :  { %3740 = vmatpush1.bf16.msra.mxu1 %v10611_v33  ;;  %3698 = vmatprep.subr.bf16.mxu0 %v10616_v34  ;;  %v10707_v33 = vld [vmem:[#allocation5 + $0x5ac] ss:$40 sps:$4 sm:$0xff]   ;;  %v10702_v34 = vld [vmem:[#allocation5 + $0x328] ss:$40 sps:$4 sm:$0xff]  }
  0xf4   :  { %3741 = vmatprep.subr.bf16.mxu1 %v10619_v35  ;;  %v10705_v35 = vld [vmem:[#allocation5 + $0x5a8] ss:$40 sps:$4 sm:$0xff]  }
  0xf6   :  { %3699 = vmatpush1.bf16.msra.mxu0 %v10614_v37  ;;  %v10710_v37 = vld [vmem:[#allocation5 + $0x2dc] ss:$40 sps:$4 sm:$0xff]  }
  0xf7   :  { %3742 = vmatpush1.bf16.msra.mxu1 %v10617_v38  ;;  %3700 = vmatprep.subr.bf16.mxu0 %v10622_v39  ;;  %v10713_v38 = vld [vmem:[#allocation5 + $0x55c] ss:$40 sps:$4 sm:$0xff]   ;;  %v10708_v39 = vld [vmem:[#allocation5 + $0x2d8] ss:$40 sps:$4 sm:$0xff]  }
  0xf8   :  { %3770 = vmatprep.subr.bf16.mxu1 %v10626_v40  ;;  %v10711_v40 = vld [vmem:[#allocation5 + $0x558] ss:$40 sps:$4 sm:$0xff]  }
  0xfa   :  { %3760 = vmatmul.mubr.bf16.vlgmr.msra.gmra.mxu1 %v12337_v42  ;;  %3701 = vmatpush2.bf16.msra.mxu0 %v10620_v41  ;;  %v10716_v41 = vld [vmem:[#allocation5 + $0x28c] ss:$40 sps:$4 sm:$0xff]  }
  0xfb   :  { %3771 = vmatpush1.bf16.msra.mxu1 %v10624_v43  ;;  %3702 = vmatprep.subr.bf16.mxu0 %v10629_v44  ;;  %v10719_v43 = vld [vmem:[#allocation5 + $0x50c] ss:$40 sps:$4 sm:$0xff]   ;;  %v10714_v44 = vld [vmem:[#allocation5 + $0x288] ss:$40 sps:$4 sm:$0xff]  }
  0xfc   :  { %3772 = vmatprep.subr.bf16.mxu1 %v10632_v45  ;;  %3802 = vmatprep.mubr.bf16.mxu1 %v12321_v49  ;;  %v10648_v49 = vld [vmem:[#allocation5 + $0xf8] ss:$40 sps:$4 sm:$0xff]   ;;  %v10717_v45 = vld [vmem:[#allocation5 + $0x508] ss:$40 sps:$4 sm:$0xff]  }
  0xfe   :  { %3703 = vmatpush2.bf16.msra.mxu0 %v10627_v46  ;;  %v10722_v46 = vld [vmem:[#allocation5 + $0x9bc] ss:$40 sps:$4 sm:$0xff]  }
  0xff   :  { %3773 = vmatpush1.bf16.msra.mxu1 %v10630_v47  ;;  %3704 = vmatprep.subr.bf16.mxu0 %v10635_v48  ;;  %v10725_v47 = vld [vmem:[#allocation5 + $0xc3c] ss:$40 sps:$4 sm:$0xff]   ;;  %v10720_v48 = vld [vmem:[#allocation5 + $0x9b8] ss:$40 sps:$4 sm:$0xff]  }
 0x100   :  { %3774 = vmatprep.subr.bf16.mxu1 %v10638_v50  ;;  %v10723_v50 = vld [vmem:[#allocation5 + $0xc38] ss:$40 sps:$4 sm:$0xff]  }
 0x102   :  { %3705 = vmatpush2.bf16.msra.mxu0 %v10633_v52  ;;  %v10728_v52 = vld [vmem:[#allocation5 + $0x96c] ss:$40 sps:$4 sm:$0xff]  }
 0x103   :  { %3775 = vmatpush1.bf16.msra.mxu1 %v10636_v53  ;;  %3706 = vmatprep.subr.bf16.mxu0 %v10641_v54  ;;  %v10731_v53 = vld [vmem:[#allocation5 + $0xbec] ss:$40 sps:$4 sm:$0xff]   ;;  %v10726_v54 = vld [vmem:[#allocation5 + $0x968] ss:$40 sps:$4 sm:$0xff]  }
 0x104   :  { %3776 = vmatprep.subr.bf16.mxu1 %v10644_v55  ;;  %v10729_v55 = vld [vmem:[#allocation5 + $0xbe8] ss:$40 sps:$4 sm:$0xff]  }
 0x106   :  { %3707 = vmatpush2.bf16.msra.mxu0 %v10639_v56  ;;  %v10734_v56 = vld [vmem:[#allocation5 + $0x91c] ss:$40 sps:$4 sm:$0xff]  }
 0x107   :  { %3777 = vmatpush1.bf16.msra.mxu1 %v10642_v57  ;;  %3708 = vmatprep.subr.bf16.mxu0 %v10647_v58  ;;  %v10737_v57 = vld [vmem:[#allocation5 + $0xb9c] ss:$40 sps:$4 sm:$0xff]   ;;  %v10732_v58 = vld [vmem:[#allocation5 + $0x918] ss:$40 sps:$4 sm:$0xff]  }
 0x108   :  { %3778 = vmatprep.subr.bf16.mxu1 %v10650_v59  ;;  %v10735_v59 = vld [vmem:[#allocation5 + $0xb98] ss:$40 sps:$4 sm:$0xff]  }
 0x10a   :  { %3709 = vmatpush2.bf16.msra.mxu0 %v10645_v60  ;;  %v10740_v60 = vld [vmem:[#allocation5 + $0x8cc] ss:$40 sps:$4 sm:$0xff]  }
 0x10b   :  { %3779 = vmatpush1.bf16.msra.mxu1 %v10648_v49  ;;  %3710 = vmatprep.subr.bf16.mxu0 %v10653_v61  ;;  %v10743_v49 = vld [vmem:[#allocation5 + $0xb4c] ss:$40 sps:$4 sm:$0xff]   ;;  %v10738_v61 = vld [vmem:[#allocation5 + $0x8c8] ss:$40 sps:$4 sm:$0xff]  }
 0x10c   :  { %3780 = vmatprep.subr.bf16.mxu1 %v10656_v62  ;;  %v10746_v62 = vld [vmem:[#allocation5 + $0x87c] ss:$40 sps:$4 sm:$0xff]  }
 0x10e   :  { %3711 = vmatpush2.bf16.msra.mxu0 %v10651_v63  ;;  %v10749_v63 = vld [vmem:[#allocation5 + $0xafc] ss:$40 sps:$4 sm:$0xff]  }
 0x10f   :  { %3781 = vmatpush1.bf16.msra.mxu1 %v10654_v1  ;;  %3712 = vmatprep.subr.bf16.mxu0 %v10659_v2  ;;  %v10744_v1 = vld [vmem:[#allocation5 + $0x878] ss:$40 sps:$4 sm:$0xff]   ;;  %v10752_v2 = vld [vmem:[#allocation5 + $0x82c] ss:$40 sps:$4 sm:$0xff]  }
 0x110   :  { %3782 = vmatprep.subr.bf16.mxu1 %v10662_v3  ;;  %v10755_v3 = vld [vmem:[#allocation5 + $0xaac] ss:$40 sps:$4 sm:$0xff]  }
 0x112   :  { %3713 = vmatpush2.bf16.msra.mxu0 %v10657_v4  ;;  %v10750_v4 = vld [vmem:[#allocation5 + $0x828] ss:$40 sps:$4 sm:$0xff]  }
 0x113   :  { %3783 = vmatpush1.bf16.msra.mxu1 %v10660_v5  ;;  %3714 = vmatprep.subr.bf16.mxu0 %v10665_v8  ;;  %v10753_v5 = vld [vmem:[#allocation5 + $0xaa8] ss:$40 sps:$4 sm:$0xff]   ;;  %v10758_v8 = vld [vmem:[#allocation5 + $0x7dc] ss:$40 sps:$4 sm:$0xff]  }
 0x114   :  { %3784 = vmatprep.subr.bf16.mxu1 %v10668_v9  ;;  %v10761_v9 = vld [vmem:[#allocation5 + $0xa5c] ss:$40 sps:$4 sm:$0xff]  }
 0x116   :  { %3715 = vmatpush2.bf16.msra.mxu0 %v10663_v10  ;;  %v10756_v10 = vld [vmem:[#allocation5 + $0x7d8] ss:$40 sps:$4 sm:$0xff]  }
 0x117   :  { %3785 = vmatpush1.bf16.msra.mxu1 %v10666_v11  ;;  %3813 = vmatprep.subr.bf16.mxu0 %v10677_v13  ;;  %v10759_v11 = vld [vmem:[#allocation5 + $0xa58] ss:$40 sps:$4 sm:$0xff]   ;;  %v10767_v13 = vld [vmem:[#allocation5 + $0xa0c] ss:$40 sps:$4 sm:$0xff]  }
 0x118   :  { %3786 = vmatprep.subr.bf16.mxu1 %v10674_v12  ;;  %v10764_v12 = vld [vmem:[#allocation5 + $0x78c] ss:$40 sps:$4 sm:$0xff]  }
 0x119   :  { %3717 = vmatmul.mubr.bf16.vlgmr.msra.gmra.mxu0 %v12341_v14 }
 0x11a   :  { %3814 = vmatpush1.bf16.msra.mxu0 %v10675_v16  ;;  %3845 = vmatprep.mubr.bf16.mxu0 %v12323_v51  ;;  %v10699_v51 = vld [vmem:[#allocation5 + $0x5f8] ss:$40 sps:$4 sm:$0xff]   ;;  %v10765_v16 = vld [vmem:[#allocation5 + $0xa08] ss:$40 sps:$4 sm:$0xff]  }
 0x11b   :  { %3787 = vmatpush2.bf16.msra.mxu1 %v10672_v15  ;;  %3815 = vmatprep.subr.bf16.mxu0 %v10683_v18  ;;  %v10762_v15 = vld [vmem:[#allocation5 + $0x788] ss:$40 sps:$4 sm:$0xff]   ;;  %v10773_v18 = vld [vmem:[#allocation5 + $0x113c] ss:$40 sps:$4 sm:$0xff]  }
 0x11c   :  { %3788 = vmatprep.subr.bf16.mxu1 %v10680_v17  ;;  %v10770_v17 = vld [vmem:[#allocation5 + $0xebc] ss:$40 sps:$4 sm:$0xff]  }
 0x11e   :  { %3816 = vmatpush1.bf16.msra.mxu0 %v10681_v20  ;;  %v10771_v20 = vld [vmem:[#allocation5 + $0x1138] ss:$40 sps:$4 sm:$0xff]  }
 0x11f   :  { %3789 = vmatpush2.bf16.msra.mxu1 %v10678_v19  ;;  %3817 = vmatprep.subr.bf16.mxu0 %v10689_v22  ;;  %v10768_v19 = vld [vmem:[#allocation5 + $0xeb8] ss:$40 sps:$4 sm:$0xff]   ;;  %v10779_v22 = vld [vmem:[#allocation5 + $0x10ec] ss:$40 sps:$4 sm:$0xff]  }
 0x120   :  { %3790 = vmatprep.subr.bf16.mxu1 %v10686_v21  ;;  %v10776_v21 = vld [vmem:[#allocation5 + $0xe6c] ss:$40 sps:$4 sm:$0xff]  }
 0x122   :  { %3818 = vmatpush1.bf16.msra.mxu0 %v10687_v24  ;;  %v10777_v24 = vld [vmem:[#allocation5 + $0x10e8] ss:$40 sps:$4 sm:$0xff]  }
 0x123   :  { %3791 = vmatpush2.bf16.msra.mxu1 %v10684_v23  ;;  %3819 = vmatprep.subr.bf16.mxu0 %v10695_v26  ;;  %v10774_v23 = vld [vmem:[#allocation5 + $0xe68] ss:$40 sps:$4 sm:$0xff]   ;;  %v10785_v26 = vld [vmem:[#allocation5 + $0x109c] ss:$40 sps:$4 sm:$0xff]  }
 0x124   :  { %3792 = vmatprep.subr.bf16.mxu1 %v10692_v25  ;;  %v10782_v25 = vld [vmem:[#allocation5 + $0xe1c] ss:$40 sps:$4 sm:$0xff]  }
 0x126   :  { %3820 = vmatpush1.bf16.msra.mxu0 %v10693_v28  ;;  %v10783_v28 = vld [vmem:[#allocation5 + $0x1098] ss:$40 sps:$4 sm:$0xff]  }
 0x127   :  { %3793 = vmatpush2.bf16.msra.mxu1 %v10690_v27  ;;  %3821 = vmatprep.subr.bf16.mxu0 %v10701_v30  ;;  %v10780_v27 = vld [vmem:[#allocation5 + $0xe18] ss:$40 sps:$4 sm:$0xff]   ;;  %v10791_v30 = vld [vmem:[#allocation5 + $0x104c] ss:$40 sps:$4 sm:$0xff]  }
 0x128   :  { %3794 = vmatprep.subr.bf16.mxu1 %v10698_v29  ;;  %v10788_v29 = vld [vmem:[#allocation5 + $0xdcc] ss:$40 sps:$4 sm:$0xff]  }
 0x12a   :  { %3822 = vmatpush1.bf16.msra.mxu0 %v10699_v51  ;;  %v10794_v51 = vld [vmem:[#allocation5 + $0xd7c] ss:$40 sps:$4 sm:$0xff]  }
 0x12b   :  { %3795 = vmatpush2.bf16.msra.mxu1 %v10696_v31  ;;  %3823 = vmatprep.subr.bf16.mxu0 %v10707_v33  ;;  %v10786_v31 = vld [vmem:[#allocation5 + $0xdc8] ss:$40 sps:$4 sm:$0xff]   ;;  %v10792_v33 = vld [vmem:[#allocation5 + $0xd78] ss:$40 sps:$4 sm:$0xff]  }
 0x12c   :  { %3796 = vmatprep.subr.bf16.mxu1 %v10704_v32  ;;  %v10797_v32 = vld [vmem:[#allocation5 + $0xffc] ss:$40 sps:$4 sm:$0xff]  }
 0x12e   :  { %3824 = vmatpush1.bf16.msra.mxu0 %v10705_v35  ;;  %v10800_v35 = vld [vmem:[#allocation5 + $0xd2c] ss:$40 sps:$4 sm:$0xff]  }
 0x12f   :  { %3797 = vmatpush2.bf16.msra.mxu1 %v10702_v34  ;;  %3825 = vmatprep.subr.bf16.mxu0 %v10713_v38  ;;  %v10795_v34 = vld [vmem:[#allocation5 + $0xff8] ss:$40 sps:$4 sm:$0xff]   ;;  %v10798_v38 = vld [vmem:[#allocation5 + $0xd28] ss:$40 sps:$4 sm:$0xff]  }
 0x130   :  { %3798 = vmatprep.subr.bf16.mxu1 %v10710_v37  ;;  %v10803_v37 = vld [vmem:[#allocation5 + $0xfac] ss:$40 sps:$4 sm:$0xff]  }
 0x132   :  { %3826 = vmatpush1.bf16.msra.mxu0 %v10711_v40  ;;  %v10806_v40 = vld [vmem:[#allocation5 + $0xcdc] ss:$40 sps:$4 sm:$0xff]  }
 0x133   :  { %3799 = vmatpush2.bf16.msra.mxu1 %v10708_v39  ;;  %3827 = vmatprep.subr.bf16.mxu0 %v10719_v43  ;;  %v10801_v39 = vld [vmem:[#allocation5 + $0xfa8] ss:$40 sps:$4 sm:$0xff]   ;;  %v10804_v43 = vld [vmem:[#allocation5 + $0xcd8] ss:$40 sps:$4 sm:$0xff]  }
 0x134   :  { %3800 = vmatprep.subr.bf16.mxu1 %v10716_v41  ;;  %v10809_v41 = vld [vmem:[#allocation5 + $0xf5c] ss:$40 sps:$4 sm:$0xff]  }
 0x136   :  { %3828 = vmatpush1.bf16.msra.mxu0 %v10717_v45  ;;  %v10812_v45 = vld [vmem:[#allocation5 + $0xc8c] ss:$40 sps:$4 sm:$0xff]  }
 0x137   :  { %3801 = vmatpush2.bf16.msra.mxu1 %v10714_v44  ;;  %3829 = vmatprep.subr.bf16.mxu0 %v10722_v46  ;;  %v10807_v44 = vld [vmem:[#allocation5 + $0xf58] ss:$40 sps:$4 sm:$0xff]   ;;  %v10815_v46 = vld [vmem:[#allocation5 + $0xf0c] ss:$40 sps:$4 sm:$0xff]  }
 0x138   :  { %3856 = vmatprep.subr.bf16.mxu1 %v10725_v47  ;;  %v10810_v47 = vld [vmem:[#allocation5 + $0xc88] ss:$40 sps:$4 sm:$0xff]  }
 0x13a   :  { %3803 = vmatmul.mubr.bf16.vlgmr.msra.gmra.mxu1 %v12327_v6  ;;  %3830 = vmatpush2.bf16.msra.mxu0 %v10720_v48  ;;  %v10741_v6 = vld [vmem:[#allocation5 + $0xb48] ss:$40 sps:$4 sm:$0xff]  }
 0x13b   :  { %3857 = vmatpush1.bf16.msra.mxu1 %v10723_v50  ;;  %3831 = vmatprep.subr.bf16.mxu0 %v10728_v52  ;;  %v10813_v48 = vld [vmem:[#allocation5 + $0xf08] ss:$40 sps:$4 sm:$0xff]   ;;  %v10818_v50 = vld [vmem:[#allocation5 + $0x244] ss:$40 sps:$4 sm:$0xff]  }
 0x13c   :  { %3858 = vmatprep.subr.bf16.mxu1 %v10731_v53  ;;  %3888 = vmatprep.mubr.bf16.mxu1 %v12334_v36  ;;  %v10747_v36 = vld [vmem:[#allocation5 + $0xaf8] ss:$40 sps:$4 sm:$0xff]   ;;  %v10821_v52 = vld [vmem:[#allocation5 + $0x744] ss:$40 sps:$4 sm:$0xff]  }
 0x13d   :  { %v10816_v53 = vld [vmem:[#allocation5 + $0x240] ss:$40 sps:$4 sm:$0xff]  }
 0x13e   :  { %3832 = vmatpush2.bf16.msra.mxu0 %v10726_v54  ;;  %v10819_v54 = vld [vmem:[#allocation5 + $0x740] ss:$40 sps:$4 sm:$0xff]  }
 0x13f   :  { %3859 = vmatpush1.bf16.msra.mxu1 %v10729_v55  ;;  %3833 = vmatprep.subr.bf16.mxu0 %v10734_v56  ;;  %v10824_v55 = vld [vmem:[#allocation5 + $0x1f4] ss:$40 sps:$4 sm:$0xff]  }
 0x140   :  { %3860 = vmatprep.subr.bf16.mxu1 %v10737_v57  ;;  %v10827_v56 = vld [vmem:[#allocation5 + $0x6f4] ss:$40 sps:$4 sm:$0xff]   ;;  %v10822_v57 = vld [vmem:[#allocation5 + $0x1f0] ss:$40 sps:$4 sm:$0xff]  }
 0x142   :  { %3834 = vmatpush2.bf16.msra.mxu0 %v10732_v58  ;;  %v10825_v58 = vld [vmem:[#allocation5 + $0x6f0] ss:$40 sps:$4 sm:$0xff]  }
 0x143   :  { %3861 = vmatpush1.bf16.msra.mxu1 %v10735_v59  ;;  %3835 = vmatprep.subr.bf16.mxu0 %v10740_v60  ;;  %v10830_v59 = vld [vmem:[#allocation5 + $0x1a4] ss:$40 sps:$4 sm:$0xff]  }
 0x144   :  { %3862 = vmatprep.subr.bf16.mxu1 %v10743_v49  ;;  %v10833_v60 = vld [vmem:[#allocation5 + $0x6a4] ss:$40 sps:$4 sm:$0xff]  }
 0x145   :  { %v12351_v49 = vld [vmem:[#allocation2 + $0x4] ss:$28 sps:$4 sm:$0xff]  }
 0x146   :  { %3836 = vmatpush2.bf16.msra.mxu0 %v10738_v61  ;;  %v12354_v61 = vld [vmem:[#allocation2 + $0xc] ss:$28 sps:$4 sm:$0xff]  }
 0x147   :  { %3863 = vmatpush1.bf16.msra.mxu1 %v10741_v6  ;;  %3837 = vmatprep.subr.bf16.mxu0 %v10746_v62  ;;  %v10828_v6 = vld [vmem:[#allocation5 + $0x1a0] ss:$40 sps:$4 sm:$0xff]   ;;  %v10839_v62 = vld [vmem:[#allocation5 + $0x654] ss:$40 sps:$4 sm:$0xff]  }
 0x148   :  { %3864 = vmatprep.subr.bf16.mxu1 %v10749_v63  ;;  %v10834_v63 = vld [vmem:[#allocation5 + $0x150] ss:$40 sps:$4 sm:$0xff]  }
 0x14a   :  { %3838 = vmatpush2.bf16.msra.mxu0 %v10744_v1  ;;  %v10837_v1 = vld [vmem:[#allocation5 + $0x650] ss:$40 sps:$4 sm:$0xff]  }
 0x14b   :  { %3865 = vmatpush1.bf16.msra.mxu1 %v10747_v36  ;;  %3839 = vmatprep.subr.bf16.mxu0 %v10752_v2  ;;  %v10842_v36 = vld [vmem:[#allocation5 + $0x104] ss:$40 sps:$4 sm:$0xff]  }
 0x14c   :  { %3866 = vmatprep.subr.bf16.mxu1 %v10755_v3  ;;  %v10845_v2 = vld [vmem:[#allocation5 + $0x604] ss:$40 sps:$4 sm:$0xff]   ;;  %v10840_v3 = vld [vmem:[#allocation5 + $0x100] ss:$40 sps:$4 sm:$0xff]  }
 0x14e   :  { %3840 = vmatpush2.bf16.msra.mxu0 %v10750_v4  ;;  %v10843_v4 = vld [vmem:[#allocation5 + $0x600] ss:$40 sps:$4 sm:$0xff]  }
 0x14f   :  { %3867 = vmatpush1.bf16.msra.mxu1 %v10753_v5  ;;  %3841 = vmatprep.subr.bf16.mxu0 %v10758_v8  ;;  %v10848_v5 = vld [vmem:[#allocation5 + $0xb4] ss:$40 sps:$4 sm:$0xff]  }
 0x150   :  { %3868 = vmatprep.subr.bf16.mxu1 %v10761_v9  ;;  %v10851_v8 = vld [vmem:[#allocation5 + $0x5b4] ss:$40 sps:$4 sm:$0xff]   ;;  %v10846_v9 = vld [vmem:[#allocation5 + $0xb0] ss:$40 sps:$4 sm:$0xff]  }
 0x152   :  { %3842 = vmatpush2.bf16.msra.mxu0 %v10756_v10  ;;  %v10849_v10 = vld [vmem:[#allocation5 + $0x5b0] ss:$40 sps:$4 sm:$0xff]  }
 0x153   :  { %3869 = vmatpush1.bf16.msra.mxu1 %v10759_v11  ;;  %3843 = vmatprep.subr.bf16.mxu0 %v10764_v12  ;;  %v10854_v11 = vld [vmem:[#allocation5 + $0x64] ss:$40 sps:$4 sm:$0xff]  }
 0x154   :  { %3870 = vmatprep.subr.bf16.mxu1 %v10767_v13  ;;  %v10857_v12 = vld [vmem:[#allocation5 + $0x564] ss:$40 sps:$4 sm:$0xff]   ;;  %v10852_v13 = vld [vmem:[#allocation5 + $0x60] ss:$40 sps:$4 sm:$0xff]  }
 0x156   :  { %3844 = vmatpush2.bf16.msra.mxu0 %v10762_v15  ;;  %v10855_v15 = vld [vmem:[#allocation5 + $0x560] ss:$40 sps:$4 sm:$0xff]  }
 0x157   :  { %3871 = vmatpush1.bf16.msra.mxu1 %v10765_v16  ;;  %3899 = vmatprep.subr.bf16.mxu0 %v10773_v18  ;;  %v10860_v16 = vld [vmem:[#allocation5 + $0x14] ss:$40 sps:$4 sm:$0xff]   ;;  %v10858_v18 = vld [vmem:[#allocation5 + $0x10] ss:$40 sps:$4 sm:$0xff]  }
 0x158   :  { %3872 = vmatprep.subr.bf16.mxu1 %v10770_v17  ;;  %v10863_v17 = vld [vmem:[#allocation5 + $0x514] ss:$40 sps:$4 sm:$0xff]  }
 0x159   :  { %3846 = vmatmul.mubr.bf16.vlgmr.msra.gmra.mxu0 %v12329_v7  ;;  %v10789_v7 = vld [vmem:[#allocation5 + $0x1048] ss:$40 sps:$4 sm:$0xff]  }
 0x15a   :  { %3900 = vmatpush1.bf16.msra.mxu0 %v10771_v20  ;;  %3931 = vmatprep.mubr.bf16.mxu0 %v12199_v0  ;;  %v10866_v20 = vld [vmem:[#allocation5 + $0x4c4] ss:$40 sps:$4 sm:$0xff]  }
 0x15b   :  { %3873 = vmatpush2.bf16.msra.mxu1 %v10768_v19  ;;  %3901 = vmatprep.subr.bf16.mxu0 %v10779_v22  ;;  %v10861_v19 = vld [vmem:[#allocation5 + $0x510] ss:$40 sps:$4 sm:$0xff]   ;;  %v10864_v22 = vld [vmem:[#allocation5 + $0x4c0] ss:$40 sps:$4 sm:$0xff]  }
 0x15c   :  { %3874 = vmatprep.subr.bf16.mxu1 %v10776_v21  ;;  %v10869_v21 = vld [vmem:[#allocation5 + $0x9c4] ss:$40 sps:$4 sm:$0xff]  }
 0x15e   :  { %3902 = vmatpush1.bf16.msra.mxu0 %v10777_v24  ;;  %v10872_v24 = vld [vmem:[#allocation5 + $0x474] ss:$40 sps:$4 sm:$0xff]  }
 0x15f   :  { %3875 = vmatpush2.bf16.msra.mxu1 %v10774_v23  ;;  %3903 = vmatprep.subr.bf16.mxu0 %v10785_v26  ;;  %v10867_v23 = vld [vmem:[#allocation5 + $0x9c0] ss:$40 sps:$4 sm:$0xff]   ;;  %v10870_v26 = vld [vmem:[#allocation5 + $0x470] ss:$40 sps:$4 sm:$0xff]  }
 0x160   :  { %3876 = vmatprep.subr.bf16.mxu1 %v10782_v25  ;;  %v10875_v25 = vld [vmem:[#allocation5 + $0x974] ss:$40 sps:$4 sm:$0xff]  }
 0x162   :  { %3904 = vmatpush1.bf16.msra.mxu0 %v10783_v28  ;;  %v10878_v28 = vld [vmem:[#allocation5 + $0x424] ss:$40 sps:$4 sm:$0xff]  }
 0x163   :  { %3877 = vmatpush2.bf16.msra.mxu1 %v10780_v27  ;;  %3905 = vmatprep.subr.bf16.mxu0 %v10791_v30  ;;  %v10873_v27 = vld [vmem:[#allocation5 + $0x970] ss:$40 sps:$4 sm:$0xff]   ;;  %v10876_v30 = vld [vmem:[#allocation5 + $0x420] ss:$40 sps:$4 sm:$0xff]  }
 0x164   :  { %3878 = vmatprep.subr.bf16.mxu1 %v10788_v29  ;;  %v10881_v29 = vld [vmem:[#allocation5 + $0x924] ss:$40 sps:$4 sm:$0xff]  }
 0x166   :  { %3906 = vmatpush1.bf16.msra.mxu0 %v10789_v7  ;;  %v10884_v7 = vld [vmem:[#allocation5 + $0x3d4] ss:$40 sps:$4 sm:$0xff]  }
 0x167   :  { %3879 = vmatpush2.bf16.msra.mxu1 %v10786_v31  ;;  %3907 = vmatprep.subr.bf16.mxu0 %v10797_v32  ;;  %v10879_v31 = vld [vmem:[#allocation5 + $0x920] ss:$40 sps:$4 sm:$0xff]   ;;  %v10882_v32 = vld [vmem:[#allocation5 + $0x3d0] ss:$40 sps:$4 sm:$0xff]  }
 0x168   :  { %3880 = vmatprep.subr.bf16.mxu1 %v10794_v51  ;;  %v10887_v51 = vld [vmem:[#allocation5 + $0x8d4] ss:$40 sps:$4 sm:$0xff]  }
 0x16a   :  { %3908 = vmatpush1.bf16.msra.mxu0 %v10795_v34  ;;  %v10890_v34 = vld [vmem:[#allocation5 + $0x384] ss:$40 sps:$4 sm:$0xff]  }
 0x16b   :  { %3881 = vmatpush2.bf16.msra.mxu1 %v10792_v33  ;;  %3909 = vmatprep.subr.bf16.mxu0 %v10803_v37  ;;  %v10885_v33 = vld [vmem:[#allocation5 + $0x8d0] ss:$40 sps:$4 sm:$0xff]   ;;  %v10888_v37 = vld [vmem:[#allocation5 + $0x380] ss:$40 sps:$4 sm:$0xff]  }
 0x16c   :  { %3882 = vmatprep.subr.bf16.mxu1 %v10800_v35  ;;  %v10893_v35 = vld [vmem:[#allocation5 + $0x884] ss:$40 sps:$4 sm:$0xff]  }
 0x16e   :  { %3910 = vmatpush1.bf16.msra.mxu0 %v10801_v39  ;;  %v10896_v39 = vld [vmem:[#allocation5 + $0x334] ss:$40 sps:$4 sm:$0xff]  }
 0x16f   :  { %3883 = vmatpush2.bf16.msra.mxu1 %v10798_v38  ;;  %3911 = vmatprep.subr.bf16.mxu0 %v10809_v41  ;;  %v10891_v38 = vld [vmem:[#allocation5 + $0x880] ss:$40 sps:$4 sm:$0xff]   ;;  %v10894_v41 = vld [vmem:[#allocation5 + $0x330] ss:$40 sps:$4 sm:$0xff]  }
 0x170   :  { %3884 = vmatprep.subr.bf16.mxu1 %v10806_v40  ;;  %v10899_v40 = vld [vmem:[#allocation5 + $0x834] ss:$40 sps:$4 sm:$0xff]  }
 0x172   :  { %3912 = vmatpush1.bf16.msra.mxu0 %v10807_v44  ;;  %v10902_v44 = vld [vmem:[#allocation5 + $0x2e4] ss:$40 sps:$4 sm:$0xff]  }
 0x173   :  { %3885 = vmatpush2.bf16.msra.mxu1 %v10804_v43  ;;  %3913 = vmatprep.subr.bf16.mxu0 %v10815_v46  ;;  %v10897_v43 = vld [vmem:[#allocation5 + $0x830] ss:$40 sps:$4 sm:$0xff]   ;;  %v10900_v46 = vld [vmem:[#allocation5 + $0x2e0] ss:$40 sps:$4 sm:$0xff]  }
 0x174   :  { %3886 = vmatprep.subr.bf16.mxu1 %v10812_v45  ;;  %v10905_v45 = vld [vmem:[#allocation5 + $0x7e4] ss:$40 sps:$4 sm:$0xff]  }
 0x176   :  { %3914 = vmatpush1.bf16.msra.mxu0 %v10813_v48  ;;  %v10908_v48 = vld [vmem:[#allocation5 + $0x294] ss:$40 sps:$4 sm:$0xff]  }
 0x177   :  { %3887 = vmatpush2.bf16.msra.mxu1 %v10810_v47  ;;  %3942 = vmatprep.subr.bf16.mxu0 %v10818_v50  ;;  %v10903_v47 = vld [vmem:[#allocation5 + $0x7e0] ss:$40 sps:$4 sm:$0xff]   ;;  %v10911_v50 = vld [vmem:[#allocation5 + $0x794] ss:$40 sps:$4 sm:$0xff]  }
 0x178   :  { %3985 = vmatprep.subr.bf16.mxu1 %v10821_v52  ;;  %v10906_v52 = vld [vmem:[#allocation5 + $0x290] ss:$40 sps:$4 sm:$0xff]  }
 0x179   :  { %3932 = vmatmul.mubr.bf16.vlgmr.msra.gmra.mxu0 %v12337_v42  ;;  %v10831_v42 = vld [vmem:[#allocation5 + $0x6a0] ss:$40 sps:$4 sm:$0xff]  }
 0x17a   :  { %3889 = vmatmul.mubr.bf16.vlgmr.msra.gmra.mxu1 %v12341_v14  ;;  %3943 = vmatpush1.bf16.msra.mxu0 %v10816_v53  ;;  %v10836_v14 = vld [vmem:[#allocation5 + $0x154] ss:$40 sps:$4 sm:$0xff]   ;;  %v10909_v53 = vld [vmem:[#allocation5 + $0x790] ss:$40 sps:$4 sm:$0xff]  }
 0x17b   :  { %3986 = vmatpush1.bf16.msra.mxu1 %v10819_v54  ;;  %3944 = vmatprep.subr.bf16.mxu0 %v10824_v55  ;;  %v10914_v54 = vld [vmem:[#allocation5 + $0xc44] ss:$40 sps:$4 sm:$0xff]  }
 0x17c   :  { %3987 = vmatprep.subr.bf16.mxu1 %v10827_v56  ;;  %3974 = vmatprep.mubr.bf16.mxu0 %v12351_v49  ;;  %v10917_v55 = vld [vmem:[#allocation5 + $0x1144] ss:$40 sps:$4 sm:$0xff]   ;;  %v10912_v56 = vld [vmem:[#allocation5 + $0xc40] ss:$40 sps:$4 sm:$0xff]  }
 0x17d   :  { %4017 = vmatprep.mubr.bf16.mxu1 %v12354_v61 }
 0x17e   :  { %3945 = vmatpush1.bf16.msra.mxu0 %v10822_v57  ;;  %v10915_v57 = vld [vmem:[#allocation5 + $0x1140] ss:$40 sps:$4 sm:$0xff]  }
 0x17f   :  { %3988 = vmatpush1.bf16.msra.mxu1 %v10825_v58  ;;  %3946 = vmatprep.subr.bf16.mxu0 %v10830_v59  ;;  %v10920_v58 = vld [vmem:[#allocation5 + $0xbf4] ss:$40 sps:$4 sm:$0xff]  }
 0x180   :  { %3989 = vmatprep.subr.bf16.mxu1 %v10833_v60  ;;  %v10923_v59 = vld [vmem:[#allocation5 + $0x10f4] ss:$40 sps:$4 sm:$0xff]   ;;  %v10918_v60 = vld [vmem:[#allocation5 + $0xbf0] ss:$40 sps:$4 sm:$0xff]  }
 0x182   :  { %3947 = vmatpush1.bf16.msra.mxu0 %v10828_v6  ;;  %v10921_v6 = vld [vmem:[#allocation5 + $0x10f0] ss:$40 sps:$4 sm:$0xff]  }
 0x183   :  { %3990 = vmatpush1.bf16.msra.mxu1 %v10831_v42  ;;  %3948 = vmatprep.subr.bf16.mxu0 %v10836_v14  ;;  %v12357_v42 = vld [vmem:[#allocation2] ss:$28 sps:$4 sm:$0xff]   ;;  %v11895_v14 = vld [vmem:[#allocation2 + $0x8] ss:$28 sps:$4 sm:$0xff]  }
 0x184   :  { %3991 = vmatprep.subr.bf16.mxu1 %v10839_v62  ;;  %v10926_v62 = vld [vmem:[#allocation5 + $0xba4] ss:$40 sps:$4 sm:$0xff]  }
 0x186   :  { %3949 = vmatpush1.bf16.msra.mxu0 %v10834_v63  ;;  %v10929_v63 = vld [vmem:[#allocation5 + $0x10a4] ss:$40 sps:$4 sm:$0xff]  }
 0x187   :  { %3992 = vmatpush1.bf16.msra.mxu1 %v10837_v1  ;;  %3950 = vmatprep.subr.bf16.mxu0 %v10842_v36  ;;  %v10924_v1 = vld [vmem:[#allocation5 + $0xba0] ss:$40 sps:$4 sm:$0xff]  }
 0x188   :  { %3993 = vmatprep.subr.bf16.mxu1 %v10845_v2  ;;  %v10927_v36 = vld [vmem:[#allocation5 + $0x10a0] ss:$40 sps:$4 sm:$0xff]   ;;  %v12361_v2 = vld [vmem:[#allocation2 + $0x14] ss:$28 sps:$4 sm:$0xff]  }
 0x18a   :  { %3951 = vmatpush1.bf16.msra.mxu0 %v10840_v3  ;;  %v10932_v3 = vld [vmem:[#allocation5 + $0xb54] ss:$40 sps:$4 sm:$0xff]  }
 0x18b   :  { %3994 = vmatpush1.bf16.msra.mxu1 %v10843_v4  ;;  %3952 = vmatprep.subr.bf16.mxu0 %v10848_v5  ;;  %v10935_v4 = vld [vmem:[#allocation5 + $0x1054] ss:$40 sps:$4 sm:$0xff]   ;;  %v10930_v5 = vld [vmem:[#allocation5 + $0xb50] ss:$40 sps:$4 sm:$0xff]  }
 0x18c   :  { %3995 = vmatprep.subr.bf16.mxu1 %v10851_v8  ;;  %v10933_v8 = vld [vmem:[#allocation5 + $0x1050] ss:$40 sps:$4 sm:$0xff]  }
 0x18e   :  { %3953 = vmatpush1.bf16.msra.mxu0 %v10846_v9  ;;  %v10938_v9 = vld [vmem:[#allocation5 + $0xb04] ss:$40 sps:$4 sm:$0xff]  }
 0x18f   :  { %3996 = vmatpush1.bf16.msra.mxu1 %v10849_v10  ;;  %3954 = vmatprep.subr.bf16.mxu0 %v10854_v11  ;;  %v10941_v10 = vld [vmem:[#allocation5 + $0x1004] ss:$40 sps:$4 sm:$0xff]   ;;  %v10936_v11 = vld [vmem:[#allocation5 + $0xb00] ss:$40 sps:$4 sm:$0xff]  }
 0x190   :  { %3997 = vmatprep.subr.bf16.mxu1 %v10857_v12  ;;  %v10939_v12 = vld [vmem:[#allocation5 + $0x1000] ss:$40 sps:$4 sm:$0xff]  }
 0x192   :  { %3955 = vmatpush1.bf16.msra.mxu0 %v10852_v13  ;;  %v10944_v13 = vld [vmem:[#allocation5 + $0xab4] ss:$40 sps:$4 sm:$0xff]  }
 0x193   :  { %3998 = vmatpush1.bf16.msra.mxu1 %v10855_v15  ;;  %3956 = vmatprep.subr.bf16.mxu0 %v10860_v16  ;;  %v10947_v15 = vld [vmem:[#allocation5 + $0xfb4] ss:$40 sps:$4 sm:$0xff]   ;;  %v10942_v16 = vld [vmem:[#allocation5 + $0xab0] ss:$40 sps:$4 sm:$0xff]  }
 0x194   :  { %3999 = vmatprep.subr.bf16.mxu1 %v10863_v17  ;;  %v10945_v17 = vld [vmem:[#allocation5 + $0xfb0] ss:$40 sps:$4 sm:$0xff]  }
 0x196   :  { %3957 = vmatpush1.bf16.msra.mxu0 %v10858_v18  ;;  %v10950_v18 = vld [vmem:[#allocation5 + $0xa64] ss:$40 sps:$4 sm:$0xff]  }
 0x197   :  { %4000 = vmatpush1.bf16.msra.mxu1 %v10861_v19  ;;  %3958 = vmatprep.subr.bf16.mxu0 %v10866_v20  ;;  %v10953_v19 = vld [vmem:[#allocation5 + $0xf64] ss:$40 sps:$4 sm:$0xff]   ;;  %v10948_v20 = vld [vmem:[#allocation5 + $0xa60] ss:$40 sps:$4 sm:$0xff]  }
 0x198   :  { %4001 = vmatprep.subr.bf16.mxu1 %v10869_v21  ;;  %v10951_v21 = vld [vmem:[#allocation5 + $0xf60] ss:$40 sps:$4 sm:$0xff]  }
 0x19a   :  { %3959 = vmatpush2.bf16.msra.mxu0 %v10864_v22  ;;  %v10956_v22 = vld [vmem:[#allocation5 + $0xa14] ss:$40 sps:$4 sm:$0xff]  }
 0x19b   :  { %4002 = vmatpush2.bf16.msra.mxu1 %v10867_v23  ;;  %3960 = vmatprep.subr.bf16.mxu0 %v10872_v24  ;;  %v10959_v23 = vld [vmem:[#allocation5 + $0xf14] ss:$40 sps:$4 sm:$0xff]   ;;  %v10954_v24 = vld [vmem:[#allocation5 + $0xa10] ss:$40 sps:$4 sm:$0xff]  }
 0x19c   :  { %4003 = vmatprep.subr.bf16.mxu1 %v10875_v25  ;;  %v10957_v25 = vld [vmem:[#allocation5 + $0xf10] ss:$40 sps:$4 sm:$0xff]  }
 0x19e   :  { %3961 = vmatpush2.bf16.msra.mxu0 %v10870_v26  ;;  %v10962_v26 = vld [vmem:[#allocation5 + $0xec4] ss:$40 sps:$4 sm:$0xff]  }
 0x19f   :  { %4004 = vmatpush2.bf16.msra.mxu1 %v10873_v27  ;;  %3962 = vmatprep.subr.bf16.mxu0 %v10878_v28  ;;  %v10965_v27 = vld [vmem:[#allocation5 + $0x24c] ss:$40 sps:$4 sm:$0xff]   ;;  %v10960_v28 = vld [vmem:[#allocation5 + $0xec0] ss:$40 sps:$4 sm:$0xff]  }
 0x1a0   :  { %4005 = vmatprep.subr.bf16.mxu1 %v10881_v29  ;;  %v10963_v29 = vld [vmem:[#allocation5 + $0x248] ss:$40 sps:$4 sm:$0xff]  }
 0x1a2   :  { %3963 = vmatpush2.bf16.msra.mxu0 %v10876_v30  ;;  %v10968_v30 = vld [vmem:[#allocation5 + $0xe74] ss:$40 sps:$4 sm:$0xff]  }
 0x1a3   :  { %4006 = vmatpush2.bf16.msra.mxu1 %v10879_v31  ;;  %3964 = vmatprep.subr.bf16.mxu0 %v10884_v7  ;;  %v10971_v31 = vld [vmem:[#allocation5 + $0x1fc] ss:$40 sps:$4 sm:$0xff]  }
 0x1a4   :  { %4007 = vmatprep.subr.bf16.mxu1 %v10887_v51  ;;  %v11897_v7 = vld [vmem:[#allocation2 + $0x18] ss:$28 sps:$4 sm:$0xff]   ;;  %v10966_v51 = vld [vmem:[#allocation5 + $0xe70] ss:$40 sps:$4 sm:$0xff]  }
 0x1a6   :  { %3965 = vmatpush2.bf16.msra.mxu0 %v10882_v32  ;;  %v10969_v32 = vld [vmem:[#allocation5 + $0x1f8] ss:$40 sps:$4 sm:$0xff]  }
 0x1a7   :  { %4008 = vmatpush2.bf16.msra.mxu1 %v10885_v33  ;;  %3966 = vmatprep.subr.bf16.mxu0 %v10890_v34  ;;  %v10974_v33 = vld [vmem:[#allocation5 + $0xe24] ss:$40 sps:$4 sm:$0xff]  }
 0x1a8   :  { %4009 = vmatprep.subr.bf16.mxu1 %v10893_v35  ;;  %v10977_v34 = vld [vmem:[#allocation5 + $0x1ac] ss:$40 sps:$4 sm:$0xff]   ;;  %v10972_v35 = vld [vmem:[#allocation5 + $0xe20] ss:$40 sps:$4 sm:$0xff]  }
 0x1aa   :  { %3967 = vmatpush2.bf16.msra.mxu0 %v10888_v37  ;;  %v10975_v37 = vld [vmem:[#allocation5 + $0x1a8] ss:$40 sps:$4 sm:$0xff]  }
 0x1ab   :  { %4010 = vmatpush2.bf16.msra.mxu1 %v10891_v38  ;;  %3968 = vmatprep.subr.bf16.mxu0 %v10896_v39  ;;  %v10980_v38 = vld [vmem:[#allocation5 + $0xdd4] ss:$40 sps:$4 sm:$0xff]  }
 0x1ac   :  { %4011 = vmatprep.subr.bf16.mxu1 %v10899_v40  ;;  %v10983_v39 = vld [vmem:[#allocation5 + $0x15c] ss:$40 sps:$4 sm:$0xff]   ;;  %v10978_v40 = vld [vmem:[#allocation5 + $0xdd0] ss:$40 sps:$4 sm:$0xff]  }
 0x1ae   :  { %3969 = vmatpush2.bf16.msra.mxu0 %v10894_v41  ;;  %v10981_v41 = vld [vmem:[#allocation5 + $0x158] ss:$40 sps:$4 sm:$0xff]  }
 0x1af   :  { %4012 = vmatpush2.bf16.msra.mxu1 %v10897_v43  ;;  %3970 = vmatprep.subr.bf16.mxu0 %v10902_v44  ;;  %v10986_v43 = vld [vmem:[#allocation5 + $0xd84] ss:$40 sps:$4 sm:$0xff]  }
 0x1b0   :  { %4013 = vmatprep.subr.bf16.mxu1 %v10905_v45  ;;  %v10989_v44 = vld [vmem:[#allocation5 + $0x10c] ss:$40 sps:$4 sm:$0xff]   ;;  %v10984_v45 = vld [vmem:[#allocation5 + $0xd80] ss:$40 sps:$4 sm:$0xff]  }
 0x1b2   :  { %3971 = vmatpush2.bf16.msra.mxu0 %v10900_v46  ;;  %v10992_v46 = vld [vmem:[#allocation5 + $0xd34] ss:$40 sps:$4 sm:$0xff]  }
 0x1b3   :  { %4014 = vmatpush2.bf16.msra.mxu1 %v10903_v47  ;;  %3972 = vmatprep.subr.bf16.mxu0 %v10908_v48  ;;  %v10995_v47 = vld [vmem:[#allocation5 + $0xbc] ss:$40 sps:$4 sm:$0xff]   ;;  %v10990_v48 = vld [vmem:[#allocation5 + $0xd30] ss:$40 sps:$4 sm:$0xff]  }
 0x1b4   :  { %4015 = vmatprep.subr.bf16.mxu1 %v10911_v50  ;;  %v10993_v50 = vld [vmem:[#allocation5 + $0xb8] ss:$40 sps:$4 sm:$0xff]  }
 0x1b6   :  { %3973 = vmatpush2.bf16.msra.mxu0 %v10906_v52  ;;  %v10998_v52 = vld [vmem:[#allocation5 + $0xce4] ss:$40 sps:$4 sm:$0xff]  }
 0x1b7   :  { %4016 = vmatpush2.bf16.msra.mxu1 %v10909_v53  ;;  %4028 = vmatprep.subr.bf16.mxu0 %v10914_v54  ;;  %v11001_v53 = vld [vmem:[#allocation5 + $0x6c] ss:$40 sps:$4 sm:$0xff]   ;;  %v10996_v54 = vld [vmem:[#allocation5 + $0xce0] ss:$40 sps:$4 sm:$0xff]  }
 0x1b8   :  { %4071 = vmatprep.subr.bf16.mxu1 %v10917_v55  ;;  %v10999_v55 = vld [vmem:[#allocation5 + $0x68] ss:$40 sps:$4 sm:$0xff]  }
 0x1b9   :  { %3975 = vmatmul.mubr.bf16.vlgmr.msra.gmra.mxu0 %v12357_v42 }
 0x1ba   :  { %4018 = vmatmul.mubr.bf16.vlgmr.msra.gmra.mxu1 %v11895_v14  ;;  %4029 = vmatpush1.bf16.msra.mxu0 %v10912_v56  ;;  %v11004_v56 = vld [vmem:[#allocation5 + $0xc94] ss:$40 sps:$4 sm:$0xff]   ;;  %v11008_v14 = vld [vmem:[#allocation5 + $0x4c8] ss:$40 sps:$4 sm:$0xff]  }
 0x1bb   :  { %4072 = vmatpush1.bf16.msra.mxu1 %v10915_v57  ;;  %4030 = vmatprep.subr.bf16.mxu0 %v10920_v58  ;;  %v11007_v57 = vld [vmem:[#allocation5 + $0x1c] ss:$40 sps:$4 sm:$0xff]   ;;  %v11002_v58 = vld [vmem:[#allocation5 + $0xc90] ss:$40 sps:$4 sm:$0xff]  }
 0x1bc   :  { %4073 = vmatprep.subr.bf16.mxu1 %v10923_v59  ;;  %4103 = vmatprep.mubr.bf16.mxu1 %v12199_v0  ;;  %v11005_v59 = vld [vmem:[#allocation5 + $0x18] ss:$40 sps:$4 sm:$0xff]  }
 0x1bd   :  { %4060 = vmatprep.mubr.bf16.mxu0 %v12361_v2 }
 0x1be   :  { %4031 = vmatpush1.bf16.msra.mxu0 %v10918_v60  ;;  %v11010_v60 = vld [vmem:[#allocation5 + $0x4cc] ss:$40 sps:$4 sm:$0xff]  }
 0x1bf   :  { %4074 = vmatpush1.bf16.msra.mxu1 %v10921_v6  ;;  %4032 = vmatprep.subr.bf16.mxu0 %v10926_v62  ;;  %v11013_v6 = vld [vmem:[#allocation5 + $0x74c] ss:$40 sps:$4 sm:$0xff]   ;;  %v11011_v62 = vld [vmem:[#allocation5 + $0x748] ss:$40 sps:$4 sm:$0xff]  }
 0x1c0   :  { %4075 = vmatprep.subr.bf16.mxu1 %v10929_v63  ;;  %v12365_v63 = vpop.f32.mrf.mxu1 }
 0x1c2   :  { %4033 = vmatpush1.bf16.msra.mxu0 %v10924_v1  ;;  %v11016_v1 = vld [vmem:[#allocation5 + $0x47c] ss:$40 sps:$4 sm:$0xff]  }
 0x1c3   :  { %4076 = vmatpush1.bf16.msra.mxu1 %v10927_v36  ;;  %4034 = vmatprep.subr.bf16.mxu0 %v10932_v3  ;;  %v11019_v36 = vld [vmem:[#allocation5 + $0x6fc] ss:$40 sps:$4 sm:$0xff]   ;;  %v11014_v3 = vld [vmem:[#allocation5 + $0x478] ss:$40 sps:$4 sm:$0xff]  }
 0x1c4   :  { %4077 = vmatprep.subr.bf16.mxu1 %v10935_v4  ;;  %v11017_v4 = vld [vmem:[#allocation5 + $0x6f8] ss:$40 sps:$4 sm:$0xff]  }
 0x1c6   :  { %4035 = vmatpush1.bf16.msra.mxu0 %v10930_v5  ;;  %v12367_v5 = vld [vmem:[#allocation2 + $0x10] ss:$28 sps:$4 sm:$0xff]  }
 0x1c7   :  { %4078 = vmatpush1.bf16.msra.mxu1 %v10933_v8  ;;  %4036 = vmatprep.subr.bf16.mxu0 %v10938_v9  ;;  %v12370_v8 = vpop.f32.mrf.mxu1  ;;  %v11022_v9 = vld [vmem:[#allocation5 + $0x42c] ss:$40 sps:$4 sm:$0xff]  }
 0x1c8   :  { %4079 = vmatprep.subr.bf16.mxu1 %v10941_v10  ;;  %v11025_v10 = vld [vmem:[#allocation5 + $0x6ac] ss:$40 sps:$4 sm:$0xff]  }
 0x1ca   :  { %4037 = vmatpush1.bf16.msra.mxu0 %v10936_v11  ;;  %v11020_v11 = vld [vmem:[#allocation5 + $0x428] ss:$40 sps:$4 sm:$0xff]  }
 0x1cb   :  { %4080 = vmatpush1.bf16.msra.mxu1 %v10939_v12  ;;  %4038 = vmatprep.subr.bf16.mxu0 %v10944_v13  ;;  %v11023_v12 = vld [vmem:[#allocation5 + $0x6a8] ss:$40 sps:$4 sm:$0xff]   ;;  %v12373_v13 = vpop.f32.mrf.mxu0 }
 0x1cc   :  { %4081 = vmatprep.subr.bf16.mxu1 %v10947_v15  ;;  %v12375_v15 = vpop.f32.mrf.mxu1 }
 0x1ce   :  { %4039 = vmatpush1.bf16.msra.mxu0 %v10942_v16  ;;  %v11028_v16 = vld [vmem:[#allocation5 + $0x3dc] ss:$40 sps:$4 sm:$0xff]  }
 0x1cf   :  { %4082 = vmatpush1.bf16.msra.mxu1 %v10945_v17  ;;  %4040 = vmatprep.subr.bf16.mxu0 %v10950_v18  ;;  %v11031_v17 = vld [vmem:[#allocation5 + $0x65c] ss:$40 sps:$4 sm:$0xff]   ;;  %v12377_v18 = vpop.f32.mrf.mxu0 }
 0x1d0   :  { %4083 = vmatprep.subr.bf16.mxu1 %v10953_v19  ;;  %v11026_v19 = vld [vmem:[#allocation5 + $0x3d8] ss:$40 sps:$4 sm:$0xff]  }
 0x1d2   :  { %4041 = vmatpush1.bf16.msra.mxu0 %v10948_v20  ;;  %v11029_v20 = vld [vmem:[#allocation5 + $0x658] ss:$40 sps:$4 sm:$0xff]  }
 0x1d3   :  { %4084 = vmatpush1.bf16.msra.mxu1 %v10951_v21  ;;  %4042 = vmatprep.subr.bf16.mxu0 %v10956_v22  ;;  %v12379_v21 = vpop.f32.mrf.mxu1  ;;  %v11037_v22 = vld [vmem:[#allocation5 + $0x60c] ss:$40 sps:$4 sm:$0xff]  }
 0x1d4   :  { %4085 = vmatprep.subr.bf16.mxu1 %v10959_v23  ;;  %v12381_v23 = vpop.f32.mrf.mxu0 }
 0x1d6   :  { %4043 = vmatpush1.bf16.msra.mxu0 %v10954_v24  ;;  %v12383_v24 = vpop.f32.mrf.mxu1 }
 0x1d7   :  { %4086 = vmatpush1.bf16.msra.mxu1 %v10957_v25  ;;  %4044 = vmatprep.subr.bf16.mxu0 %v10962_v26  ;;  %v11032_v25 = vld [vmem:[#allocation5 + $0x388] ss:$40 sps:$4 sm:$0xff]  }
 0x1d8   :  { %4114 = vmatprep.subr.bf16.mxu1 %v10965_v27  ;;  %v11035_v26 = vld [vmem:[#allocation5 + $0x608] ss:$40 sps:$4 sm:$0xff]   ;;  %v11040_v27 = vld [vmem:[#allocation5 + $0x33c] ss:$40 sps:$4 sm:$0xff]  }
 0x1da   :  { %4104 = vmatmul.mubr.bf16.vlgmr.msra.gmra.mxu1 %v11897_v7  ;;  %4045 = vmatpush2.bf16.msra.mxu0 %v10960_v28  ;;  %v11043_v28 = vld [vmem:[#allocation5 + $0x5bc] ss:$40 sps:$4 sm:$0xff]   ;;  %v11041_v7 = vld [vmem:[#allocation5 + $0x5b8] ss:$40 sps:$4 sm:$0xff]  }
 0x1db   :  { %4115 = vmatpush1.bf16.msra.mxu1 %v10963_v29  ;;  %4046 = vmatprep.subr.bf16.mxu0 %v10968_v30  ;;  %v12385_v29 = vpop.f32.mrf.mxu0  ;;  %v12387_v30 = vpop.f32.mrf.mxu1 }
 0x1dc   :  { %4116 = vmatprep.subr.bf16.mxu1 %v10971_v31  ;;  %4146 = vmatprep.mubr.bf16.mxu1 %v12351_v49  ;;  %v10987_v49 = vld [vmem:[#allocation5 + $0x108] ss:$40 sps:$4 sm:$0xff]   ;;  %v11038_v31 = vld [vmem:[#allocation5 + $0x338] ss:$40 sps:$4 sm:$0xff]  }
 0x1de   :  { %4047 = vmatpush2.bf16.msra.mxu0 %v10966_v51  ;;  %v12389_v51 = vpop.f32.mrf.mxu0 }
 0x1df   :  { %4117 = vmatpush1.bf16.msra.mxu1 %v10969_v32  ;;  %4048 = vmatprep.subr.bf16.mxu0 %v10974_v33  ;;  %v11046_v32 = vld [vmem:[#allocation5 + $0x2ec] ss:$40 sps:$4 sm:$0xff]  }
 0x1e0   :  { %4118 = vmatprep.subr.bf16.mxu1 %v10977_v34  ;;  %v11049_v33 = vld [vmem:[#allocation5 + $0x56c] ss:$40 sps:$4 sm:$0xff]   ;;  %v12391_v34 = vpop.f32.mrf.mxu1 }
 0x1e2   :  { %4049 = vmatpush2.bf16.msra.mxu0 %v10972_v35  ;;  %v11044_v35 = vld [vmem:[#allocation5 + $0x2e8] ss:$40 sps:$4 sm:$0xff]  }
 0x1e3   :  { %4119 = vmatpush1.bf16.msra.mxu1 %v10975_v37  ;;  %4050 = vmatprep.subr.bf16.mxu0 %v10980_v38  ;;  %v11047_v37 = vld [vmem:[#allocation5 + $0x568] ss:$40 sps:$4 sm:$0xff]   ;;  %v12393_v38 = vpop.f32.mrf.mxu0 }
 0x1e4   :  { %4120 = vmatprep.subr.bf16.mxu1 %v10983_v39  ;;  %v11052_v39 = vld [vmem:[#allocation5 + $0x29c] ss:$40 sps:$4 sm:$0xff]  }
 0x1e6   :  { %4051 = vmatpush2.bf16.msra.mxu0 %v10978_v40  ;;  %v11055_v40 = vld [vmem:[#allocation5 + $0x51c] ss:$40 sps:$4 sm:$0xff]  }
 0x1e7   :  { %4121 = vmatpush1.bf16.msra.mxu1 %v10981_v41  ;;  %4052 = vmatprep.subr.bf16.mxu0 %v10986_v43  ;;  %v12395_v41 = vpop.f32.mrf.mxu1  ;;  %v11050_v43 = vld [vmem:[#allocation5 + $0x298] ss:$40 sps:$4 sm:$0xff]  }
 0x1e8   :  { %4122 = vmatprep.subr.bf16.mxu1 %v10989_v44  ;;  %v11053_v44 = vld [vmem:[#allocation5 + $0x518] ss:$40 sps:$4 sm:$0xff]  }
 0x1ea   :  { %4053 = vmatpush2.bf16.msra.mxu0 %v10984_v45  ;;  %v12397_v45 = vpop.f32.mrf.mxu0 }
 0x1eb   :  { %4123 = vmatpush1.bf16.msra.mxu1 %v10987_v49  ;;  %4054 = vmatprep.subr.bf16.mxu0 %v10992_v46  ;;  %v11058_v46 = vld [vmem:[#allocation5 + $0x9cc] ss:$40 sps:$4 sm:$0xff]  }
 0x1ec   :  { %4124 = vmatprep.subr.bf16.mxu1 %v10995_v47  ;;  %v11061_v47 = vld [vmem:[#allocation5 + $0xc4c] ss:$40 sps:$4 sm:$0xff]  }
 0x1ee   :  { %4055 = vmatpush2.bf16.msra.mxu0 %v10990_v48  ;;  %v11056_v48 = vld [vmem:[#allocation5 + $0x9c8] ss:$40 sps:$4 sm:$0xff]  }
 0x1ef   :  { %4125 = vmatpush1.bf16.msra.mxu1 %v10993_v50  ;;  %4056 = vmatprep.subr.bf16.mxu0 %v10998_v52  ;;  %v11059_v50 = vld [vmem:[#allocation5 + $0xc48] ss:$40 sps:$4 sm:$0xff]   ;;  %v12401_v52 = vpop.f32.mrf.mxu0 }
 0x1f0   :  { %4126 = vmatprep.subr.bf16.mxu1 %v11001_v53 }
 0x1f2   :  { %4057 = vmatpush2.bf16.msra.mxu0 %v10996_v54  ;;  %v11064_v54 = vld [vmem:[#allocation5 + $0x97c] ss:$40 sps:$4 sm:$0xff]  }
 0x1f3   :  { %4127 = vmatpush1.bf16.msra.mxu1 %v10999_v55  ;;  %4058 = vmatprep.subr.bf16.mxu0 %v11004_v56  ;;  %v11067_v55 = vld [vmem:[#allocation5 + $0xbfc] ss:$40 sps:$4 sm:$0xff]   ;;  %v11062_v56 = vld [vmem:[#allocation5 + $0x978] ss:$40 sps:$4 sm:$0xff]  }
 0x1f4   :  { %4128 = vmatprep.subr.bf16.mxu1 %v11007_v57  ;;  %v11065_v57 = vld [vmem:[#allocation5 + $0xbf8] ss:$40 sps:$4 sm:$0xff]  }
 0x1f6   :  { %4059 = vmatpush2.bf16.msra.mxu0 %v11002_v58 }
 0x1f7   :  { %4129 = vmatpush1.bf16.msra.mxu1 %v11005_v59  ;;  %4157 = vmatprep.subr.bf16.mxu0 %v11013_v6  ;;  %v11070_v6 = vld [vmem:[#allocation5 + $0x92c] ss:$40 sps:$4 sm:$0xff]  }
 0x1f8   :  { %4130 = vmatprep.subr.bf16.mxu1 %v11010_v60 }
 0x1f9   :  { %4061 = vmatmul.mubr.bf16.vlgmr.msra.gmra.mxu0 %v12367_v5 }
 0x1fa   :  { %4158 = vmatpush1.bf16.msra.mxu0 %v11011_v62  ;;  %4189 = vmatprep.mubr.bf16.mxu0 %v12354_v61  ;;  %v11034_v61 = vld [vmem:[#allocation5 + $0x38c] ss:$40 sps:$4 sm:$0xff]   ;;  %v12399_v49 = vpop.f32.mrf.mxu1 }
 0x1fb   :  { %4131 = vmatpush2.bf16.msra.mxu1 %v11008_v14  ;;  %4159 = vmatprep.subr.bf16.mxu0 %v11019_v36  ;;  %v11073_v14 = vld [vmem:[#allocation5 + $0xbac] ss:$40 sps:$4 sm:$0xff]   ;;  %v11071_v36 = vld [vmem:[#allocation5 + $0xba8] ss:$40 sps:$4 sm:$0xff]  }
 0x1fc   :  { %4132 = vmatprep.subr.bf16.mxu1 %v11016_v1  ;;  %v3806_v53 = vpop.f32.mrf.mxu1  ;;  %v11068_v1 = vld [vmem:[#allocation5 + $0x928] ss:$40 sps:$4 sm:$0xff]  }
 0x1fe   :  { %4160 = vmatpush1.bf16.msra.mxu0 %v11017_v4  ;;  %v3808_v59 = vpop.f32.mrf.mxu1 }
 0x1ff   :  { %4133 = vmatpush2.bf16.msra.mxu1 %v11014_v3  ;;  %4161 = vmatprep.subr.bf16.mxu0 %v11025_v10  ;;  %v11076_v10 = vld [vmem:[#allocation5 + $0x8dc] ss:$40 sps:$4 sm:$0xff]  }
 0x200   :  { %4134 = vmatprep.subr.bf16.mxu1 %v11022_v9 }
 0x202   :  { %4162 = vmatpush1.bf16.msra.mxu0 %v11023_v12 }
 0x203   :  { %4135 = vmatpush2.bf16.msra.mxu1 %v11020_v11  ;;  %4163 = vmatprep.subr.bf16.mxu0 %v11031_v17  ;;  %v11079_v11 = vld [vmem:[#allocation5 + $0xb5c] ss:$40 sps:$4 sm:$0xff]   ;;  %v11077_v17 = vld [vmem:[#allocation5 + $0xb58] ss:$40 sps:$4 sm:$0xff]  }
 0x204   :  { %4136 = vmatprep.subr.bf16.mxu1 %v11028_v16  ;;  %v11074_v16 = vld [vmem:[#allocation5 + $0x8d8] ss:$40 sps:$4 sm:$0xff]  }
 0x206   :  { %4164 = vmatpush1.bf16.msra.mxu0 %v11029_v20  ;;  %v11080_v20 = vld [vmem:[#allocation5 + $0x888] ss:$40 sps:$4 sm:$0xff]  }
 0x207   :  { %4137 = vmatpush2.bf16.msra.mxu1 %v11026_v19  ;;  %4165 = vmatprep.subr.bf16.mxu0 %v11037_v22  ;;  %v11085_v19 = vld [vmem:[#allocation5 + $0xb0c] ss:$40 sps:$4 sm:$0xff]   ;;  %v11088_v22 = vld [vmem:[#allocation5 + $0x83c] ss:$40 sps:$4 sm:$0xff]  }
 0x208   :  { %4138 = vmatprep.subr.bf16.mxu1 %v11034_v61  ;;  %v11083_v61 = vld [vmem:[#allocation5 + $0xb08] ss:$40 sps:$4 sm:$0xff]  }
 0x20a   :  { %4166 = vmatpush1.bf16.msra.mxu0 %v11035_v26  ;;  %v11086_v26 = vld [vmem:[#allocation5 + $0x838] ss:$40 sps:$4 sm:$0xff]  }
 0x20b   :  { %4139 = vmatpush2.bf16.msra.mxu1 %v11032_v25  ;;  %4167 = vmatprep.subr.bf16.mxu0 %v11043_v28  ;;  %v11091_v25 = vld [vmem:[#allocation5 + $0xabc] ss:$40 sps:$4 sm:$0xff]   ;;  %v11094_v28 = vld [vmem:[#allocation5 + $0x7ec] ss:$40 sps:$4 sm:$0xff]  }
 0x20c   :  { %4140 = vmatprep.subr.bf16.mxu1 %v11040_v27  ;;  %v11089_v27 = vld [vmem:[#allocation5 + $0xab8] ss:$40 sps:$4 sm:$0xff]  }
 0x20e   :  { %4168 = vmatpush1.bf16.msra.mxu0 %v11041_v7  ;;  %v11092_v7 = vld [vmem:[#allocation5 + $0x7e8] ss:$40 sps:$4 sm:$0xff]  }
 0x20f   :  { %4141 = vmatpush2.bf16.msra.mxu1 %v11038_v31  ;;  %4169 = vmatprep.subr.bf16.mxu0 %v11049_v33  ;;  %v11097_v31 = vld [vmem:[#allocation5 + $0xa6c] ss:$40 sps:$4 sm:$0xff]   ;;  %v11100_v33 = vld [vmem:[#allocation5 + $0x79c] ss:$40 sps:$4 sm:$0xff]  }
 0x210   :  { %4142 = vmatprep.subr.bf16.mxu1 %v11046_v32  ;;  %v11095_v32 = vld [vmem:[#allocation5 + $0xa68] ss:$40 sps:$4 sm:$0xff]  }
 0x212   :  { %4170 = vmatpush1.bf16.msra.mxu0 %v11047_v37  ;;  %v11098_v37 = vld [vmem:[#allocation5 + $0x798] ss:$40 sps:$4 sm:$0xff]  }
 0x213   :  { %4143 = vmatpush2.bf16.msra.mxu1 %v11044_v35  ;;  %4171 = vmatprep.subr.bf16.mxu0 %v11055_v40  ;;  %v11103_v35 = vld [vmem:[#allocation5 + $0xa1c] ss:$40 sps:$4 sm:$0xff]   ;;  %v11106_v40 = vld [vmem:[#allocation5 + $0xecc] ss:$40 sps:$4 sm:$0xff]  }
 0x214   :  { %4144 = vmatprep.subr.bf16.mxu1 %v11052_v39  ;;  %v11101_v39 = vld [vmem:[#allocation5 + $0xa18] ss:$40 sps:$4 sm:$0xff]  }
 0x216   :  { %4172 = vmatpush1.bf16.msra.mxu0 %v11053_v44  ;;  %v11104_v44 = vld [vmem:[#allocation5 + $0xec8] ss:$40 sps:$4 sm:$0xff]  }
 0x217   :  { %4145 = vmatpush2.bf16.msra.mxu1 %v11050_v43  ;;  %4173 = vmatprep.subr.bf16.mxu0 %v11058_v46  ;;  %v11109_v43 = vld [vmem:[#allocation5 + $0x114c] ss:$40 sps:$4 sm:$0xff]   ;;  %v11107_v46 = vld [vmem:[#allocation5 + $0x1148] ss:$40 sps:$4 sm:$0xff]  }
 0x218   :  { %4200 = vmatprep.subr.bf16.mxu1 %v11061_v47  ;;  %v11112_v47 = vld [vmem:[#allocation5 + $0xe7c] ss:$40 sps:$4 sm:$0xff]  }
 0x219   :  { %v12403_v58 = vpop.f32.mrf.mxu0 }
 0x21a   :  { %4147 = vmatmul.mubr.bf16.vlgmr.msra.gmra.mxu1 %v12357_v42  ;;  %4174 = vmatpush2.bf16.msra.mxu0 %v11056_v48  ;;  %v3810_v42 = vpop.f32.mrf.mxu1  ;;  %v11115_v48 = vld [vmem:[#allocation5 + $0x10fc] ss:$40 sps:$4 sm:$0xff]  }
 0x21b   :  { %4201 = vmatpush1.bf16.msra.mxu1 %v11059_v50  ;;  %v3849_v60 = vpop.f32.mrf.mxu0  ;;  %4175 = vmatprep.subr.bf16.mxu0 %v11064_v54  ;;  %v11110_v50 = vld [vmem:[#allocation5 + $0xe78] ss:$40 sps:$4 sm:$0xff]  }
 0x21c   :  { %4202 = vmatprep.subr.bf16.mxu1 %v11067_v55  ;;  %v12406_v62 = vadd.f32 %v3849_v60, %v3806_v53  ;;  %4232 = vmatprep.mubr.bf16.mxu1 %v12361_v2  ;;  %v11082_v2 = vld [vmem:[#allocation5 + $0x88c] ss:$40 sps:$4 sm:$0xff]   ;;  %v11113_v53 = vld [vmem:[#allocation5 + $0x10f8] ss:$40 sps:$4 sm:$0xff]  }
 0x21d   :  { %v3851_v3 = vpop.f32.mrf.mxu0  ;;  %v12415_v55 = vld [vmem:[#allocation2 + $0x8] ss:$28 sps:$4 sm:$0xff]  }
 0x21e   :  { %v12409_v4 = vadd.f32 %v3851_v3, %v3808_v59  ;;  %4176 = vmatpush2.bf16.msra.mxu0 %v11062_v56 }
 0x21f   :  { %4203 = vmatpush1.bf16.msra.mxu1 %v11065_v57  ;;  %v3853_v9 = vpop.f32.mrf.mxu0  ;;  %4177 = vmatprep.subr.bf16.mxu0 %v11070_v6  ;;  %v11118_v57 = vld [vmem:[#allocation5 + $0xe2c] ss:$40 sps:$4 sm:$0xff]  }
 0x220   :  { %4204 = vmatprep.subr.bf16.mxu1 %v11073_v14  ;;  %v12411_v12 = vadd.f32 %v3853_v9, %v3810_v42  ;;  %v11121_v6 = vld [vmem:[#allocation5 + $0x10ac] ss:$40 sps:$4 sm:$0xff]   ;;  %v11124_v9 = vld [vmem:[#allocation5 + $0xddc] ss:$40 sps:$4 sm:$0xff]  }
 0x222   :  { %4178 = vmatpush2.bf16.msra.mxu0 %v11068_v1  ;;  %v11116_v1 = vld [vmem:[#allocation5 + $0xe28] ss:$40 sps:$4 sm:$0xff]  }
 0x223   :  { %4205 = vmatpush1.bf16.msra.mxu1 %v11071_v36  ;;  %4179 = vmatprep.subr.bf16.mxu0 %v11076_v10  ;;  %v11119_v36 = vld [vmem:[#allocation5 + $0x10a8] ss:$40 sps:$4 sm:$0xff]  }
 0x224   :  { %4206 = vmatprep.subr.bf16.mxu1 %v11079_v11 }
 0x226   :  { %4180 = vmatpush2.bf16.msra.mxu0 %v11074_v16  ;;  %v9832_v16 = vld [vmem:[#allocation10] ss:$0 sm:$0xff] }
 0x227   :  { %4207 = vmatpush1.bf16.msra.mxu1 %v11077_v17  ;;  %4181 = vmatprep.subr.bf16.mxu0 %v11082_v2 }
 0x228   :  { %4208 = vmatprep.subr.bf16.mxu1 %v11085_v19  ;;  %v11127_v19 = vld [vmem:[#allocation5 + $0x105c] ss:$40 sps:$4 sm:$0xff]  }
 0x22a   :  { %4182 = vmatpush2.bf16.msra.mxu0 %v11080_v20 }
 0x22b   :  { %4209 = vmatpush1.bf16.msra.mxu1 %v11083_v61  ;;  %4183 = vmatprep.subr.bf16.mxu0 %v11088_v22  ;;  %v11122_v61 = vld [vmem:[#allocation5 + $0xdd8] ss:$40 sps:$4 sm:$0xff]  }
 0x22c   :  { %4210 = vmatprep.subr.bf16.mxu1 %v11091_v25  ;;  %v11125_v22 = vld [vmem:[#allocation5 + $0x1058] ss:$40 sps:$4 sm:$0xff]   ;;  %v11130_v25 = vld [vmem:[#allocation5 + $0xd8c] ss:$40 sps:$4 sm:$0xff]  }
 0x22e   :  { %4184 = vmatpush2.bf16.msra.mxu0 %v11086_v26  ;;  %v11133_v26 = vld [vmem:[#allocation5 + $0x100c] ss:$40 sps:$4 sm:$0xff]  }
 0x22f   :  { %4211 = vmatpush1.bf16.msra.mxu1 %v11089_v27  ;;  %4185 = vmatprep.subr.bf16.mxu0 %v11094_v28  ;;  %v11128_v28 = vld [vmem:[#allocation5 + $0xd88] ss:$40 sps:$4 sm:$0xff]  }
 0x230   :  { %4212 = vmatprep.subr.bf16.mxu1 %v11097_v31  ;;  %v11131_v31 = vld [vmem:[#allocation5 + $0x1008] ss:$40 sps:$4 sm:$0xff]  }
 0x232   :  { %4186 = vmatpush2.bf16.msra.mxu0 %v11092_v7  ;;  %v11136_v7 = vld [vmem:[#allocation5 + $0xd3c] ss:$40 sps:$4 sm:$0xff]  }
 0x233   :  { %4213 = vmatpush1.bf16.msra.mxu1 %v11095_v32  ;;  %4187 = vmatprep.subr.bf16.mxu0 %v11100_v33  ;;  %v11139_v32 = vld [vmem:[#allocation5 + $0xfbc] ss:$40 sps:$4 sm:$0xff]   ;;  %v11137_v33 = vld [vmem:[#allocation5 + $0xfb8] ss:$40 sps:$4 sm:$0xff]  }
 0x234   :  { %4214 = vmatprep.subr.bf16.mxu1 %v11103_v35  ;;  %v11142_v35 = vld [vmem:[#allocation5 + $0xcec] ss:$40 sps:$4 sm:$0xff]  }
 0x236   :  { %4188 = vmatpush2.bf16.msra.mxu0 %v11098_v37  ;;  %v11145_v37 = vld [vmem:[#allocation5 + $0xf6c] ss:$40 sps:$4 sm:$0xff]  }
 0x237   :  { %4215 = vmatpush1.bf16.msra.mxu1 %v11101_v39  ;;  %4243 = vmatprep.subr.bf16.mxu0 %v11109_v43  ;;  %v11140_v39 = vld [vmem:[#allocation5 + $0xce8] ss:$40 sps:$4 sm:$0xff]   ;;  %v11148_v43 = vld [vmem:[#allocation5 + $0xc9c] ss:$40 sps:$4 sm:$0xff]  }
 0x238   :  { %4216 = vmatprep.subr.bf16.mxu1 %v11106_v40  ;;  %v11143_v40 = vld [vmem:[#allocation5 + $0xf68] ss:$40 sps:$4 sm:$0xff]  }
 0x239   :  { %4190 = vmatmul.mubr.bf16.vlgmr.msra.gmra.mxu0 %v12415_v55  ;;  %v12418_v56 = vpop.f32.mrf.mxu0 }
 0x23a   :  { %v12413_v54 = vpop.f32.mrf.mxu1  ;;  %4244 = vmatpush1.bf16.msra.mxu0 %v11107_v46  ;;  %4275 = vmatprep.mubr.bf16.mxu0 %v12199_v0  ;;  %v11146_v46 = vld [vmem:[#allocation5 + $0xc98] ss:$40 sps:$4 sm:$0xff]  }
 0x23b   :  { %4217 = vmatpush2.bf16.msra.mxu1 %v11104_v44  ;;  %v3935_v60 = vpop.f32.mrf.mxu0  ;;  %4245 = vmatprep.subr.bf16.mxu0 %v11115_v48  ;;  %v11151_v44 = vld [vmem:[#allocation5 + $0xf1c] ss:$40 sps:$4 sm:$0xff]  }
 0x23c   :  { %v3892_v59 = vpop.f32.mrf.mxu1  ;;  %4218 = vmatprep.subr.bf16.mxu1 %v11112_v47  ;;  %v11149_v47 = vld [vmem:[#allocation5 + $0xf18] ss:$40 sps:$4 sm:$0xff]   ;;  %v11154_v48 = vld [vmem:[#allocation5 + $0x254] ss:$40 sps:$4 sm:$0xff]  }
 0x23d   :  { %v3893_v14 = vadd.f32 %v3892_v59, %v12406_v62  ;;  %v3937_v42 = vpop.f32.mrf.mxu0  ;;  %v11160_v59 = vld [vmem:[#allocation5 + $0x204] ss:$40 sps:$4 sm:$0xff]  }
 0x23e   :  { %v3894_v3 = vpop.f32.mrf.mxu1  ;;  %4246 = vmatpush1.bf16.msra.mxu0 %v11113_v53  ;;  %v11152_v53 = vld [vmem:[#allocation5 + $0x250] ss:$40 sps:$4 sm:$0xff]  }
 0x23f   :  { %v3895_v10 = vadd.f32 %v3894_v3, %v12409_v4  ;;  %v12423_v11 = vadd.f32 %v3935_v60, %v3893_v14  ;;  %4219 = vmatpush2.bf16.msra.mxu1 %v11110_v50  ;;  %v3939_v2 = vpop.f32.mrf.mxu0  ;;  %4247 = vmatprep.subr.bf16.mxu0 %v11121_v6  ;;  %v11157_v50 = vld [vmem:[#allocation5 + $0x754] ss:$40 sps:$4 sm:$0xff]   ;;  %v11163_v60 = vld [vmem:[#allocation5 + $0x704] ss:$40 sps:$4 sm:$0xff]   ;;  %v11158_v6 = vld [vmem:[#allocation5 + $0x200] ss:$40 sps:$4 sm:$0xff]  }
 0x240   :  { %v3896_v17 = vpop.f32.mrf.mxu1  ;;  %4220 = vmatprep.subr.bf16.mxu1 %v11118_v57  ;;  %v11155_v57 = vld [vmem:[#allocation5 + $0x750] ss:$40 sps:$4 sm:$0xff]   ;;  %v11161_v14 = vld [vmem:[#allocation5 + $0x700] ss:$40 sps:$4 sm:$0xff]   ;;  %v11169_v3 = vld [vmem:[#allocation5 + $0x6b4] ss:$40 sps:$4 sm:$0xff]  }
 0x241   :  { %v3897_v62 = vadd.f32 %v3896_v17, %v12411_v12  ;;  %v3938_v20 = vadd.f32 %v3937_v42, %v3895_v10  ;;  %v11134_v12 = vld [vmem:[#allocation5 + $0xd38] ss:$40 sps:$4 sm:$0xff]   ;;  %v11901_v10 = vld [vmem:[#allocation2 + $0x4] ss:$28 sps:$4 sm:$0xff]  }
 0x242   :  { %4248 = vmatpush1.bf16.msra.mxu0 %v11119_v36  ;;  %v11166_v36 = vld [vmem:[#allocation5 + $0x1b4] ss:$40 sps:$4 sm:$0xff]   ;;  %v11164_v42 = vld [vmem:[#allocation5 + $0x1b0] ss:$40 sps:$4 sm:$0xff]   ;;  %v11172_v17 = vld [vmem:[#allocation5 + $0x164] ss:$40 sps:$4 sm:$0xff]  }
 0x243   :  { %v12426_v27 = vadd.f32 %v9832_v16, %v3938_v20  ;;  %v12428_v4 = vadd.f32 %v3939_v2, %v3897_v62  ;;  %4221 = vmatpush2.bf16.msra.mxu1 %v11116_v1  ;;  %4249 = vmatprep.subr.bf16.mxu0 %v11127_v19  ;;  %v12431_v1 = vld [vmem:[#allocation2 + $0x18] ss:$28 sps:$4 sm:$0xff]   ;;  %v11902_v16 = vld [vmem:[#allocation2 + $0xc] ss:$28 sps:$4 sm:$0xff]   ;;  %v11175_v2 = vld [vmem:[#allocation5 + $0x664] ss:$40 sps:$4 sm:$0xff]  }
 0x244   :  { %4222 = vmatprep.subr.bf16.mxu1 %v11124_v9  ;;  %v11167_v9 = vld [vmem:[#allocation5 + $0x6b0] ss:$40 sps:$4 sm:$0xff]   ;;  %v11173_v19 = vld [vmem:[#allocation5 + $0x660] ss:$40 sps:$4 sm:$0xff]   ;;  %v11178_v62 = vld [vmem:[#allocation5 + $0x114] ss:$40 sps:$4 sm:$0xff]  }
 0x245   :  { %v11181_v20 = vld [vmem:[#allocation5 + $0x614] ss:$40 sps:$4 sm:$0xff]  }
 0x246   :  { %4250 = vmatpush1.bf16.msra.mxu0 %v11125_v22  ;;  %v11179_v22 = vld [vmem:[#allocation5 + $0x610] ss:$40 sps:$4 sm:$0xff]  }
 0x247   :  { %4223 = vmatpush2.bf16.msra.mxu1 %v11122_v61  ;;  %4251 = vmatprep.subr.bf16.mxu0 %v11133_v26  ;;  %v11176_v61 = vld [vmem:[#allocation5 + $0x110] ss:$40 sps:$4 sm:$0xff]   ;;  %v11187_v26 = vld [vmem:[#allocation5 + $0x5c4] ss:$40 sps:$4 sm:$0xff]  }
 0x248   :  { %4224 = vmatprep.subr.bf16.mxu1 %v11130_v25  ;;  %v11184_v25 = vld [vmem:[#allocation5 + $0xc4] ss:$40 sps:$4 sm:$0xff]  }
 0x24a   :  { %4252 = vmatpush1.bf16.msra.mxu0 %v11131_v31  ;;  %v11185_v31 = vld [vmem:[#allocation5 + $0x5c0] ss:$40 sps:$4 sm:$0xff]  }
 0x24b   :  { %4225 = vmatpush2.bf16.msra.mxu1 %v11128_v28  ;;  %4253 = vmatprep.subr.bf16.mxu0 %v11139_v32  ;;  %v11182_v28 = vld [vmem:[#allocation5 + $0xc0] ss:$40 sps:$4 sm:$0xff]   ;;  %v11193_v32 = vld [vmem:[#allocation5 + $0x574] ss:$40 sps:$4 sm:$0xff]  }
 0x24c   :  { %4226 = vmatprep.subr.bf16.mxu1 %v11136_v7  ;;  %v11190_v7 = vld [vmem:[#allocation5 + $0x74] ss:$40 sps:$4 sm:$0xff]  }
 0x24e   :  { %4254 = vmatpush1.bf16.msra.mxu0 %v11137_v33  ;;  %v11191_v33 = vld [vmem:[#allocation5 + $0x570] ss:$40 sps:$4 sm:$0xff]  }
 0x24f   :  { %4227 = vmatpush2.bf16.msra.mxu1 %v11134_v12  ;;  %4255 = vmatprep.subr.bf16.mxu0 %v11145_v37  ;;  %v11188_v12 = vld [vmem:[#allocation5 + $0x70] ss:$40 sps:$4 sm:$0xff]   ;;  %v11199_v37 = vld [vmem:[#allocation5 + $0x524] ss:$40 sps:$4 sm:$0xff]  }
 0x250   :  { %4228 = vmatprep.subr.bf16.mxu1 %v11142_v35  ;;  %v11196_v35 = vld [vmem:[#allocation5 + $0x24] ss:$40 sps:$4 sm:$0xff]  }
 0x252   :  { %4256 = vmatpush1.bf16.msra.mxu0 %v11143_v40  ;;  %v11197_v40 = vld [vmem:[#allocation5 + $0x520] ss:$40 sps:$4 sm:$0xff]  }
 0x253   :  { %4229 = vmatpush2.bf16.msra.mxu1 %v11140_v39  ;;  %4257 = vmatprep.subr.bf16.mxu0 %v11151_v44  ;;  %v11194_v39 = vld [vmem:[#allocation5 + $0x20] ss:$40 sps:$4 sm:$0xff]   ;;  %v11205_v44 = vld [vmem:[#allocation5 + $0x9d4] ss:$40 sps:$4 sm:$0xff]  }
 0x254   :  { %4230 = vmatprep.subr.bf16.mxu1 %v11148_v43  ;;  %v11202_v43 = vld [vmem:[#allocation5 + $0x4d4] ss:$40 sps:$4 sm:$0xff]  }
 0x256   :  { %4258 = vmatpush1.bf16.msra.mxu0 %v11149_v47  ;;  %v11203_v47 = vld [vmem:[#allocation5 + $0x9d0] ss:$40 sps:$4 sm:$0xff]  }
 0x257   :  { %4231 = vmatpush2.bf16.msra.mxu1 %v11146_v46  ;;  %4286 = vmatprep.subr.bf16.mxu0 %v11154_v48  ;;  %v11200_v46 = vld [vmem:[#allocation5 + $0x4d0] ss:$40 sps:$4 sm:$0xff]   ;;  %v11208_v48 = vld [vmem:[#allocation5 + $0x484] ss:$40 sps:$4 sm:$0xff]  }
 0x258   :  { %4329 = vmatprep.subr.bf16.mxu1 %v11157_v50  ;;  %v11211_v50 = vld [vmem:[#allocation5 + $0x984] ss:$40 sps:$4 sm:$0xff]  }
 0x259   :  { %4276 = vmatmul.mubr.bf16.vlgmr.msra.gmra.mxu0 %v12431_v1 }
 0x25a   :  { %4233 = vmatmul.mubr.bf16.vlgmr.msra.gmra.mxu1 %v12367_v5  ;;  %4287 = vmatpush1.bf16.msra.mxu0 %v11152_v53  ;;  %v11170_v5 = vld [vmem:[#allocation5 + $0x160] ss:$40 sps:$4 sm:$0xff]  }
 0x25b   :  { %4330 = vmatpush1.bf16.msra.mxu1 %v11155_v57  ;;  %4288 = vmatprep.subr.bf16.mxu0 %v11160_v59  ;;  %v11206_v53 = vld [vmem:[#allocation5 + $0x480] ss:$40 sps:$4 sm:$0xff]  }
 0x25c   :  { %4331 = vmatprep.subr.bf16.mxu1 %v11163_v60  ;;  %4318 = vmatprep.mubr.bf16.mxu0 %v11901_v10  ;;  %v11209_v57 = vld [vmem:[#allocation5 + $0x980] ss:$40 sps:$4 sm:$0xff]   ;;  %v11215_v10 = vld [vmem:[#allocation5 + $0x930] ss:$40 sps:$4 sm:$0xff]  }
 0x25d   :  { %4361 = vmatprep.mubr.bf16.mxu1 %v11902_v16 }
 0x25e   :  { %4289 = vmatpush1.bf16.msra.mxu0 %v11158_v6  ;;  %v11214_v6 = vld [vmem:[#allocation5 + $0x434] ss:$40 sps:$4 sm:$0xff]  }
 0x25f   :  { %4332 = vmatpush1.bf16.msra.mxu1 %v11161_v14  ;;  %4290 = vmatprep.subr.bf16.mxu0 %v11166_v36  ;;  %v11217_v14 = vld [vmem:[#allocation5 + $0x934] ss:$40 sps:$4 sm:$0xff]  }
 0x260   :  { %4333 = vmatprep.subr.bf16.mxu1 %v11169_v3 }
 0x262   :  { %4291 = vmatpush1.bf16.msra.mxu0 %v11164_v42 }
 0x263   :  { %4334 = vmatpush1.bf16.msra.mxu1 %v11167_v9  ;;  %4292 = vmatprep.subr.bf16.mxu0 %v11172_v17  ;;  %v11212_v9 = vld [vmem:[#allocation5 + $0x430] ss:$40 sps:$4 sm:$0xff]  }
 0x264   :  { %4335 = vmatprep.subr.bf16.mxu1 %v11175_v2  ;;  %v11220_v2 = vld [vmem:[#allocation5 + $0x3e4] ss:$40 sps:$4 sm:$0xff]  }
 0x266   :  { %4293 = vmatpush1.bf16.msra.mxu0 %v11170_v5  ;;  %v11223_v5 = vld [vmem:[#allocation5 + $0x8e4] ss:$40 sps:$4 sm:$0xff]  }
 0x267   :  { %4336 = vmatpush1.bf16.msra.mxu1 %v11173_v19  ;;  %4294 = vmatprep.subr.bf16.mxu0 %v11178_v62 }
 0x268   :  { %4337 = vmatprep.subr.bf16.mxu1 %v11181_v20 }
 0x26a   :  { %4295 = vmatpush1.bf16.msra.mxu0 %v11176_v61 }
 0x26b   :  { %4338 = vmatpush1.bf16.msra.mxu1 %v11179_v22  ;;  %4296 = vmatprep.subr.bf16.mxu0 %v11184_v25  ;;  %v11218_v22 = vld [vmem:[#allocation5 + $0x3e0] ss:$40 sps:$4 sm:$0xff]  }
 0x26c   :  { %4339 = vmatprep.subr.bf16.mxu1 %v11187_v26  ;;  %v11221_v25 = vld [vmem:[#allocation5 + $0x8e0] ss:$40 sps:$4 sm:$0xff]   ;;  %v11226_v26 = vld [vmem:[#allocation5 + $0x394] ss:$40 sps:$4 sm:$0xff]  }
 0x26e   :  { %4297 = vmatpush1.bf16.msra.mxu0 %v11182_v28  ;;  %v11229_v28 = vld [vmem:[#allocation5 + $0x894] ss:$40 sps:$4 sm:$0xff]  }
 0x26f   :  { %4340 = vmatpush1.bf16.msra.mxu1 %v11185_v31  ;;  %4298 = vmatprep.subr.bf16.mxu0 %v11190_v7  ;;  %v11224_v31 = vld [vmem:[#allocation5 + $0x390] ss:$40 sps:$4 sm:$0xff]  }
 0x270   :  { %4341 = vmatprep.subr.bf16.mxu1 %v11193_v32  ;;  %v11227_v7 = vld [vmem:[#allocation5 + $0x890] ss:$40 sps:$4 sm:$0xff]   ;;  %v11232_v32 = vld [vmem:[#allocation5 + $0x344] ss:$40 sps:$4 sm:$0xff]  }
 0x272   :  { %4299 = vmatpush1.bf16.msra.mxu0 %v11188_v12  ;;  %v11235_v12 = vld [vmem:[#allocation5 + $0x844] ss:$40 sps:$4 sm:$0xff]  }
 0x273   :  { %4342 = vmatpush1.bf16.msra.mxu1 %v11191_v33  ;;  %4300 = vmatprep.subr.bf16.mxu0 %v11196_v35  ;;  %v11230_v33 = vld [vmem:[#allocation5 + $0x340] ss:$40 sps:$4 sm:$0xff]  }
 0x274   :  { %4343 = vmatprep.subr.bf16.mxu1 %v11199_v37  ;;  %v11233_v35 = vld [vmem:[#allocation5 + $0x840] ss:$40 sps:$4 sm:$0xff]   ;;  %v11238_v37 = vld [vmem:[#allocation5 + $0x2f4] ss:$40 sps:$4 sm:$0xff]  }
 0x276   :  { %4301 = vmatpush1.bf16.msra.mxu0 %v11194_v39  ;;  %v11241_v39 = vld [vmem:[#allocation5 + $0x7f4] ss:$40 sps:$4 sm:$0xff]  }
 0x277   :  { %4344 = vmatpush1.bf16.msra.mxu1 %v11197_v40  ;;  %4302 = vmatprep.subr.bf16.mxu0 %v11202_v43  ;;  %v11236_v40 = vld [vmem:[#allocation5 + $0x2f0] ss:$40 sps:$4 sm:$0xff]  }
 0x278   :  { %4345 = vmatprep.subr.bf16.mxu1 %v11205_v44  ;;  %v11239_v43 = vld [vmem:[#allocation5 + $0x7f0] ss:$40 sps:$4 sm:$0xff]   ;;  %v11244_v44 = vld [vmem:[#allocation5 + $0x2a4] ss:$40 sps:$4 sm:$0xff]  }
 0x279   :  { %v3976_v59 = vpop.f32.mrf.mxu0 }
 0x27a   :  { %v4019_v60 = vpop.f32.mrf.mxu1  ;;  %4303 = vmatpush2.bf16.msra.mxu0 %v11200_v46  ;;  %v11247_v46 = vld [vmem:[#allocation5 + $0x7a4] ss:$40 sps:$4 sm:$0xff]  }
 0x27b   :  { %v12434_v36 = vadd.f32 %v4019_v60, %v3976_v59  ;;  %4346 = vmatpush2.bf16.msra.mxu1 %v11203_v47  ;;  %v12436_v3 = vpop.f32.mrf.mxu0  ;;  %4304 = vmatprep.subr.bf16.mxu0 %v11208_v48  ;;  %v11242_v47 = vld [vmem:[#allocation5 + $0x2a0] ss:$40 sps:$4 sm:$0xff]   ;;  %v11251_v59 = vld [vmem:[#allocation5 + $0x1150] ss:$40 sps:$4 sm:$0xff]   ;;  %v11256_v60 = vld [vmem:[#allocation5 + $0xc04] ss:$40 sps:$4 sm:$0xff]  }
 0x27c   :  { %v12438_v42 = vpop.f32.mrf.mxu1  ;;  %4347 = vmatprep.subr.bf16.mxu1 %v11211_v50  ;;  %v11245_v48 = vld [vmem:[#allocation5 + $0x7a0] ss:$40 sps:$4 sm:$0xff]   ;;  %v11250_v50 = vld [vmem:[#allocation5 + $0xc54] ss:$40 sps:$4 sm:$0xff]  }
 0x27d   :  { %v3980_v16 = vpop.f32.mrf.mxu0 }
 0x27e   :  { %v4023_v17 = vpop.f32.mrf.mxu1  ;;  %4305 = vmatpush2.bf16.msra.mxu0 %v11206_v53  ;;  %v11253_v53 = vld [vmem:[#allocation5 + $0x1154] ss:$40 sps:$4 sm:$0xff]  }
 0x27f   :  { %v12440_v19 = vadd.f32 %v4023_v17, %v3980_v16  ;;  %4348 = vmatpush2.bf16.msra.mxu1 %v11209_v57  ;;  %v3982_v62 = vpop.f32.mrf.mxu0  ;;  %4306 = vmatprep.subr.bf16.mxu0 %v11214_v6  ;;  %v11248_v57 = vld [vmem:[#allocation5 + $0xc50] ss:$40 sps:$4 sm:$0xff]   ;;  %v11259_v6 = vld [vmem:[#allocation5 + $0x1104] ss:$40 sps:$4 sm:$0xff]   ;;  %v11262_v16 = vld [vmem:[#allocation5 + $0xbb4] ss:$40 sps:$4 sm:$0xff]  }
 0x280   :  { %v4025_v20 = vpop.f32.mrf.mxu1  ;;  %4349 = vmatprep.subr.bf16.mxu1 %v11217_v14  ;;  %v11254_v14 = vld [vmem:[#allocation5 + $0xc00] ss:$40 sps:$4 sm:$0xff]   ;;  %v11265_v17 = vld [vmem:[#allocation5 + $0x10b4] ss:$40 sps:$4 sm:$0xff]  }
 0x281   :  { %v12442_v61 = vadd.f32 %v4025_v20, %v3982_v62  ;;  %v11904_v62 = vld [vmem:[#allocation2 + $0x14] ss:$28 sps:$4 sm:$0xff]   ;;  %v11268_v20 = vld [vmem:[#allocation5 + $0xb64] ss:$40 sps:$4 sm:$0xff]  }
 0x282   :  { %4307 = vmatpush2.bf16.msra.mxu0 %v11212_v9  ;;  %v11257_v9 = vld [vmem:[#allocation5 + $0x1100] ss:$40 sps:$4 sm:$0xff]  }
 0x283   :  { %4350 = vmatpush2.bf16.msra.mxu1 %v11215_v10  ;;  %4308 = vmatprep.subr.bf16.mxu0 %v11220_v2  ;;  %v11903_v10 = vld [vmem:[#allocation2] ss:$28 sps:$4 sm:$0xff]   ;;  %v11260_v2 = vld [vmem:[#allocation5 + $0xbb0] ss:$40 sps:$4 sm:$0xff]  }
 0x284   :  { %4351 = vmatprep.subr.bf16.mxu1 %v11223_v5  ;;  %v11263_v5 = vld [vmem:[#allocation5 + $0x10b0] ss:$40 sps:$4 sm:$0xff]  }
 0x286   :  { %4309 = vmatpush2.bf16.msra.mxu0 %v11218_v22  ;;  %v11271_v22 = vld [vmem:[#allocation5 + $0x1064] ss:$40 sps:$4 sm:$0xff]  }
 0x287   :  { %4352 = vmatpush2.bf16.msra.mxu1 %v11221_v25  ;;  %4310 = vmatprep.subr.bf16.mxu0 %v11226_v26  ;;  %v11266_v25 = vld [vmem:[#allocation5 + $0xb60] ss:$40 sps:$4 sm:$0xff]   ;;  %v11274_v26 = vld [vmem:[#allocation5 + $0xb14] ss:$40 sps:$4 sm:$0xff]  }
 0x288   :  { %4353 = vmatprep.subr.bf16.mxu1 %v11229_v28  ;;  %v11277_v28 = vld [vmem:[#allocation5 + $0x1014] ss:$40 sps:$4 sm:$0xff]  }
 0x28a   :  { %4311 = vmatpush2.bf16.msra.mxu0 %v11224_v31  ;;  %v11272_v31 = vld [vmem:[#allocation5 + $0xb10] ss:$40 sps:$4 sm:$0xff]  }
 0x28b   :  { %4354 = vmatpush2.bf16.msra.mxu1 %v11227_v7  ;;  %4312 = vmatprep.subr.bf16.mxu0 %v11232_v32  ;;  %v11275_v7 = vld [vmem:[#allocation5 + $0x1010] ss:$40 sps:$4 sm:$0xff]   ;;  %v11280_v32 = vld [vmem:[#allocation5 + $0xac4] ss:$40 sps:$4 sm:$0xff]  }
 0x28c   :  { %4355 = vmatprep.subr.bf16.mxu1 %v11235_v12  ;;  %v11283_v12 = vld [vmem:[#allocation5 + $0xfc4] ss:$40 sps:$4 sm:$0xff]  }
 0x28e   :  { %4313 = vmatpush2.bf16.msra.mxu0 %v11230_v33  ;;  %v11278_v33 = vld [vmem:[#allocation5 + $0xac0] ss:$40 sps:$4 sm:$0xff]  }
 0x28f   :  { %4356 = vmatpush2.bf16.msra.mxu1 %v11233_v35  ;;  %4314 = vmatprep.subr.bf16.mxu0 %v11238_v37  ;;  %v11281_v35 = vld [vmem:[#allocation5 + $0xfc0] ss:$40 sps:$4 sm:$0xff]   ;;  %v11286_v37 = vld [vmem:[#allocation5 + $0xa74] ss:$40 sps:$4 sm:$0xff]  }
 0x290   :  { %4357 = vmatprep.subr.bf16.mxu1 %v11241_v39  ;;  %v11289_v39 = vld [vmem:[#allocation5 + $0xf74] ss:$40 sps:$4 sm:$0xff]  }
 0x292   :  { %4315 = vmatpush2.bf16.msra.mxu0 %v11236_v40  ;;  %v3678_v40 = vadd.f32 %v12370_v8, %v12377_v18  ;;  %v3676_v8 = vadd.f32 %v12365_v63, %v12373_v13  ;;  %v9831_v18 = vld [vmem:[#allocation8] ss:$0 sm:$0xff]  ;;  %v3680_v63 = vadd.f32 %v12375_v15, %v12381_v23  ;;  %v11304_v15 = vld [vmem:[#allocation5 + $0xe34] ss:$40 sps:$4 sm:$0xff]   ;;  %v9830_v23 = vld [vmem:[#allocation7] ss:$0 sm:$0xff] }
 0x293   :  { %4358 = vmatpush2.bf16.msra.mxu1 %v11239_v43  ;;  %4316 = vmatprep.subr.bf16.mxu0 %v11244_v44  ;;  %v11284_v43 = vld [vmem:[#allocation5 + $0xa70] ss:$40 sps:$4 sm:$0xff]  }
 0x294   :  { %4359 = vmatprep.subr.bf16.mxu1 %v11247_v46  ;;  %v11287_v44 = vld [vmem:[#allocation5 + $0xf70] ss:$40 sps:$4 sm:$0xff]   ;;  %v11292_v46 = vld [vmem:[#allocation5 + $0xa24] ss:$40 sps:$4 sm:$0xff]  }
 0x296   :  { %4317 = vmatpush2.bf16.msra.mxu0 %v11242_v47  ;;  %v11295_v47 = vld [vmem:[#allocation5 + $0xf24] ss:$40 sps:$4 sm:$0xff]  }
 0x297   :  { %4360 = vmatpush2.bf16.msra.mxu1 %v11245_v48  ;;  %4372 = vmatprep.subr.bf16.mxu0 %v11250_v50  ;;  %v3721_v48 = vadd.f32 %v12393_v38, %v3678_v40  ;;  %v11290_v50 = vld [vmem:[#allocation5 + $0xa20] ss:$40 sps:$4 sm:$0xff]   ;;  %v11296_v38 = vld [vmem:[#allocation5 + $0xed0] ss:$40 sps:$4 sm:$0xff]   ;;  %v11319_v40 = vld [vmem:[#allocation5 + $0xca4] ss:$40 sps:$4 sm:$0xff]  }
 0x298   :  { %4415 = vmatprep.subr.bf16.mxu1 %v11253_v53  ;;  %v11293_v53 = vld [vmem:[#allocation5 + $0xf20] ss:$40 sps:$4 sm:$0xff]  }
 0x299   :  { %4319 = vmatmul.mubr.bf16.vlgmr.msra.gmra.mxu0 %v11903_v10  ;;  %v11301_v10 = vld [vmem:[#allocation5 + $0xe84] ss:$40 sps:$4 sm:$0xff]  }
 0x29a   :  { %4362 = vmatmul.mubr.bf16.vlgmr.msra.gmra.mxu1 %v12415_v55  ;;  %4373 = vmatpush1.bf16.msra.mxu0 %v11248_v57  ;;  %v11269_v55 = vld [vmem:[#allocation5 + $0x1060] ss:$40 sps:$4 sm:$0xff]   ;;  %v11298_v57 = vld [vmem:[#allocation5 + $0xed4] ss:$40 sps:$4 sm:$0xff]  }
 0x29b   :  { %4416 = vmatpush1.bf16.msra.mxu1 %v11251_v59  ;;  %4374 = vmatprep.subr.bf16.mxu0 %v11256_v60  ;;  %v3764_v59 = vadd.f32 %v12387_v30, %v3721_v48  ;;  %v4105_v60 = vpop.f32.mrf.mxu1 }
 0x29c   :  { %4417 = vmatprep.subr.bf16.mxu1 %v11259_v6  ;;  %4447 = vmatprep.mubr.bf16.mxu1 %v12199_v0  ;;  %v3682_v6 = vadd.f32 %v12379_v21, %v12385_v29  ;;  %v3848_v21 = vadd.f32 %v12403_v58, %v12399_v49 }
 0x29d   :  { %4404 = vmatprep.mubr.bf16.mxu0 %v11904_v62  ;;  %v12459_v13 = vpop.f32.mrf.mxu1  ;;  %v11302_v62 = vld [vmem:[#allocation5 + $0xe30] ss:$40 sps:$4 sm:$0xff]  }
 0x29e   :  { %4375 = vmatpush1.bf16.msra.mxu0 %v11254_v14  ;;  %v3719_v14 = vadd.f32 %v12389_v51, %v3676_v8  ;;  %v3725_v30 = vadd.f32 %v12401_v52, %v3682_v6  ;;  %v11299_v51 = vld [vmem:[#allocation5 + $0xe80] ss:$40 sps:$4 sm:$0xff]   ;;  %v3723_v52 = vadd.f32 %v12397_v45, %v3680_v63  ;;  %v3891_v58 = vadd.f32 %v12413_v54, %v3848_v21 }
 0x29f   :  { %4418 = vmatpush1.bf16.msra.mxu1 %v11257_v9  ;;  %4376 = vmatprep.subr.bf16.mxu0 %v11262_v16  ;;  %v12200_v9 = vmov 0.0   ;;  %v4474_v16 = vadd.f32 %v9831_v18, %v3764_v59 }
 0x2a0   :  { %4419 = vmatprep.subr.bf16.mxu1 %v11265_v17  ;;  %v3768_v49 = vadd.f32 %v12395_v41, %v3725_v30  ;;  %v3934_v41 = vadd.f32 %v12418_v56, %v3891_v58  ;;  %v11905_v56 = vld [vmem:[#allocation10] ss:$0 sm:$0xff] }
 0x2a2   :  { %4377 = vmatpush1.bf16.msra.mxu0 %v11260_v2  ;;  %v3762_v2 = vadd.f32 %v12383_v24, %v3719_v14  ;;  %v4109_v24 = vpop.f32.mrf.mxu1 }
 0x2a3   :  { %4420 = vmatpush1.bf16.msra.mxu1 %v11263_v5  ;;  %4378 = vmatprep.subr.bf16.mxu0 %v11268_v20 }
 0x2a4   :  { %4421 = vmatprep.subr.bf16.mxu1 %v11271_v22  ;;  %v4465_v20 = vadd.f32 %v9830_v23, %v3762_v2  ;;  %v3766_v22 = vadd.f32 %v12391_v34, %v3723_v52  ;;  %v11310_v34 = vld [vmem:[#allocation5 + $0xd94] ss:$40 sps:$4 sm:$0xff]  }
 0x2a6   :  { %4379 = vmatpush1.bf16.msra.mxu0 %v11266_v25 }
 0x2a7   :  { %4422 = vmatpush1.bf16.msra.mxu1 %v11269_v55  ;;  %4380 = vmatprep.subr.bf16.mxu0 %v11274_v26  ;;  %v4475_v55 = vadd.f32 %v9831_v18, %v3768_v49 }
 0x2a8   :  { %4423 = vmatprep.subr.bf16.mxu1 %v11277_v28  ;;  %v11307_v28 = vld [vmem:[#allocation5 + $0xde4] ss:$40 sps:$4 sm:$0xff]  }
 0x2aa   :  { %4381 = vmatpush1.bf16.msra.mxu0 %v11272_v31  ;;  %v4111_v31 = vpop.f32.mrf.mxu1 }
 0x2ab   :  { %4424 = vmatpush1.bf16.msra.mxu1 %v11275_v7  ;;  %4382 = vmatprep.subr.bf16.mxu0 %v11280_v32  ;;  %v4466_v32 = vadd.f32 %v9830_v23, %v3766_v22 }
 0x2ac   :  { %4425 = vmatprep.subr.bf16.mxu1 %v11283_v12  ;;  %v4483_v12 = vadd.f32 %v11905_v56, %v3934_v41 }
 0x2ae   :  { %4383 = vmatpush1.bf16.msra.mxu0 %v11278_v33  ;;  %v11313_v33 = vld [vmem:[#allocation5 + $0xd44] ss:$40 sps:$4 sm:$0xff]  }
 0x2af   :  { %4426 = vmatpush1.bf16.msra.mxu1 %v11281_v35  ;;  %4384 = vmatprep.subr.bf16.mxu0 %v11286_v37  ;;  %v11311_v35 = vld [vmem:[#allocation5 + $0xd40] ss:$40 sps:$4 sm:$0xff]   ;;  %v11316_v37 = vld [vmem:[#allocation5 + $0xcf4] ss:$40 sps:$4 sm:$0xff]  }
 0x2b0   :  { %4427 = vmatprep.subr.bf16.mxu1 %v11289_v39  ;;  %v11314_v39 = vld [vmem:[#allocation5 + $0xcf0] ss:$40 sps:$4 sm:$0xff]  }
 0x2b2   :  { %4385 = vmatpush1.bf16.msra.mxu0 %v11284_v43  ;;  %v11317_v43 = vld [vmem:[#allocation5 + $0xca0] ss:$40 sps:$4 sm:$0xff]  }
 0x2b3   :  { %4428 = vmatpush1.bf16.msra.mxu1 %v11287_v44  ;;  %4386 = vmatprep.subr.bf16.mxu0 %v11292_v46  ;;  %v11906_v44 = vld [vmem:[#allocation2 + $0x10] ss:$28 sps:$4 sm:$0xff]  }
 0x2b4   :  { %4429 = vmatprep.subr.bf16.mxu1 %v11295_v47 }
 0x2b6   :  { %4387 = vmatpush1.bf16.msra.mxu0 %v11290_v50 }
 0x2b7   :  { %4430 = vmatpush1.bf16.msra.mxu1 %v11293_v53  ;;  %4388 = vmatprep.subr.bf16.mxu0 %v11298_v57 }
 0x2b8   :  { %10365 = vmatprep.subr.mxu1 %v12200_v9 }
 0x2b9   :  { %v4062_v17 = vpop.f32.mrf.mxu0 }
 0x2ba   :  { %4448 = vmatmul.mubr.bf16.vlgmr.msra.gmra.mxu1 %v12431_v1  ;;  %v4063_v29 = vadd.f32 %v4062_v17, %v12434_v36  ;;  %4389 = vmatpush2.bf16.msra.mxu0 %v11296_v38  ;;  %v4022_v38 = vadd.f32 %v12438_v42, %v12436_v3 }
 0x2bb   :  { %10366 = vmatpush3.xpose.msra.mxu1 %v4474_v16  ;;  %v12467_v5 = vpop.f32.mrf.mxu0  ;;  %4390 = vmatprep.subr.bf16.mxu0 %v11301_v10 }
 0x2bc   :  { %10367 = vmatprep.mubr.msk.f32.mxu1 %vm12201_vm0, %v12200_v9  ;;  %v12473_v1 = vadd.f32 %v4105_v60, %v4063_v29  ;;  %10370 = vmatprep.subr.mxu1 %v12200_v9  ;;  %v4065_v14 = vadd.f32 %v12467_v5, %v4022_v38 }
 0x2bd   :  { %v4066_v36 = vpop.f32.mrf.mxu0 }
 0x2be   :  { %v4067_v45 = vadd.f32 %v4066_v36, %v12440_v19  ;;  %4391 = vmatpush2.bf16.msra.mxu0 %v11299_v51  ;;  %v11305_v19 = vld [vmem:[#allocation5 + $0xde0] ss:$40 sps:$4 sm:$0xff]   ;;  %v4108_v10 = vadd.f32 %v12459_v13, %v4065_v14 }
 0x2bf   :  { %v4068_v25 = vpop.f32.mrf.mxu0  ;;  %4392 = vmatprep.subr.bf16.mxu0 %v11304_v15 }
 0x2c0   :  { %v12479_v26 = vadd.f32 %v4109_v24, %v4067_v45  ;;  %v4069_v54 = vadd.f32 %v4068_v25, %v12442_v61  ;;  %v11308_v61 = vld [vmem:[#allocation5 + $0xd90] ss:$40 sps:$4 sm:$0xff]   ;;  %v5093_v51 = vpack.c.bf16 %v4108_v10, %v4108_v10 }
 0x2c2   :  { %10368 = vmatmul.mubr.f32.vlgmr.msra.gmra.mxu1 %v4465_v20  ;;  %v12482_v7 = vadd.f32 %v4111_v31, %v4069_v54  ;;  %4393 = vmatpush2.bf16.msra.mxu0 %v11302_v62  ;;  %v5153_v36 = vsel %vm5145_vm1, %v5093_v51, 0 }
 0x2c3   :  { %10371 = vmatpush3.xpose.msra.mxu1 %v4475_v55  ;;  %10372 = vmatprep.mubr.msk.f32.mxu1 %vm12201_vm0, %v12200_v9 }
 0x2c4   :  { %10375 = vmatprep.subr.mxu1 %v12200_v9  ;;  %4394 = vmatprep.subr.bf16.mxu0 %v11307_v28 }
 0x2c6   :  { %10373 = vmatmul.mubr.f32.vlgmr.msra.gmra.mxu1 %v4466_v32  ;;  %4395 = vmatpush2.bf16.msra.mxu0 %v11305_v19 }
 0x2c7   :  { %10376 = vmatpush3.msra.mxu1 %v4483_v12  ;;  %4396 = vmatprep.subr.bf16.mxu0 %v11310_v34 }
 0x2c8   :  { %10377 = vmatprep.mubr.msk.f32.mxu1 %vm12201_vm0, %v12200_v9  ;;  %10380 = vmatprep.subr.mxu1 %v12200_v9 }
 0x2ca   :  { %4397 = vmatpush2.bf16.msra.mxu0 %v11308_v61 }
 0x2cb   :  { %4398 = vmatprep.subr.bf16.mxu0 %v11313_v33 }
 0x2ce   :  { %4399 = vmatpush2.bf16.msra.mxu0 %v11311_v35 }
 0x2cf   :  { %4400 = vmatprep.subr.bf16.mxu0 %v11316_v37 }
 0x2d2   :  { %4401 = vmatpush2.bf16.msra.mxu0 %v11314_v39 }
 0x2d3   :  { %4402 = vmatprep.subr.bf16.mxu0 %v11319_v40 }
 0x2d6   :  { %4403 = vmatpush2.bf16.msra.mxu0 %v11317_v43 }
 0x2d9   :  { %4405 = vmatmul.mubr.bf16.vlgmr.msra.gmra.mxu0 %v11906_v44 }
 0x2da   :  { %5240 = vmatprep.mubr.bf16.mxu0 %v12199_v0  ;;  %v4148_v46 = vpop.f32.mrf.mxu1 }
 0x2dc   :  { %v4150_v47 = vpop.f32.mrf.mxu1 }
 0x2de   :  { %v4152_v50 = vpop.f32.mrf.mxu1 }
 0x2e0   :  { %v4154_v18 = vpop.f32.mrf.mxu1 }
 0x2f9   :  { %v4191_v48 = vpop.f32.mrf.mxu0 }
 0x2fa   :  { %v4192_v16 = vadd.f32 %v4191_v48, %v4148_v46 }
 0x2fb   :  { %v4193_v53 = vpop.f32.mrf.mxu0 }
 0x2fc   :  { %v4194_v57 = vadd.f32 %v4193_v53, %v4150_v47 }
 0x2fd   :  { %v4195_v59 = vpop.f32.mrf.mxu0 }
 0x2fe   :  { %v4196_v8 = vadd.f32 %v4195_v59, %v4152_v50 }
 0x2ff   :  { %v4197_v60 = vpop.f32.mrf.mxu0 }
 0x300   :  { %v4198_v6 = vadd.f32 %v4197_v60, %v4154_v18 }
 0x319   :  { %v4277_v63 = vpop.f32.mrf.mxu0 }
 0x31a   :  { %v4234_v30 = vpop.f32.mrf.mxu1 }
 0x31b   :  { %v4235_v17 = vadd.f32 %v4234_v30, %v4192_v16  ;;  %v4279_v29 = vpop.f32.mrf.mxu0 }
 0x31c   :  { %v4236_v21 = vpop.f32.mrf.mxu1 }
 0x31d   :  { %v4237_v2 = vadd.f32 %v4236_v21, %v4194_v57  ;;  %v4278_v52 = vadd.f32 %v4277_v63, %v4235_v17  ;;  %v4281_v23 = vpop.f32.mrf.mxu0 }
 0x31e   :  { %v4238_v15 = vpop.f32.mrf.mxu1 }
 0x31f   :  { %v5094_v49 = vpack.c.bf16 %v4278_v52, %v4278_v52  ;;  %v4239_v58 = vadd.f32 %v4238_v15, %v4196_v8  ;;  %v12495_v24 = vadd.f32 %v4279_v29, %v4237_v2  ;;  %v4283_v42 = vpop.f32.mrf.mxu0 }
 0x320   :  { %v4240_v3 = vpop.f32.mrf.mxu1 }
 0x321   :  { %v4241_v5 = vadd.f32 %v4240_v3, %v4198_v6  ;;  %v12497_v13 = vadd.f32 %v4281_v23, %v4239_v58  ;;  %9844 = vmatprep.subr.msk.bf16.mxu0 %vm5145_vm1, %v5094_v49 }
 0x322   :  { %5223 = vmatpush1.bf16.msra.mxu0 %v5153_v36 }
 0x323   :  { %v12501_v45 = vadd.f32 %v4283_v42, %v4241_v5  ;;  %10400 = vmatprep.subr.bf16.mxu0 %v12200_v9  ;;  %v4794_v42 = vlaneseq }
 0x325   :  { %v12524_v5 = vshrl.u32 %v4794_v42, 7  ;;  %v4797_v36 = vand.u32 127, %v4794_v42  ;;  %v11326_v42 = vld [vmem:[#allocation16 + $0x150] ss:$28 sps:$4 sm:$0xff]  }
 0x327   :  { %vm4798_vm3 = vcmp.eq.s32.totalorder %v12524_v5, %v4797_v36 }
 0x359   :  { %v4320_v62 = vpop.f32.mrf.mxu0 }
 0x35a   :  { %v4363_v20 = vpop.f32.mrf.mxu1 }
 0x35b   :  { %v4322_v22 = vpop.f32.mrf.mxu0  ;;  %v4364_v44 = vadd.f32 %v4363_v20, %v4320_v62 }
 0x35c   :  { %v4365_v25 = vpop.f32.mrf.mxu1 }
 0x35d   :  { %v4366_v55 = vadd.f32 %v4365_v25, %v4322_v22  ;;  %v4324_v41 = vpop.f32.mrf.mxu0  ;;  %v4949_v22 = vld [vmem:[#allocation11] sm:$0xff] }
 0x35e   :  { %v4367_v54 = vpop.f32.mrf.mxu1 }
 0x35f   :  { %v4368_v28 = vadd.f32 %v4367_v54, %v4324_v41  ;;  %v4326_v31 = vpop.f32.mrf.mxu0  ;;  %v5092_v41 = vpack.c.bf16 %v12473_v1, %v12473_v1 }
 0x360   :  { %v4369_v19 = vpop.f32.mrf.mxu1 }
 0x361   :  { %v4370_v32 = vadd.f32 %v4369_v19, %v4326_v31 }
 0x37a   :  { %v4449_v34 = vpop.f32.mrf.mxu1 }
 0x37c   :  { %v4451_v56 = vpop.f32.mrf.mxu1 }
 0x37e   :  { %v4453_v12 = vpop.f32.mrf.mxu1 }
 0x380   :  { %v4455_v61 = vpop.f32.mrf.mxu1 }
 0x382   :  { %v4551_v33 = vpop.f32.mrf.mxu1 }
 0x383   :  { %v4626_v35 = vsel %vm4625_vm2, %v4551_v33, -inf }
 0x384   :  { %4627 = vmax.xlane.f32.xlu0 %v4626_v35  ;;  %v10369_v37 = vpop.f32.mrf.mxu1 }
 0x386   :  { %v4621_v39 = vpop.f32.mrf.mxu1 }
 0x387   :  { %v4629_v40 = vsel %vm4625_vm2, %v4621_v39, -inf }
 0x388   :  { %4630 = vmax.xlane.f32.xlu0 %v4629_v40  ;;  %v10374_v43 = vpop.f32.mrf.mxu1 }
 0x399   :  { %v4406_v46 = vpop.f32.mrf.mxu0 }
 0x39a   :  { %v4407_v47 = vadd.f32 %v4406_v46, %v4364_v44 }
 0x39b   :  { %v4408_v48 = vpop.f32.mrf.mxu0 }
 0x39c   :  { %v12506_v50 = vadd.f32 %v4449_v34, %v4407_v47  ;;  %v4409_v53 = vadd.f32 %v4408_v48, %v4366_v55  ;;  %v12556_v48 = vsub.s32 %v4797_v36, %v12524_v5  ;;  %v11329_v36 = vld [vmem:[#allocation16 + $0x4d0] ss:$28 sps:$4 sm:$0xff]  }
 0x39d   :  { %v4410_v57 = vpop.f32.mrf.mxu0 }
 0x39e   :  { %v12508_v59 = vadd.f32 %v4451_v56, %v4409_v53  ;;  %v4411_v8 = vadd.f32 %v4410_v57, %v4368_v28  ;;  %v5091_v28 = vpack.c.bf16 %v12423_v11, %v12423_v11  ;;  %v5096_v34 = vpack.c.bf16 %v12506_v50, %v12506_v50  ;;  %v9841_v56 = vld [vmem:[#allocation13] ss:$0 sm:$0xff] }
 0x39f   :  { %v4412_v18 = vpop.f32.mrf.mxu0 }
 0x3a0   :  { %v12510_v60 = vadd.f32 %v4453_v12, %v4411_v8  ;;  %v4413_v6 = vadd.f32 %v4412_v18, %v4370_v32  ;;  %v5147_v32 = vsel %vm5145_vm1, %v5091_v28, 0  ;;  %v5095_v8 = vpack.c.bf16 %v12495_v24, %v12495_v24  ;;  %v11346_v28 = vld [vmem:[#allocation16 + $0xac] ss:$28 sps:$4 sm:$0xff]  }
 0x3a1   :  { %v5097_v18 = vpack.c.bf16 %v12508_v59, %v12508_v59  ;;  %v5100_v59 = vpack.c.bf16 %v12482_v7, %v12482_v7  ;;  %v5102_v7 = vpack.c.bf16 %v12501_v45, %v12501_v45  ;;  %v11320_v45 = vld [vmem:[#allocation16 + $0x188] ss:$28 sps:$4 sm:$0xff]  }
 0x3a2   :  { %v12512_v38 = vadd.f32 %v4455_v61, %v4413_v6 }
 0x3a3   :  { %v5165_v24 = vsel %vm5145_vm1, %v5097_v18, 0  ;;  %v11377_v18 = vld [vmem:[#allocation16 + $0x690] ss:$28 sps:$4 sm:$0xff]  }
 0x40d   :  { %v4628_v14 = vpop.xlane.xlu0 %4627 }
 0x40e   :  { %v4632_v10 = vsub.f32 %v4551_v33, %v4628_v14 }
 0x410   :  { %v4634_v16 = vmul.f32 1.442695, %v4632_v10  ;;  %v5099_v10 = vpack.c.bf16 %v12479_v26, %v12479_v26 }
 0x411   :  { %v4631_v30 = vpop.xlane.xlu0 %4630 }
 0x412   :  { %11880 = vpow2.f32 %v4634_v16  ;;  %v4633_v63 = vsub.f32 %v4621_v39, %v4631_v30  ;;  %v5159_v16 = vsel %vm5145_vm1, %v5095_v8, 0  ;;  %v5101_v30 = vpack.c.bf16 %v12497_v13, %v12497_v13  ;;  %v11374_v8 = vld [vmem:[#allocation16 + $0x310] ss:$28 sps:$4 sm:$0xff]  }
 0x413   :  { %v5098_v13 = vpack.c.bf16 %v12428_v4, %v12428_v4 }
 0x414   :  { %v4636_v17 = vmul.f32 1.442695, %v4633_v63 }
 0x416   :  { %11882 = vpow2.f32 %v4636_v17 }
 0x41f   :  { %v11881_v21 = vpop.eup %11880 }
 0x420   :  { %v4638_v29 = vsel %vm4625_vm2, %v11881_v21, 0.0 }
 0x421   :  { %4639 = vadd.xlane.f32.xlu1 %v4638_v29  ;;  %v5103_v29 = vpack.c.bf16 %v12510_v60, %v12510_v60  ;;  %v5104_v60 = vpack.c.bf16 %v12512_v38, %v12512_v38  ;;  %v11323_v38 = vld [vmem:[#allocation16 + $0x508] ss:$28 sps:$4 sm:$0xff]  }
 0x423   :  { %v11883_v51 = vpop.eup %11882 }
 0x424   :  { %v4641_v2 = vsel %vm4625_vm2, %v11883_v51, 0.0 }
 0x425   :  { %4642 = vadd.xlane.f32.xlu1 %v4641_v2 }
 0x4aa   :  { %v4640_v52 = vpop.xlane.xlu1 %4639 }
 0x4ab   :  { %11884 = vrcp.f32 %v4640_v52  ;;  %v11322_v52 = vld [vmem:[#allocation16 + $0x18c] ss:$28 sps:$4 sm:$0xff]  }
 0x4ae   :  { %v4643_v15 = vpop.xlane.xlu1 %4642 }
 0x4af   :  { %11886 = vrcp.f32 %v4643_v15  ;;  %v11325_v15 = vld [vmem:[#allocation16 + $0x50c] ss:$28 sps:$4 sm:$0xff]  }
 0x4b8   :  { %v11885_v23 = vpop.eup %11884 }
 0x4b9   :  { %v4646_v49 = vmul.f32 %v11885_v23, %v11881_v21  ;;  %v5334_v21 = vsel %vm5145_vm1, %v5098_v13, 0  ;;  %v5346_v23 = vsel %vm5145_vm1, %v5102_v7, 0  ;;  %v11386_v13 = vld [vmem:[#allocation16 + $0x2a0] ss:$28 sps:$4 sm:$0xff]   ;;  %v11398_v7 = vld [vmem:[#allocation16 + $0x230] ss:$28 sps:$4 sm:$0xff]  }
 0x4bb   :  { %10378 = vmatmul.mubr.msk.f32.vlgmr.msra.gmra.mxu1 %vm4625_vm2, %v4646_v49  ;;  %v5352_v49 = vsel %vm5145_vm1, %v5104_v60, 0  ;;  %v11401_v60 = vld [vmem:[#allocation16 + $0x5b0] ss:$28 sps:$4 sm:$0xff]  }
 0x4bc   :  { %v11887_v58 = vpop.eup %11886  ;;  %10381 = vmatpush3.msra.mxu1 %v12426_v27  ;;  %10382 = vmatprep.mubr.msk.f32.mxu1 %vm12201_vm0, %v12200_v9  ;;  %v4799_v27 = vsel %vm4798_vm3, 1.0, %v12200_v9 }
 0x4bd   :  { %v4647_v3 = vmul.f32 %v11887_v58, %v11883_v51  ;;  %10385 = vmatprep.subr.mxu1 %v12200_v9  ;;  %v5340_v51 = vsel %vm5145_vm1, %v5100_v59, 0  ;;  %v11328_v58 = vld [vmem:[#allocation16 + $0x154] ss:$28 sps:$4 sm:$0xff]   ;;  %v11389_v59 = vld [vmem:[#allocation16 + $0x620] ss:$28 sps:$4 sm:$0xff]  }
 0x4bf   :  { %10383 = vmatmul.mubr.msk.f32.vlgmr.msra.gmra.mxu1 %vm4625_vm2, %v4647_v3  ;;  %v11331_v3 = vld [vmem:[#allocation16 + $0x4d4] ss:$28 sps:$4 sm:$0xff]  }
 0x4c0   :  { %10387 = vmatprep.mubr.msk.f32.mxu1 %vm12201_vm0, %v12200_v9 }
 0x57b   :  { %v4717_v62 = vpop.f32.mrf.mxu1 }
 0x57c   :  { %10386 = vmatpush3.xpose.msk.msra.mxu1 %vm4625_vm2, %v4717_v62  ;;  %v11334_v62 = vld [vmem:[#allocation16 + $0x11c] ss:$28 sps:$4 sm:$0xff]  }
 0x57d   :  { %v10379_v20 = vpop.f32.mrf.mxu1  ;;  %10390 = vmatprep.subr.mxu1 %v12200_v9 }
 0x57e   :  { %v11332_v20 = vld [vmem:[#allocation16 + $0x118] ss:$28 sps:$4 sm:$0xff]  }
 0x57f   :  { %v4790_v25 = vpop.f32.mrf.mxu1  ;;  %10388 = vmatmul.mubr.msk.f32.vlgmr.msra.gmra.mxu1 %vm4625_vm2, %v4799_v27 }
 0x580   :  { %10391 = vmatpush3.xpose.msk.msra.mxu1 %vm4625_vm2, %v4790_v25  ;;  %10392 = vmatprep.mubr.msk.f32.mxu1 %vm12201_vm0, %v12200_v9  ;;  %v11340_v25 = vld [vmem:[#allocation16 + $0xe4] ss:$28 sps:$4 sm:$0xff]  }
 0x581   :  { %v10384_v55 = vpop.f32.mrf.mxu1  ;;  %10395 = vmatprep.subr.mxu1 %v4949_v22 }
 0x582   :  { %v11343_v55 = vld [vmem:[#allocation16 + $0x464] ss:$28 sps:$4 sm:$0xff]  }
 0x583   :  { %10393 = vmatmul.mubr.msk.f32.vlgmr.msra.gmra.mxu1 %vm4625_vm2, %v4799_v27  ;;  %v11337_v27 = vld [vmem:[#allocation16 + $0x49c] ss:$28 sps:$4 sm:$0xff]  }
 0x584   :  { %10396 = vmatpush3.msra.mxu1 %v4949_v22  ;;  %v11335_v22 = vld [vmem:[#allocation16 + $0x498] ss:$28 sps:$4 sm:$0xff]  }
 0x585   :  { %9842 = vmatprep.subr.msk.bf16.mxu1 %vm5145_vm1, %v5092_v41  ;;  %v11338_v41 = vld [vmem:[#allocation16 + $0xe0] ss:$28 sps:$4 sm:$0xff]  }
 0x63f   :  { %v4872_v54 = vpop.f32.mrf.mxu1 }
 0x640   :  { %10397 = vmatprep.mubr.msk.f32.mxu1 %vm4625_vm2, %v4872_v54  ;;  %v11341_v54 = vld [vmem:[#allocation16 + $0x460] ss:$28 sps:$4 sm:$0xff]  }
 0x641   :  { %v10389_v31 = vpop.f32.mrf.mxu1 }
 0x642   :  { %v11349_v31 = vld [vmem:[#allocation16 + $0x42c] ss:$28 sps:$4 sm:$0xff]  }
 0x643   :  { %v4945_v19 = vpop.f32.mrf.mxu1 }
 0x644   :  { %10398 = vmatmul.mubr.msk.f32.vlgmr.msra.gmra.mxu1 %vm4625_vm2, %v4945_v19  ;;  %v11344_v19 = vld [vmem:[#allocation16 + $0xa8] ss:$28 sps:$4 sm:$0xff]  }
 0x645   :  { %5182 = vmatpush1.bf16.msra.mxu1 %v5147_v32  ;;  %v10394_v1 = vpop.f32.mrf.mxu1  ;;  %5199 = vmatprep.mubr.bf16.mxu1 %v12199_v0  ;;  %v11347_v32 = vld [vmem:[#allocation16 + $0x428] ss:$28 sps:$4 sm:$0xff]  }
 0x646   :  { %9846 = vmatprep.subr.msk.bf16.mxu1 %vm5145_vm1, %v5096_v34  ;;  %v11352_v34 = vld [vmem:[#allocation16 + $0x74] ss:$28 sps:$4 sm:$0xff]  }
 0x647   :  { %v11355_v1 = vld [vmem:[#allocation16 + $0x3f4] ss:$28 sps:$4 sm:$0xff]  }
 0x704   :  { %v10399_v12 = vpop.f32.mrf.mxu1 }
 0x705   :  { %v5039_v11 = vadd.f32 %v10399_v12, %v9841_v56  ;;  %v11353_v12 = vld [vmem:[#allocation16 + $0x3f0] ss:$28 sps:$4 sm:$0xff]  }
 0x706   :  { %v5022_v61 = vpop.f32.mrf.mxu1 }
 0x707   :  { %v5038_v33 = vadd.f32 %v9841_v56, %v5022_v61  ;;  %v5043_v35 = vsel %vm4798_vm3, 1.0, %v5039_v11  ;;  %v11350_v56 = vld [vmem:[#allocation16 + $0x70] ss:$28 sps:$4 sm:$0xff]   ;;  %v11358_v11 = vld [vmem:[#allocation16 + $0x3c] ss:$28 sps:$4 sm:$0xff]  }
 0x708   :  { %v5047_v37 = vsel %vm4625_vm2, %v5043_v35, 0.0  ;;  %v11361_v61 = vld [vmem:[#allocation16 + $0x3bc] ss:$28 sps:$4 sm:$0xff]  }
 0x709   :  { %5048 = vadd.xlane.f32.xlu1 %v5047_v37  ;;  %v5042_v39 = vsel %vm4798_vm3, 1.0, %v5038_v33  ;;  %v11356_v33 = vld [vmem:[#allocation16 + $0x38] ss:$28 sps:$4 sm:$0xff]   ;;  %v11364_v37 = vld [vmem:[#allocation16 + $0x4] ss:$28 sps:$4 sm:$0xff]  }
 0x70a   :  { %v5044_v40 = vsel %vm4625_vm2, %v5042_v39, 0.0 }
 0x70b   :  { %5045 = vadd.xlane.f32.xlu0 %v5044_v40  ;;  %v11362_v40 = vld [vmem:[#allocation16] ss:$28 sps:$4 sm:$0xff]  }
 0x792   :  { %v5049_v46 = vpop.xlane.xlu1 %5048 }
 0x793   :  { %v5051_v47 = vmax.f32 %v5049_v46, 1.0  ;;  %v11373_v46 = vld [vmem:[#allocation16 + $0x6cc] ss:$28 sps:$4 sm:$0xff]  }
 0x794   :  { %v5046_v43 = vpop.xlane.xlu0 %5045 }
 0x795   :  { %v5050_v44 = vmax.f32 %v5046_v43, 1.0  ;;  %v11365_v43 = vld [vmem:[#allocation16 + $0x380] ss:$28 sps:$4 sm:$0xff]  }
 0x797   :  { %11888 = vrsqrt.f32 %v5050_v44  ;;  %v11370_v44 = vld [vmem:[#allocation16 + $0x34c] ss:$28 sps:$4 sm:$0xff]  }
 0x798   :  { %11890 = vrsqrt.f32 %v5051_v47  ;;  %v11368_v47 = vld [vmem:[#allocation16 + $0x348] ss:$28 sps:$4 sm:$0xff]  }
 0x7a4   :  { %v11889_v50 = vpop.eup %11888 }
 0x7a5   :  { %v5054_v53 = vmul.f32 %v11889_v50, %v5042_v39  ;;  %v5061_v57 = vrot.slane %v11889_v50, %v12556_v48  ;;  %v11891_v26 = vpop.eup %11890  ;;  %v11367_v39 = vld [vmem:[#allocation16 + $0x384] ss:$28 sps:$4 sm:$0xff]  }
 0x7a6   :  { %v5055_v63 = vmul.f32 %v11891_v26, %v5043_v35  ;;  %v5065_v17 = vrot.slane %v11891_v26, %v12556_v48  ;;  %v11359_v35 = vld [vmem:[#allocation16 + $0x3b8] ss:$28 sps:$4 sm:$0xff]   ;;  %v11371_v50 = vld [vmem:[#allocation16 + $0x6c8] ss:$28 sps:$4 sm:$0xff]  }
 0x7a7   :  { %v5087_v6 = vmul.f32 %v5061_v57, %v5054_v53  ;;  %v11376_v53 = vld [vmem:[#allocation16 + $0x314] ss:$28 sps:$4 sm:$0xff]   ;;  %v11391_v26 = vld [vmem:[#allocation16 + $0x624] ss:$28 sps:$4 sm:$0xff]  }
 0x7a8   :  { %v5088_v4 = vmul.f32 %v5065_v17, %v5055_v63  ;;  %v11379_v57 = vld [vmem:[#allocation16 + $0x694] ss:$28 sps:$4 sm:$0xff]   ;;  %v11394_v63 = vld [vmem:[#allocation16 + $0x26c] ss:$28 sps:$4 sm:$0xff]  }
 0x7a9   :  { %v12563_v14 = vpack.c.bf16 %v5087_v6, %v5087_v6  ;;  %v11382_v6 = vld [vmem:[#allocation16 + $0x2dc] ss:$28 sps:$4 sm:$0xff]   ;;  %v11397_v17 = vld [vmem:[#allocation16 + $0x5ec] ss:$28 sps:$4 sm:$0xff]  }
 0x7aa   :  { %v12601_v2 = vpack.c.bf16 %v5088_v4, %v5088_v4  ;;  %v11403_v4 = vld [vmem:[#allocation16 + $0x5b4] ss:$28 sps:$4 sm:$0xff]  }
 0x7ab   :  { %9843 = vmatmul.mubr.msk.bf16.vlgmr.msra.gmra.mxu1 %vm4625_vm2, %v12563_v14  ;;  %9845 = vmatmul.mubr.msk.bf16.vlgmr.msra.gmra.mxu0 %vm4625_vm2, %v12563_v14 }
 0x7ac   :  { %5264 = vmatpush1.bf16.msra.mxu1 %v5159_v16  ;;  %10401 = vmatpush3.bf16.msra.mxu0 %v5165_v24  ;;  %v11380_v16 = vld [vmem:[#allocation16 + $0x2d8] ss:$28 sps:$4 sm:$0xff]   ;;  %v11388_v24 = vld [vmem:[#allocation16 + $0x2a4] ss:$28 sps:$4 sm:$0xff]  }
 0x7ad   :  { %9849 = vmatprep.subr.msk.bf16.mxu1 %vm5145_vm1, %v5099_v10  ;;  %9851 = vmatprep.subr.msk.bf16.mxu0 %vm5145_vm1, %v5101_v30  ;;  %v11385_v10 = vld [vmem:[#allocation16 + $0x65c] ss:$28 sps:$4 sm:$0xff]  }
 0x7ae   :  { %5281 = vmatprep.mubr.bf16.mxu1 %v12199_v0  ;;  %10402 = vmatprep.mubr.msk.bf16.mxu0 %vm12201_vm0, %v12200_v9  ;;  %v11383_v30 = vld [vmem:[#allocation16 + $0x658] ss:$28 sps:$4 sm:$0xff]  }
 0x7b3   :  { %9847 = vmatmul.mubr.msk.bf16.vlgmr.msra.gmra.mxu1 %vm4625_vm2, %v12563_v14  ;;  %10403 = vmatmul.mubr.msk.bf16.vlgmr.msra.gmra.mxu0 %vm4625_vm2, %v12563_v14 }
 0x7b4   :  { %5369 = vmatpush1.bf16.msra.mxu1 %v5334_v21  ;;  %5410 = vmatpush1.bf16.msra.mxu0 %v5340_v51  ;;  %v11392_v21 = vld [vmem:[#allocation16 + $0x268] ss:$28 sps:$4 sm:$0xff]   ;;  %v11400_v51 = vld [vmem:[#allocation16 + $0x234] ss:$28 sps:$4 sm:$0xff]  }
 0x7b5   :  { %9853 = vmatprep.subr.msk.bf16.mxu1 %vm5145_vm1, %v5103_v29  ;;  %5386 = vmatprep.mubr.bf16.mxu1 %v12199_v0  ;;  %v11395_v29 = vld [vmem:[#allocation16 + $0x5e8] ss:$28 sps:$4 sm:$0xff]  }
 0x7b6   :  { %5427 = vmatprep.mubr.bf16.mxu0 %v12199_v0  ;;  %10406 = vmatprep.subr.bf16.mxu0 %v12200_v9 }
 0x7bb   :  { %9850 = vmatmul.mubr.msk.bf16.vlgmr.msra.gmra.mxu1 %vm4625_vm2, %v12601_v2  ;;  %9852 = vmatmul.mubr.msk.bf16.vlgmr.msra.gmra.mxu0 %vm4625_vm2, %v12601_v2 }
 0x7bc   :  { %5451 = vmatpush1.bf16.msra.mxu1 %v5346_v23  ;;  %10407 = vmatpush3.bf16.msra.mxu0 %v5352_v49  ;;  %v11404_v23 = vld [vmem:[#allocation16 + $0x1f8] ss:$28 sps:$4 sm:$0xff]  }
 0x7bd   :  { %5468 = vmatprep.mubr.bf16.mxu1 %v12199_v0  ;;  %10408 = vmatprep.mubr.msk.bf16.mxu0 %vm12201_vm0, %v12200_v9  ;;  %v11407_v49 = vld [vmem:[#allocation16 + $0x578] ss:$28 sps:$4 sm:$0xff]  }
 0x7be   :  { %8002 = vmatprep.subr.bf16.mxu1 %v11322_v52  ;;  %8045 = vmatprep.subr.bf16.mxu0 %v11325_v15  ;;  %v11406_v52 = vld [vmem:[#allocation16 + $0x1fc] ss:$28 sps:$4 sm:$0xff]  }
 0x7bf   :  { %v11409_v15 = vld [vmem:[#allocation16 + $0x57c] ss:$28 sps:$4 sm:$0xff]  }
 0x7c3   :  { %9854 = vmatmul.mubr.msk.bf16.vlgmr.msra.gmra.mxu1 %vm4625_vm2, %v12601_v2  ;;  %10409 = vmatmul.mubr.msk.bf16.vlgmr.msra.gmra.mxu0 %vm4625_vm2, %v12601_v2 }
 0x7c4   :  { %8003 = vmatpush1.bf16.msra.mxu1 %v11320_v45  ;;  %8046 = vmatpush1.bf16.msra.mxu0 %v11323_v38  ;;  %v11412_v45 = vld [vmem:[#allocation16 + $0x1c4] ss:$28 sps:$4 sm:$0xff]  }
 0x7c5   :  { %8004 = vmatprep.subr.bf16.mxu1 %v11328_v58  ;;  %8047 = vmatprep.subr.bf16.mxu0 %v11331_v3  ;;  %v11415_v38 = vld [vmem:[#allocation16 + $0x544] ss:$28 sps:$4 sm:$0xff]  }
 0x7c6   :  { %v11410_v58 = vld [vmem:[#allocation16 + $0x1c0] ss:$28 sps:$4 sm:$0xff]  }
 0x7c7   :  { %v11413_v3 = vld [vmem:[#allocation16 + $0x540] ss:$28 sps:$4 sm:$0xff]  }
 0x7c8   :  { %8005 = vmatpush1.bf16.msra.mxu1 %v11326_v42  ;;  %8048 = vmatpush1.bf16.msra.mxu0 %v11329_v36  ;;  %v11418_v42 = vld [vmem:[#allocation16 + $0x88c] ss:$28 sps:$4 sm:$0xff]  }
 0x7c9   :  { %8006 = vmatprep.subr.bf16.mxu1 %v11334_v62  ;;  %8049 = vmatprep.subr.bf16.mxu0 %v11337_v27  ;;  %v11421_v36 = vld [vmem:[#allocation16 + $0xc0c] ss:$28 sps:$4 sm:$0xff]  }
 0x7cc   :  { %8007 = vmatpush1.bf16.msra.mxu1 %v11332_v20  ;;  %8050 = vmatpush1.bf16.msra.mxu0 %v11335_v22 }
 0x7cd   :  { %8008 = vmatprep.subr.bf16.mxu1 %v11340_v25  ;;  %8051 = vmatprep.subr.bf16.mxu0 %v11343_v55 }
 0x7d0   :  { %8009 = vmatpush1.bf16.msra.mxu1 %v11338_v41  ;;  %8052 = vmatpush1.bf16.msra.mxu0 %v11341_v54 }
 0x7d1   :  { %8010 = vmatprep.subr.bf16.mxu1 %v11346_v28  ;;  %8053 = vmatprep.subr.bf16.mxu0 %v11349_v31 }
 0x7d4   :  { %8011 = vmatpush1.bf16.msra.mxu1 %v11344_v19  ;;  %8054 = vmatpush1.bf16.msra.mxu0 %v11347_v32  ;;  %v5113_v19 = vsub.s32 1, %v12524_v5  ;;  %v5121_v32 = vsub.s32 3, %v12524_v5 }
 0x7d5   :  { %8012 = vmatprep.subr.bf16.mxu1 %v11352_v34  ;;  %8055 = vmatprep.subr.bf16.mxu0 %v11355_v1  ;;  %v5109_v34 = vsub.s32 0, %v12524_v5  ;;  %v5117_v1 = vsub.s32 2, %v12524_v5 }
 0x7d8   :  { %8013 = vmatpush1.bf16.msra.mxu1 %v11350_v56  ;;  %8056 = vmatpush1.bf16.msra.mxu0 %v11353_v12 }
 0x7d9   :  { %8014 = vmatprep.subr.bf16.mxu1 %v11358_v11  ;;  %8057 = vmatprep.subr.bf16.mxu0 %v11361_v61  ;;  %v12624_v11 = vld [vmem:[#allocation14] sm:$0xff] }
 0x7dc   :  { %8015 = vmatpush1.bf16.msra.mxu1 %v11356_v33  ;;  %8058 = vmatpush1.bf16.msra.mxu0 %v11359_v35  ;;  %v5114_v35 = vrot.slane %v12624_v11, %v5113_v19 }
 0x7dd   :  { %8016 = vmatprep.subr.bf16.mxu1 %v11364_v37  ;;  %8059 = vmatprep.subr.bf16.mxu0 %v11367_v39  ;;  %v5122_v37 = vrot.slane %v12624_v11, %v5121_v32  ;;  %v5110_v39 = vrot.slane %v12624_v11, %v5109_v34 }
 0x7e0   :  { %8017 = vmatpush1.bf16.msra.mxu1 %v11362_v40  ;;  %8060 = vmatpush1.bf16.msra.mxu0 %v11365_v43  ;;  %v5118_v40 = vrot.slane %v12624_v11, %v5117_v1 }
 0x7e1   :  { %8018 = vmatprep.subr.bf16.mxu1 %v11370_v44  ;;  %8061 = vmatprep.subr.bf16.mxu0 %v11373_v46  ;;  %v5129_v46 = vsub.s32 5, %v12524_v5 }
 0x7e4   :  { %8019 = vmatpush2.bf16.msra.mxu1 %v11368_v47  ;;  %8062 = vmatpush2.bf16.msra.mxu0 %v11371_v50 }
 0x7e5   :  { %8020 = vmatprep.subr.bf16.mxu1 %v11376_v53  ;;  %8063 = vmatprep.subr.bf16.mxu0 %v11379_v57 }
 0x7e8   :  { %8021 = vmatpush2.bf16.msra.mxu1 %v11374_v8  ;;  %8064 = vmatpush2.bf16.msra.mxu0 %v11377_v18 }
 0x7e9   :  { %8022 = vmatprep.subr.bf16.mxu1 %v11382_v6  ;;  %8065 = vmatprep.subr.bf16.mxu0 %v11385_v10 }
 0x7ec   :  { %8023 = vmatpush2.bf16.msra.mxu1 %v11380_v16  ;;  %8066 = vmatpush2.bf16.msra.mxu0 %v11383_v30 }
 0x7ed   :  { %8024 = vmatprep.subr.bf16.mxu1 %v11388_v24  ;;  %8067 = vmatprep.subr.bf16.mxu0 %v11391_v26 }
 0x7f0   :  { %8025 = vmatpush2.bf16.msra.mxu1 %v11386_v13  ;;  %8068 = vmatpush2.bf16.msra.mxu0 %v11389_v59  ;;  %v5130_v13 = vrot.slane %v12624_v11, %v5129_v46 }
 0x7f1   :  { %8026 = vmatprep.subr.bf16.mxu1 %v11394_v63  ;;  %8069 = vmatprep.subr.bf16.mxu0 %v11397_v17 }
 0x7f4   :  { %8027 = vmatpush2.bf16.msra.mxu1 %v11392_v21  ;;  %8070 = vmatpush2.bf16.msra.mxu0 %v11395_v29 }
 0x7f5   :  { %8028 = vmatprep.subr.bf16.mxu1 %v11400_v51  ;;  %8071 = vmatprep.subr.bf16.mxu0 %v11403_v4 }
 0x7f8   :  { %8029 = vmatpush2.bf16.msra.mxu1 %v11398_v7  ;;  %8072 = vmatpush2.bf16.msra.mxu0 %v11401_v60 }
 0x7f9   :  { %8030 = vmatprep.subr.bf16.mxu1 %v11406_v52  ;;  %8073 = vmatprep.subr.bf16.mxu0 %v11409_v15 }
 0x7fc   :  { %8031 = vmatpush2.bf16.msra.mxu1 %v11404_v23  ;;  %8074 = vmatpush2.bf16.msra.mxu0 %v11407_v49 }
 0x7fd   :  { %8032 = vmatprep.subr.bf16.mxu1 %v11412_v45  ;;  %8075 = vmatprep.subr.bf16.mxu0 %v11415_v38  ;;  %v11416_v38 = vld [vmem:[#allocation16 + $0x888] ss:$28 sps:$4 sm:$0xff]  }
 0x800   :  { %8033 = vmatpush2.bf16.msra.mxu1 %v11410_v58  ;;  %8076 = vmatpush2.bf16.msra.mxu0 %v11413_v3  ;;  %v11419_v58 = vld [vmem:[#allocation16 + $0xc08] ss:$28 sps:$4 sm:$0xff]  }
 0x801   :  { %8088 = vmatprep.subr.bf16.mxu1 %v11418_v42  ;;  %8131 = vmatprep.subr.bf16.mxu0 %v11421_v36 }
 0x86b   :  { %v5201_v62 = vpop.f32.mrf.mxu1  ;;  %v5242_v27 = vpop.f32.mrf.mxu0 }
 0x86c   :  { %v5202_v6 = vadd.f32 %v5201_v62, %v5110_v39  ;;  %v5243_v10 = vadd.f32 %v5242_v27, %v5118_v40  ;;  %v11424_v27 = vld [vmem:[#allocation16 + $0x854] ss:$28 sps:$4 sm:$0xff]  }
 0x86d   :  { %v5203_v20 = vpop.f32.mrf.mxu1  ;;  %v5244_v22 = vpop.f32.mrf.mxu0 }
 0x86e   :  { %v5204_v53 = vadd.f32 %v5203_v20, %v5114_v35  ;;  %v5245_v57 = vadd.f32 %v5244_v22, %v5122_v37  ;;  %v5517_v60 = vmax.f32 %v5202_v6, 0.0  ;;  %v5519_v52 = vmax.f32 %v5243_v10, 0.0  ;;  %v11427_v20 = vld [vmem:[#allocation16 + $0xbd4] ss:$28 sps:$4 sm:$0xff]   ;;  %v11442_v6 = vld [vmem:[#allocation16 + $0x7ac] ss:$28 sps:$4 sm:$0xff]  }
 0x86f   :  { %v5205_v25 = vpop.f32.mrf.mxu1  ;;  %v5246_v55 = vpop.f32.mrf.mxu0  ;;  %v11445_v10 = vld [vmem:[#allocation16 + $0xb2c] ss:$28 sps:$4 sm:$0xff]  }
 0x870   :  { %v5518_v29 = vmax.f32 %v5204_v53, 0.0  ;;  %v5520_v51 = vmax.f32 %v5245_v57, 0.0  ;;  %v11436_v53 = vld [vmem:[#allocation16 + $0x7e4] ss:$28 sps:$4 sm:$0xff]  }
 0x871   :  { %v5206_v41 = vpop.f32.mrf.mxu1  ;;  %v5247_v54 = vpop.f32.mrf.mxu0  ;;  %v11439_v57 = vld [vmem:[#allocation16 + $0xb64] ss:$28 sps:$4 sm:$0xff]  }
 0x872   :  { %v11422_v54 = vld [vmem:[#allocation16 + $0x850] ss:$28 sps:$4 sm:$0xff]  }
 0x873   :  { %v12616_v28 = vpop.f32.mrf.mxu1  ;;  %v12618_v31 = vpop.f32.mrf.mxu0 }
 0x875   :  { %v5285_v56 = vpop.f32.mrf.mxu1  ;;  %v10404_v12 = vpop.f32.mrf.mxu0 }
 0x876   :  { %v5286_v22 = vadd.f32 %v5285_v56, %v5130_v13  ;;  %v11425_v12 = vld [vmem:[#allocation16 + $0xbd0] ss:$28 sps:$4 sm:$0xff]   ;;  %v11430_v56 = vld [vmem:[#allocation16 + $0x81c] ss:$28 sps:$4 sm:$0xff]  }
 0x877   :  { %v5287_v61 = vpop.f32.mrf.mxu1  ;;  %v5327_v33 = vpop.f32.mrf.mxu0 }
 0x879   :  { %v5288_v43 = vpop.f32.mrf.mxu1  ;;  %v10405_v44 = vpop.f32.mrf.mxu0 }
 0x87b   :  { %v5388_v47 = vpop.f32.mrf.mxu1  ;;  %v5429_v50 = vpop.f32.mrf.mxu0 }
 0x87c   :  { %v5389_v8 = vadd.f32 %v5388_v47, %v5110_v39  ;;  %v5430_v18 = vadd.f32 %v5429_v50, %v5118_v40  ;;  %v11428_v47 = vld [vmem:[#allocation16 + $0x818] ss:$28 sps:$4 sm:$0xff]  }
 0x87d   :  { %v5390_v16 = vpop.f32.mrf.mxu1  ;;  %v5431_v30 = vpop.f32.mrf.mxu0  ;;  %v11431_v50 = vld [vmem:[#allocation16 + $0xb98] ss:$28 sps:$4 sm:$0xff]  }
 0x87e   :  { %v5391_v24 = vadd.f32 %v5390_v16, %v5114_v35  ;;  %v5432_v26 = vadd.f32 %v5431_v30, %v5122_v37  ;;  %v5524_v59 = vmax.f32 %v5389_v8, 0.0  ;;  %v5526_v63 = vmax.f32 %v5430_v18, 0.0  ;;  %v11433_v35 = vld [vmem:[#allocation16 + $0xb9c] ss:$28 sps:$4 sm:$0xff]   ;;  %v11440_v16 = vld [vmem:[#allocation16 + $0x7a8] ss:$28 sps:$4 sm:$0xff]  }
 0x87f   :  { %v5392_v17 = vpop.f32.mrf.mxu1  ;;  %v5433_v21 = vpop.f32.mrf.mxu0  ;;  %v5522_v37 = vmax.f32 %v5286_v22, 0.0  ;;  %v11434_v8 = vld [vmem:[#allocation16 + $0x7e0] ss:$28 sps:$4 sm:$0xff]   ;;  %v11443_v30 = vld [vmem:[#allocation16 + $0xb28] ss:$28 sps:$4 sm:$0xff]  }
 0x880   :  { %v5525_v4 = vmax.f32 %v5391_v24, 0.0  ;;  %v5527_v7 = vmax.f32 %v5432_v26, 0.0  ;;  %v12646_v3 = vpack.c.bf16 %v5524_v59, %v5517_v60  ;;  %v12648_v42 = vpack.c.bf16 %v5526_v63, %v5519_v52  ;;  %v11437_v18 = vld [vmem:[#allocation16 + $0xb60] ss:$28 sps:$4 sm:$0xff]   ;;  %v11448_v24 = vld [vmem:[#allocation16 + $0x774] ss:$28 sps:$4 sm:$0xff]  }
 0x881   :  { %v5393_v15 = vpop.f32.mrf.mxu1  ;;  %v5434_v23 = vpop.f32.mrf.mxu0  ;;  %v11451_v26 = vld [vmem:[#allocation16 + $0xaf4] ss:$28 sps:$4 sm:$0xff]   ;;  %v11454_v17 = vld [vmem:[#allocation16 + $0x73c] ss:$28 sps:$4 sm:$0xff]   ;;  %v11460_v60 = vld [vmem:[#allocation16 + $0x704] ss:$28 sps:$4 sm:$0xff]  }
 0x882   :  { %v12642_v49 = vpack.c.bf16 %v5525_v4, %v5518_v29  ;;  %v12644_v45 = vpack.c.bf16 %v5527_v7, %v5520_v51  ;;  %v11446_v59 = vld [vmem:[#allocation16 + $0x770] ss:$28 sps:$4 sm:$0xff]   ;;  %v11457_v21 = vld [vmem:[#allocation16 + $0xabc] ss:$28 sps:$4 sm:$0xff]   ;;  %v11463_v52 = vld [vmem:[#allocation16 + $0xa84] ss:$28 sps:$4 sm:$0xff]  }
 0x883   :  { %v12650_v36 = vpop.f32.mrf.mxu1  ;;  %v12652_v62 = vpop.f32.mrf.mxu0  ;;  %v11449_v63 = vld [vmem:[#allocation16 + $0xaf0] ss:$28 sps:$4 sm:$0xff]   ;;  %v11452_v51 = vld [vmem:[#allocation16 + $0x738] ss:$28 sps:$4 sm:$0xff]   ;;  %v11458_v23 = vld [vmem:[#allocation16 + $0x700] ss:$28 sps:$4 sm:$0xff]  }
 0x884   :  { %8034 = vmatprep.mubr.bf16.mxu1 %v12642_v49  ;;  %8077 = vmatprep.mubr.bf16.mxu0 %v12644_v45  ;;  %v11455_v4 = vld [vmem:[#allocation16 + $0xab8] ss:$28 sps:$4 sm:$0xff]  }
 0x885   :  { %v5472_v25 = vpop.f32.mrf.mxu1  ;;  %v10410_v55 = vpop.f32.mrf.mxu0  ;;  %8035 = vmatmul.mubr.bf16.vlgmr.msra.gmra.mxu1 %v12646_v3  ;;  %8078 = vmatmul.mubr.bf16.vlgmr.msra.gmra.mxu0 %v12648_v42 }
 0x886   :  { %v5473_v41 = vadd.f32 %v5472_v25, %v5130_v13  ;;  %8089 = vmatpush1.bf16.msra.mxu1 %v11416_v38  ;;  %8132 = vmatpush1.bf16.msra.mxu0 %v11419_v58  ;;  %v5133_v13 = vsub.s32 6, %v12524_v5  ;;  %v11461_v38 = vld [vmem:[#allocation16 + $0xa80] ss:$28 sps:$4 sm:$0xff]   ;;  %v11464_v25 = vld [vmem:[#allocation16 + $0xa48] ss:$28 sps:$4 sm:$0xff]  }
 0x887   :  { %v5474_v61 = vpop.f32.mrf.mxu1  ;;  %v5514_v33 = vpop.f32.mrf.mxu0  ;;  %8090 = vmatprep.subr.bf16.mxu1 %v11424_v27  ;;  %8133 = vmatprep.subr.bf16.mxu0 %v11427_v20  ;;  %v11466_v27 = vld [vmem:[#allocation16 + $0xa4c] ss:$28 sps:$4 sm:$0xff]   ;;  %v11469_v20 = vld [vmem:[#allocation16 + $0x194] ss:$28 sps:$4 sm:$0xff]  }
 0x888   :  { %v5529_v39 = vmax.f32 %v5473_v41, 0.0  ;;  %8163 = vmatprep.mubr.bf16.mxu0 %v12199_v0  ;;  %v5134_v29 = vrot.slane %v12624_v11, %v5133_v13  ;;  %v11472_v41 = vld [vmem:[#allocation16 + $0xa14] ss:$28 sps:$4 sm:$0xff]   ;;  %v11478_v61 = vld [vmem:[#allocation16 + $0x9dc] ss:$28 sps:$4 sm:$0xff]  }
 0x889   :  { %v5475_v40 = vpop.f32.mrf.mxu1  ;;  %v10411_v43 = vpop.f32.mrf.mxu0  ;;  %v11481_v33 = vld [vmem:[#allocation16 + $0x124] ss:$28 sps:$4 sm:$0xff]  }
 0x88a   :  { %v12659_v44 = vpack.c.bf16 %v5529_v39, %v5522_v37  ;;  %8091 = vmatpush1.bf16.msra.mxu1 %v11422_v54  ;;  %8134 = vmatpush1.bf16.msra.mxu0 %v11425_v12  ;;  %v5512_v7 = vadd.f32 %v12652_v62, %v5134_v29  ;;  %v5325_v15 = vadd.f32 %v12618_v31, %v5134_v29  ;;  %v11467_v62 = vld [vmem:[#allocation16 + $0x190] ss:$28 sps:$4 sm:$0xff]   ;;  %v11475_v31 = vld [vmem:[#allocation16 + $0x15c] ss:$28 sps:$4 sm:$0xff]   ;;  %v11484_v37 = vld [vmem:[#allocation16 + $0x9a4] ss:$28 sps:$4 sm:$0xff]  }
 0x88b   :  { %8092 = vmatprep.subr.bf16.mxu1 %v11430_v56  ;;  %8135 = vmatprep.subr.bf16.mxu0 %v11433_v35  ;;  %v11470_v54 = vld [vmem:[#allocation16 + $0xa10] ss:$28 sps:$4 sm:$0xff]   ;;  %v11473_v12 = vld [vmem:[#allocation16 + $0x158] ss:$28 sps:$4 sm:$0xff]   ;;  %v11479_v35 = vld [vmem:[#allocation16 + $0x120] ss:$28 sps:$4 sm:$0xff]  }
 0x88c   :  { %8120 = vmatprep.mubr.bf16.mxu1 %v12659_v44  ;;  %v5530_v58 = vmax.f32 %v5512_v7, 0.0  ;;  %v5523_v22 = vmax.f32 %v5325_v15, 0.0  ;;  %v11476_v56 = vld [vmem:[#allocation16 + $0x9d8] ss:$28 sps:$4 sm:$0xff]   ;;  %v11487_v39 = vld [vmem:[#allocation16 + $0xec] ss:$28 sps:$4 sm:$0xff]  }
 0x88d   :  { %v11482_v40 = vld [vmem:[#allocation16 + $0x9a0] ss:$28 sps:$4 sm:$0xff]   ;;  %v11485_v43 = vld [vmem:[#allocation16 + $0xe8] ss:$28 sps:$4 sm:$0xff]  }
 0x88e   :  { %8093 = vmatpush1.bf16.msra.mxu1 %v11428_v47  ;;  %8136 = vmatpush1.bf16.msra.mxu0 %v11431_v50  ;;  %v12668_v55 = vpack.c.bf16 %v5530_v58, %v5523_v22  ;;  %v11490_v47 = vld [vmem:[#allocation16 + $0x96c] ss:$28 sps:$4 sm:$0xff]   ;;  %v11493_v50 = vld [vmem:[#allocation16 + $0xb4] ss:$28 sps:$4 sm:$0xff]   ;;  %v11520_v58 = vld [vmem:[#allocation16 + $0x31c] ss:$28 sps:$4 sm:$0xff]  }
 0x88f   :  { %8094 = vmatprep.subr.bf16.mxu1 %v11436_v53  ;;  %8137 = vmatprep.subr.bf16.mxu0 %v11439_v57  ;;  %v11488_v53 = vld [vmem:[#allocation16 + $0x968] ss:$28 sps:$4 sm:$0xff]   ;;  %v11491_v57 = vld [vmem:[#allocation16 + $0xb0] ss:$28 sps:$4 sm:$0xff]  }
 0x890   :  { %v11511_v29 = vld [vmem:[#allocation16 + $0xc] ss:$28 sps:$4 sm:$0xff]   ;;  %v11526_v22 = vld [vmem:[#allocation16 + $0x2e4] ss:$28 sps:$4 sm:$0xff]  }
 0x891   :  { %v11509_v7 = vld [vmem:[#allocation16 + $0x8] ss:$28 sps:$4 sm:$0xff]  }
 0x892   :  { %8095 = vmatpush1.bf16.msra.mxu1 %v11434_v8  ;;  %8138 = vmatpush1.bf16.msra.mxu0 %v11437_v18  ;;  %v11496_v8 = vld [vmem:[#allocation16 + $0x934] ss:$28 sps:$4 sm:$0xff]   ;;  %v11499_v18 = vld [vmem:[#allocation16 + $0x7c] ss:$28 sps:$4 sm:$0xff]  }
 0x893   :  { %8096 = vmatprep.subr.bf16.mxu1 %v11442_v6  ;;  %8139 = vmatprep.subr.bf16.mxu0 %v11445_v10  ;;  %v5125_v6 = vsub.s32 4, %v12524_v5  ;;  %v11494_v10 = vld [vmem:[#allocation16 + $0x930] ss:$28 sps:$4 sm:$0xff]  }
 0x896   :  { %8097 = vmatpush1.bf16.msra.mxu1 %v11440_v16  ;;  %8140 = vmatpush1.bf16.msra.mxu0 %v11443_v30  ;;  %v11497_v16 = vld [vmem:[#allocation16 + $0x78] ss:$28 sps:$4 sm:$0xff]  }
 0x897   :  { %8098 = vmatprep.subr.bf16.mxu1 %v11448_v24  ;;  %8141 = vmatprep.subr.bf16.mxu0 %v11451_v26  ;;  %v11502_v30 = vld [vmem:[#allocation16 + $0x8fc] ss:$28 sps:$4 sm:$0xff]   ;;  %v11505_v24 = vld [vmem:[#allocation16 + $0x44] ss:$28 sps:$4 sm:$0xff]   ;;  %v5126_v26 = vrot.slane %v12624_v11, %v5125_v6  ;;  %v11514_v11 = vld [vmem:[#allocation16 + $0x354] ss:$28 sps:$4 sm:$0xff]  }
 0x89a   :  { %8099 = vmatpush1.bf16.msra.mxu1 %v11446_v59  ;;  %8142 = vmatpush1.bf16.msra.mxu0 %v11449_v63  ;;  %v11500_v59 = vld [vmem:[#allocation16 + $0x8f8] ss:$28 sps:$4 sm:$0xff]   ;;  %v11503_v63 = vld [vmem:[#allocation16 + $0x40] ss:$28 sps:$4 sm:$0xff]  }
 0x89b   :  { %8100 = vmatprep.subr.bf16.mxu1 %v11454_v17  ;;  %8143 = vmatprep.subr.bf16.mxu0 %v11457_v21  ;;  %v5471_v17 = vadd.f32 %v12650_v36, %v5126_v26  ;;  %v11508_v21 = vld [vmem:[#allocation16 + $0x8c4] ss:$28 sps:$4 sm:$0xff]   ;;  %v11515_v36 = vld [vmem:[#allocation16 + $0x510] ss:$28 sps:$4 sm:$0xff]  }
 0x89e   :  { %8101 = vmatpush1.bf16.msra.mxu1 %v11452_v51  ;;  %8144 = vmatpush1.bf16.msra.mxu0 %v11455_v4  ;;  %v5284_v51 = vadd.f32 %v12616_v28, %v5126_v26  ;;  %v11506_v4 = vld [vmem:[#allocation16 + $0x8c0] ss:$28 sps:$4 sm:$0xff]   ;;  %v11565_v26 = vld [vmem:[#allocation16 + $0x894] ss:$28 sps:$4 sm:$0xff]  }
 0x89f   :  { %8102 = vmatprep.subr.bf16.mxu1 %v11460_v60  ;;  %8145 = vmatprep.subr.bf16.mxu0 %v11463_v52  ;;  %v5528_v60 = vmax.f32 %v5471_v17, 0.0  ;;  %v11517_v52 = vld [vmem:[#allocation16 + $0x514] ss:$28 sps:$4 sm:$0xff]   ;;  %v11523_v28 = vld [vmem:[#allocation16 + $0x4dc] ss:$28 sps:$4 sm:$0xff]  }
 0x8a0   :  { %v5521_v15 = vmax.f32 %v5284_v51, 0.0  ;;  %v11568_v17 = vld [vmem:[#allocation16 + $0x69c] ss:$28 sps:$4 sm:$0xff]  }
 0x8a1   :  { %v11569_v51 = vld [vmem:[#allocation16 + $0x858] ss:$28 sps:$4 sm:$0xff]  }
 0x8a2   :  { %8103 = vmatpush1.bf16.msra.mxu1 %v11458_v23  ;;  %8146 = vmatpush1.bf16.msra.mxu0 %v11461_v38  ;;  %v11512_v23 = vld [vmem:[#allocation16 + $0x350] ss:$28 sps:$4 sm:$0xff]   ;;  %v12678_v38 = vpack.c.bf16 %v5528_v60, %v5521_v15  ;;  %v11572_v60 = vld [vmem:[#allocation16 + $0x660] ss:$28 sps:$4 sm:$0xff]  }
 0x8a3   :  { %8104 = vmatprep.subr.bf16.mxu1 %v11466_v27  ;;  %8174 = vmatprep.subr.bf16.mxu0 %v11469_v20  ;;  %v11518_v27 = vld [vmem:[#allocation16 + $0x318] ss:$28 sps:$4 sm:$0xff]   ;;  %v11583_v15 = vld [vmem:[#allocation16 + $0x7ec] ss:$28 sps:$4 sm:$0xff]  }
 0x8a4   :  { %v11521_v20 = vld [vmem:[#allocation16 + $0x4d8] ss:$28 sps:$4 sm:$0xff]  }
 0x8a5   :  { %8164 = vmatmul.mubr.bf16.vlgmr.msra.gmra.mxu0 %v12668_v55 }
 0x8a6   :  { %8105 = vmatpush2.bf16.msra.mxu1 %v11464_v25  ;;  %8175 = vmatpush1.bf16.msra.mxu0 %v11467_v62  ;;  %v11529_v25 = vld [vmem:[#allocation16 + $0x4a4] ss:$28 sps:$4 sm:$0xff]  }
 0x8a7   :  { %8206 = vmatprep.mubr.bf16.mxu0 %v12642_v49  ;;  %8106 = vmatprep.subr.bf16.mxu1 %v11472_v41  ;;  %v11524_v62 = vld [vmem:[#allocation16 + $0x2e0] ss:$28 sps:$4 sm:$0xff]  }
 0x8a8   :  { %8176 = vmatprep.subr.bf16.mxu0 %v11475_v31  ;;  %v11527_v41 = vld [vmem:[#allocation16 + $0x4a0] ss:$28 sps:$4 sm:$0xff]   ;;  %v11532_v31 = vld [vmem:[#allocation16 + $0x2ac] ss:$28 sps:$4 sm:$0xff]  }
 0x8aa   :  { %8107 = vmatpush2.bf16.msra.mxu1 %v11470_v54  ;;  %8177 = vmatpush1.bf16.msra.mxu0 %v11473_v12  ;;  %v11535_v54 = vld [vmem:[#allocation16 + $0x46c] ss:$28 sps:$4 sm:$0xff]  }
 0x8ab   :  { %8108 = vmatprep.subr.bf16.mxu1 %v11478_v61  ;;  %8178 = vmatprep.subr.bf16.mxu0 %v11481_v33  ;;  %v11530_v12 = vld [vmem:[#allocation16 + $0x2a8] ss:$28 sps:$4 sm:$0xff]   ;;  %v11538_v33 = vld [vmem:[#allocation16 + $0x274] ss:$28 sps:$4 sm:$0xff]  }
 0x8ac   :  { %v11533_v61 = vld [vmem:[#allocation16 + $0x468] ss:$28 sps:$4 sm:$0xff]  }
 0x8ae   :  { %8109 = vmatpush2.bf16.msra.mxu1 %v11476_v56  ;;  %8179 = vmatpush1.bf16.msra.mxu0 %v11479_v35  ;;  %v11541_v56 = vld [vmem:[#allocation16 + $0x434] ss:$28 sps:$4 sm:$0xff]  }
 0x8af   :  { %8110 = vmatprep.subr.bf16.mxu1 %v11484_v37  ;;  %8180 = vmatprep.subr.bf16.mxu0 %v11487_v39  ;;  %v11536_v35 = vld [vmem:[#allocation16 + $0x270] ss:$28 sps:$4 sm:$0xff]   ;;  %v11544_v39 = vld [vmem:[#allocation16 + $0x23c] ss:$28 sps:$4 sm:$0xff]  }
 0x8b0   :  { %v11539_v37 = vld [vmem:[#allocation16 + $0x430] ss:$28 sps:$4 sm:$0xff]  }
 0x8b2   :  { %8111 = vmatpush2.bf16.msra.mxu1 %v11482_v40  ;;  %8181 = vmatpush1.bf16.msra.mxu0 %v11485_v43  ;;  %v11547_v40 = vld [vmem:[#allocation16 + $0x3fc] ss:$28 sps:$4 sm:$0xff]  }
 0x8b3   :  { %8112 = vmatprep.subr.bf16.mxu1 %v11490_v47  ;;  %8182 = vmatprep.subr.bf16.mxu0 %v11493_v50  ;;  %v11542_v43 = vld [vmem:[#allocation16 + $0x238] ss:$28 sps:$4 sm:$0xff]   ;;  %v11550_v50 = vld [vmem:[#allocation16 + $0x204] ss:$28 sps:$4 sm:$0xff]  }
 0x8b4   :  { %v11545_v47 = vld [vmem:[#allocation16 + $0x3f8] ss:$28 sps:$4 sm:$0xff]  }
 0x8b6   :  { %8113 = vmatpush2.bf16.msra.mxu1 %v11488_v53  ;;  %8183 = vmatpush1.bf16.msra.mxu0 %v11491_v57  ;;  %v11553_v53 = vld [vmem:[#allocation16 + $0x3c4] ss:$28 sps:$4 sm:$0xff]  }
 0x8b7   :  { %8114 = vmatprep.subr.bf16.mxu1 %v11496_v8  ;;  %8184 = vmatprep.subr.bf16.mxu0 %v11499_v18  ;;  %v11548_v57 = vld [vmem:[#allocation16 + $0x200] ss:$28 sps:$4 sm:$0xff]   ;;  %v11556_v18 = vld [vmem:[#allocation16 + $0x1cc] ss:$28 sps:$4 sm:$0xff]  }
 0x8b8   :  { %v11551_v8 = vld [vmem:[#allocation16 + $0x3c0] ss:$28 sps:$4 sm:$0xff]  }
 0x8ba   :  { %8115 = vmatpush2.bf16.msra.mxu1 %v11494_v10  ;;  %8185 = vmatpush1.bf16.msra.mxu0 %v11497_v16  ;;  %v11559_v10 = vld [vmem:[#allocation16 + $0x38c] ss:$28 sps:$4 sm:$0xff]  }
 0x8bb   :  { %8116 = vmatprep.subr.bf16.mxu1 %v11502_v30  ;;  %8186 = vmatprep.subr.bf16.mxu0 %v11505_v24  ;;  %v11554_v16 = vld [vmem:[#allocation16 + $0x1c8] ss:$28 sps:$4 sm:$0xff]   ;;  %v11562_v24 = vld [vmem:[#allocation16 + $0x6d4] ss:$28 sps:$4 sm:$0xff]  }
 0x8bc   :  { %v11557_v30 = vld [vmem:[#allocation16 + $0x388] ss:$28 sps:$4 sm:$0xff]  }
 0x8be   :  { %8117 = vmatpush2.bf16.msra.mxu1 %v11500_v59  ;;  %8187 = vmatpush1.bf16.msra.mxu0 %v11503_v63  ;;  %v11560_v59 = vld [vmem:[#allocation16 + $0x6d0] ss:$28 sps:$4 sm:$0xff]  }
 0x8bf   :  { %8118 = vmatprep.subr.bf16.mxu1 %v11508_v21  ;;  %8188 = vmatprep.subr.bf16.mxu0 %v11511_v29  ;;  %v11563_v63 = vld [vmem:[#allocation16 + $0x890] ss:$28 sps:$4 sm:$0xff]   ;;  %v11571_v21 = vld [vmem:[#allocation16 + $0x85c] ss:$28 sps:$4 sm:$0xff]  }
 0x8c0   :  { %v11566_v29 = vld [vmem:[#allocation16 + $0x698] ss:$28 sps:$4 sm:$0xff]  }
 0x8c2   :  { %8119 = vmatpush2.bf16.msra.mxu1 %v11506_v4  ;;  %8189 = vmatpush1.bf16.msra.mxu0 %v11509_v7  ;;  %v11574_v4 = vld [vmem:[#allocation16 + $0x664] ss:$28 sps:$4 sm:$0xff]  }
 0x8c3   :  { %8190 = vmatprep.subr.bf16.mxu0 %v11514_v11  ;;  %8217 = vmatprep.subr.bf16.mxu1 %v11517_v52  ;;  %v11577_v7 = vld [vmem:[#allocation16 + $0x824] ss:$28 sps:$4 sm:$0xff]   ;;  %v11580_v52 = vld [vmem:[#allocation16 + $0x62c] ss:$28 sps:$4 sm:$0xff]  }
 0x8c4   :  { %v11575_v11 = vld [vmem:[#allocation16 + $0x820] ss:$28 sps:$4 sm:$0xff]  }
 0x8c5   :  { %8121 = vmatmul.mubr.bf16.vlgmr.msra.gmra.mxu1 %v12678_v38 }
 0x8c6   :  { %8191 = vmatpush2.bf16.msra.mxu0 %v11512_v23  ;;  %8218 = vmatpush1.bf16.msra.mxu1 %v11515_v36  ;;  %v11578_v23 = vld [vmem:[#allocation16 + $0x628] ss:$28 sps:$4 sm:$0xff]  }
 0x8c7   :  { %8249 = vmatprep.mubr.bf16.mxu1 %v12644_v45  ;;  %8192 = vmatprep.subr.bf16.mxu0 %v11520_v58  ;;  %v11581_v36 = vld [vmem:[#allocation16 + $0x7e8] ss:$28 sps:$4 sm:$0xff]   ;;  %v11586_v58 = vld [vmem:[#allocation16 + $0x5f4] ss:$28 sps:$4 sm:$0xff]  }
 0x8c8   :  { %8219 = vmatprep.subr.bf16.mxu1 %v11523_v28  ;;  %v11589_v28 = vld [vmem:[#allocation16 + $0x7b4] ss:$28 sps:$4 sm:$0xff]  }
 0x8ca   :  { %8193 = vmatpush2.bf16.msra.mxu0 %v11518_v27  ;;  %8220 = vmatpush1.bf16.msra.mxu1 %v11521_v20  ;;  %v11584_v27 = vld [vmem:[#allocation16 + $0x5f0] ss:$28 sps:$4 sm:$0xff]  }
 0x8cb   :  { %8194 = vmatprep.subr.bf16.mxu0 %v11526_v22  ;;  %8221 = vmatprep.subr.bf16.mxu1 %v11529_v25  ;;  %v11587_v20 = vld [vmem:[#allocation16 + $0x7b0] ss:$28 sps:$4 sm:$0xff]   ;;  %v11592_v22 = vld [vmem:[#allocation16 + $0x5bc] ss:$28 sps:$4 sm:$0xff]  }
 0x8cc   :  { %v11595_v25 = vld [vmem:[#allocation16 + $0x77c] ss:$28 sps:$4 sm:$0xff]  }
 0x8ce   :  { %8195 = vmatpush2.bf16.msra.mxu0 %v11524_v62  ;;  %8222 = vmatpush1.bf16.msra.mxu1 %v11527_v41  ;;  %v11590_v62 = vld [vmem:[#allocation16 + $0x5b8] ss:$28 sps:$4 sm:$0xff]  }
 0x8cf   :  { %8196 = vmatprep.subr.bf16.mxu0 %v11532_v31  ;;  %8223 = vmatprep.subr.bf16.mxu1 %v11535_v54  ;;  %v11593_v41 = vld [vmem:[#allocation16 + $0x778] ss:$28 sps:$4 sm:$0xff]   ;;  %v11598_v31 = vld [vmem:[#allocation16 + $0x584] ss:$28 sps:$4 sm:$0xff]  }
 0x8d0   :  { %v11601_v54 = vld [vmem:[#allocation16 + $0x744] ss:$28 sps:$4 sm:$0xff]  }
 0x8d2   :  { %8197 = vmatpush2.bf16.msra.mxu0 %v11530_v12  ;;  %8224 = vmatpush1.bf16.msra.mxu1 %v11533_v61  ;;  %v11596_v12 = vld [vmem:[#allocation16 + $0x580] ss:$28 sps:$4 sm:$0xff]  }
 0x8d3   :  { %8198 = vmatprep.subr.bf16.mxu0 %v11538_v33  ;;  %8225 = vmatprep.subr.bf16.mxu1 %v11541_v56  ;;  %v11599_v61 = vld [vmem:[#allocation16 + $0x740] ss:$28 sps:$4 sm:$0xff]   ;;  %v11604_v33 = vld [vmem:[#allocation16 + $0x54c] ss:$28 sps:$4 sm:$0xff]  }
 0x8d4   :  { %v11607_v56 = vld [vmem:[#allocation16 + $0x70c] ss:$28 sps:$4 sm:$0xff]  }
 0x8d6   :  { %8199 = vmatpush2.bf16.msra.mxu0 %v11536_v35  ;;  %8226 = vmatpush1.bf16.msra.mxu1 %v11539_v37  ;;  %v11602_v35 = vld [vmem:[#allocation16 + $0x548] ss:$28 sps:$4 sm:$0xff]  }
 0x8d7   :  { %8200 = vmatprep.subr.bf16.mxu0 %v11544_v39  ;;  %8227 = vmatprep.subr.bf16.mxu1 %v11547_v40  ;;  %v11605_v37 = vld [vmem:[#allocation16 + $0x708] ss:$28 sps:$4 sm:$0xff]   ;;  %v11610_v39 = vld [vmem:[#allocation16 + $0xa54] ss:$28 sps:$4 sm:$0xff]  }
 0x8d8   :  { %v11613_v40 = vld [vmem:[#allocation16 + $0xc14] ss:$28 sps:$4 sm:$0xff]  }
 0x8da   :  { %8201 = vmatpush2.bf16.msra.mxu0 %v11542_v43  ;;  %8228 = vmatpush1.bf16.msra.mxu1 %v11545_v47  ;;  %v11608_v43 = vld [vmem:[#allocation16 + $0xa50] ss:$28 sps:$4 sm:$0xff]  }
 0x8db   :  { %8202 = vmatprep.subr.bf16.mxu0 %v11550_v50  ;;  %8229 = vmatprep.subr.bf16.mxu1 %v11553_v53  ;;  %v11611_v47 = vld [vmem:[#allocation16 + $0xc10] ss:$28 sps:$4 sm:$0xff]   ;;  %v11616_v50 = vld [vmem:[#allocation16 + $0xa1c] ss:$28 sps:$4 sm:$0xff]  }
 0x8dc   :  { %v11619_v53 = vld [vmem:[#allocation16 + $0xbdc] ss:$28 sps:$4 sm:$0xff]  }
 0x8de   :  { %8203 = vmatpush2.bf16.msra.mxu0 %v11548_v57  ;;  %8230 = vmatpush1.bf16.msra.mxu1 %v11551_v8  ;;  %v11614_v57 = vld [vmem:[#allocation16 + $0xa18] ss:$28 sps:$4 sm:$0xff]  }
 0x8df   :  { %8204 = vmatprep.subr.bf16.mxu0 %v11556_v18  ;;  %8231 = vmatprep.subr.bf16.mxu1 %v11559_v10  ;;  %v11617_v8 = vld [vmem:[#allocation16 + $0xbd8] ss:$28 sps:$4 sm:$0xff]   ;;  %v11622_v18 = vld [vmem:[#allocation16 + $0x9e4] ss:$28 sps:$4 sm:$0xff]  }
 0x8e0   :  { %v11625_v10 = vld [vmem:[#allocation16 + $0xba4] ss:$28 sps:$4 sm:$0xff]  }
 0x8e2   :  { %8205 = vmatpush2.bf16.msra.mxu0 %v11554_v16  ;;  %8232 = vmatpush1.bf16.msra.mxu1 %v11557_v30  ;;  %v11620_v16 = vld [vmem:[#allocation16 + $0x9e0] ss:$28 sps:$4 sm:$0xff]  }
 0x8e3   :  { %8233 = vmatprep.subr.bf16.mxu1 %v11562_v24  ;;  %8260 = vmatprep.subr.bf16.mxu0 %v11565_v26  ;;  %v11623_v30 = vld [vmem:[#allocation16 + $0xba0] ss:$28 sps:$4 sm:$0xff]   ;;  %v11628_v24 = vld [vmem:[#allocation16 + $0x9ac] ss:$28 sps:$4 sm:$0xff]  }
 0x8e4   :  { %v11631_v26 = vld [vmem:[#allocation16 + $0xb6c] ss:$28 sps:$4 sm:$0xff]  }
 0x8e5   :  { %8207 = vmatmul.mubr.bf16.vlgmr.msra.gmra.mxu0 %v12646_v3 }
 0x8e6   :  { %8234 = vmatpush2.bf16.msra.mxu1 %v11560_v59  ;;  %8261 = vmatpush1.bf16.msra.mxu0 %v11563_v63  ;;  %v11626_v59 = vld [vmem:[#allocation16 + $0x9a8] ss:$28 sps:$4 sm:$0xff]  }
 0x8e7   :  { %8292 = vmatprep.mubr.bf16.mxu0 %v12659_v44  ;;  %8235 = vmatprep.subr.bf16.mxu1 %v11568_v17  ;;  %v11629_v63 = vld [vmem:[#allocation16 + $0xb68] ss:$28 sps:$4 sm:$0xff]   ;;  %v11634_v17 = vld [vmem:[#allocation16 + $0x974] ss:$28 sps:$4 sm:$0xff]  }
 0x8e8   :  { %8262 = vmatprep.subr.bf16.mxu0 %v11571_v21  ;;  %v11637_v21 = vld [vmem:[#allocation16 + $0xb34] ss:$28 sps:$4 sm:$0xff]  }
 0x8ea   :  { %8236 = vmatpush2.bf16.msra.mxu1 %v11566_v29  ;;  %8263 = vmatpush1.bf16.msra.mxu0 %v11569_v51  ;;  %v11632_v29 = vld [vmem:[#allocation16 + $0x970] ss:$28 sps:$4 sm:$0xff]  }
 0x8eb   :  { %8237 = vmatprep.subr.bf16.mxu1 %v11574_v4  ;;  %8264 = vmatprep.subr.bf16.mxu0 %v11577_v7  ;;  %v11635_v51 = vld [vmem:[#allocation16 + $0xb30] ss:$28 sps:$4 sm:$0xff]   ;;  %v11640_v4 = vld [vmem:[#allocation16 + $0x93c] ss:$28 sps:$4 sm:$0xff]  }
 0x8ec   :  { %v11643_v7 = vld [vmem:[#allocation16 + $0xafc] ss:$28 sps:$4 sm:$0xff]  }
 0x8ee   :  { %8238 = vmatpush2.bf16.msra.mxu1 %v11572_v60  ;;  %8265 = vmatpush1.bf16.msra.mxu0 %v11575_v11  ;;  %v11638_v60 = vld [vmem:[#allocation16 + $0x938] ss:$28 sps:$4 sm:$0xff]  }
 0x8ef   :  { %8239 = vmatprep.subr.bf16.mxu1 %v11580_v52  ;;  %8266 = vmatprep.subr.bf16.mxu0 %v11583_v15  ;;  %v11641_v11 = vld [vmem:[#allocation16 + $0xaf8] ss:$28 sps:$4 sm:$0xff]   ;;  %v11646_v52 = vld [vmem:[#allocation16 + $0x904] ss:$28 sps:$4 sm:$0xff]  }
 0x8f0   :  { %v11649_v15 = vld [vmem:[#allocation16 + $0xac4] ss:$28 sps:$4 sm:$0xff]  }
 0x8f2   :  { %8240 = vmatpush2.bf16.msra.mxu1 %v11578_v23  ;;  %8267 = vmatpush1.bf16.msra.mxu0 %v11581_v36  ;;  %v11644_v23 = vld [vmem:[#allocation16 + $0x900] ss:$28 sps:$4 sm:$0xff]  }
 0x8f3   :  { %8241 = vmatprep.subr.bf16.mxu1 %v11586_v58  ;;  %8268 = vmatprep.subr.bf16.mxu0 %v11589_v28  ;;  %v11647_v36 = vld [vmem:[#allocation16 + $0xac0] ss:$28 sps:$4 sm:$0xff]   ;;  %v11652_v58 = vld [vmem:[#allocation16 + $0x8cc] ss:$28 sps:$4 sm:$0xff]  }
 0x8f4   :  { %v11655_v28 = vld [vmem:[#allocation16 + $0xa8c] ss:$28 sps:$4 sm:$0xff]  }
 0x8f6   :  { %8242 = vmatpush2.bf16.msra.mxu1 %v11584_v27  ;;  %8269 = vmatpush1.bf16.msra.mxu0 %v11587_v20  ;;  %v11650_v27 = vld [vmem:[#allocation16 + $0x8c8] ss:$28 sps:$4 sm:$0xff]  }
 0x8f7   :  { %8243 = vmatprep.subr.bf16.mxu1 %v11592_v22  ;;  %8270 = vmatprep.subr.bf16.mxu0 %v11595_v25  ;;  %v11653_v20 = vld [vmem:[#allocation16 + $0xa88] ss:$28 sps:$4 sm:$0xff]   ;;  %v11658_v22 = vld [vmem:[#allocation16 + $0x19c] ss:$28 sps:$4 sm:$0xff]  }
 0x8f8   :  { %v11661_v25 = vld [vmem:[#allocation16 + $0x51c] ss:$28 sps:$4 sm:$0xff]  }
 0x8fa   :  { %8244 = vmatpush2.bf16.msra.mxu1 %v11590_v62  ;;  %8271 = vmatpush1.bf16.msra.mxu0 %v11593_v41  ;;  %v11656_v62 = vld [vmem:[#allocation16 + $0x198] ss:$28 sps:$4 sm:$0xff]  }
 0x8fb   :  { %8245 = vmatprep.subr.bf16.mxu1 %v11598_v31  ;;  %8272 = vmatprep.subr.bf16.mxu0 %v11601_v54  ;;  %v11659_v41 = vld [vmem:[#allocation16 + $0x518] ss:$28 sps:$4 sm:$0xff]   ;;  %v11664_v31 = vld [vmem:[#allocation16 + $0x164] ss:$28 sps:$4 sm:$0xff]  }
 0x8fc   :  { %v11667_v54 = vld [vmem:[#allocation16 + $0x4e4] ss:$28 sps:$4 sm:$0xff]  }
 0x8fe   :  { %8246 = vmatpush2.bf16.msra.mxu1 %v11596_v12  ;;  %8273 = vmatpush1.bf16.msra.mxu0 %v11599_v61  ;;  %v11662_v12 = vld [vmem:[#allocation16 + $0x160] ss:$28 sps:$4 sm:$0xff]  }
 0x8ff   :  { %8247 = vmatprep.subr.bf16.mxu1 %v11604_v33  ;;  %8274 = vmatprep.subr.bf16.mxu0 %v11607_v56  ;;  %v11665_v61 = vld [vmem:[#allocation16 + $0x4e0] ss:$28 sps:$4 sm:$0xff]   ;;  %v11670_v33 = vld [vmem:[#allocation16 + $0x12c] ss:$28 sps:$4 sm:$0xff]  }
 0x900   :  { %v11673_v56 = vld [vmem:[#allocation16 + $0x4ac] ss:$28 sps:$4 sm:$0xff]  }
 0x902   :  { %8248 = vmatpush2.bf16.msra.mxu1 %v11602_v35  ;;  %8275 = vmatpush1.bf16.msra.mxu0 %v11605_v37  ;;  %v11668_v35 = vld [vmem:[#allocation16 + $0x128] ss:$28 sps:$4 sm:$0xff]  }
 0x903   :  { %8276 = vmatprep.subr.bf16.mxu0 %v11610_v39  ;;  %8303 = vmatprep.subr.bf16.mxu1 %v11613_v40  ;;  %v11671_v37 = vld [vmem:[#allocation16 + $0x4a8] ss:$28 sps:$4 sm:$0xff]   ;;  %v11676_v39 = vld [vmem:[#allocation16 + $0xf4] ss:$28 sps:$4 sm:$0xff]  }
 0x904   :  { %v11679_v40 = vld [vmem:[#allocation16 + $0x474] ss:$28 sps:$4 sm:$0xff]  }
 0x905   :  { %8250 = vmatmul.mubr.bf16.vlgmr.msra.gmra.mxu1 %v12648_v42 }
 0x906   :  { %8277 = vmatpush2.bf16.msra.mxu0 %v11608_v43  ;;  %8304 = vmatpush1.bf16.msra.mxu1 %v11611_v47  ;;  %v11674_v43 = vld [vmem:[#allocation16 + $0xf0] ss:$28 sps:$4 sm:$0xff]  }
 0x907   :  { %8278 = vmatprep.subr.bf16.mxu0 %v11616_v50  ;;  %8305 = vmatprep.subr.bf16.mxu1 %v11619_v53  ;;  %v11677_v47 = vld [vmem:[#allocation16 + $0x470] ss:$28 sps:$4 sm:$0xff]   ;;  %v11682_v50 = vld [vmem:[#allocation16 + $0xbc] ss:$28 sps:$4 sm:$0xff]  }
 0x908   :  { %8335 = vmatprep.mubr.bf16.mxu1 %v12199_v0  ;;  %v11685_v53 = vld [vmem:[#allocation16 + $0x43c] ss:$28 sps:$4 sm:$0xff]  }
 0x90a   :  { %8279 = vmatpush2.bf16.msra.mxu0 %v11614_v57  ;;  %8306 = vmatpush1.bf16.msra.mxu1 %v11617_v8  ;;  %v11680_v57 = vld [vmem:[#allocation16 + $0xb8] ss:$28 sps:$4 sm:$0xff]  }
 0x90b   :  { %8280 = vmatprep.subr.bf16.mxu0 %v11622_v18  ;;  %8307 = vmatprep.subr.bf16.mxu1 %v11625_v10  ;;  %v11683_v8 = vld [vmem:[#allocation16 + $0x438] ss:$28 sps:$4 sm:$0xff]   ;;  %v11688_v18 = vld [vmem:[#allocation16 + $0x84] ss:$28 sps:$4 sm:$0xff]  }
 0x90c   :  { %v11691_v10 = vld [vmem:[#allocation16 + $0x404] ss:$28 sps:$4 sm:$0xff]  }
 0x90e   :  { %8281 = vmatpush2.bf16.msra.mxu0 %v11620_v16  ;;  %8308 = vmatpush1.bf16.msra.mxu1 %v11623_v30  ;;  %v11686_v16 = vld [vmem:[#allocation16 + $0x80] ss:$28 sps:$4 sm:$0xff]  }
 0x90f   :  { %8282 = vmatprep.subr.bf16.mxu0 %v11628_v24  ;;  %8309 = vmatprep.subr.bf16.mxu1 %v11631_v26  ;;  %v11689_v30 = vld [vmem:[#allocation16 + $0x400] ss:$28 sps:$4 sm:$0xff]   ;;  %v11694_v24 = vld [vmem:[#allocation16 + $0x4c] ss:$28 sps:$4 sm:$0xff]  }
 0x910   :  { %v11697_v26 = vld [vmem:[#allocation16 + $0x3cc] ss:$28 sps:$4 sm:$0xff]  }
 0x912   :  { %8283 = vmatpush2.bf16.msra.mxu0 %v11626_v59  ;;  %8310 = vmatpush1.bf16.msra.mxu1 %v11629_v63  ;;  %v11692_v59 = vld [vmem:[#allocation16 + $0x48] ss:$28 sps:$4 sm:$0xff]  }
 0x913   :  { %8284 = vmatprep.subr.bf16.mxu0 %v11634_v17  ;;  %8311 = vmatprep.subr.bf16.mxu1 %v11637_v21  ;;  %v11695_v63 = vld [vmem:[#allocation16 + $0x3c8] ss:$28 sps:$4 sm:$0xff]   ;;  %v11700_v17 = vld [vmem:[#allocation16 + $0x14] ss:$28 sps:$4 sm:$0xff]  }
 0x914   :  { %v11703_v21 = vld [vmem:[#allocation16 + $0x394] ss:$28 sps:$4 sm:$0xff]  }
 0x916   :  { %8285 = vmatpush2.bf16.msra.mxu0 %v11632_v29  ;;  %8312 = vmatpush1.bf16.msra.mxu1 %v11635_v51  ;;  %v11698_v29 = vld [vmem:[#allocation16 + $0x10] ss:$28 sps:$4 sm:$0xff]  }
 0x917   :  { %8286 = vmatprep.subr.bf16.mxu0 %v11640_v4  ;;  %8313 = vmatprep.subr.bf16.mxu1 %v11643_v7  ;;  %v11701_v51 = vld [vmem:[#allocation16 + $0x390] ss:$28 sps:$4 sm:$0xff]   ;;  %v11706_v4 = vld [vmem:[#allocation16 + $0x35c] ss:$28 sps:$4 sm:$0xff]  }
 0x918   :  { %v11709_v7 = vld [vmem:[#allocation16 + $0x6dc] ss:$28 sps:$4 sm:$0xff]  }
 0x91a   :  { %8287 = vmatpush2.bf16.msra.mxu0 %v11638_v60  ;;  %8314 = vmatpush1.bf16.msra.mxu1 %v11641_v11  ;;  %v11704_v60 = vld [vmem:[#allocation16 + $0x358] ss:$28 sps:$4 sm:$0xff]  }
 0x91b   :  { %8288 = vmatprep.subr.bf16.mxu0 %v11646_v52  ;;  %8315 = vmatprep.subr.bf16.mxu1 %v11649_v15  ;;  %v11707_v11 = vld [vmem:[#allocation16 + $0x6d8] ss:$28 sps:$4 sm:$0xff]   ;;  %v11712_v52 = vld [vmem:[#allocation16 + $0x324] ss:$28 sps:$4 sm:$0xff]  }
 0x91c   :  { %v11715_v15 = vld [vmem:[#allocation16 + $0x6a4] ss:$28 sps:$4 sm:$0xff]  }
 0x91e   :  { %8289 = vmatpush2.bf16.msra.mxu0 %v11644_v23  ;;  %8316 = vmatpush1.bf16.msra.mxu1 %v11647_v36  ;;  %v11710_v23 = vld [vmem:[#allocation16 + $0x320] ss:$28 sps:$4 sm:$0xff]  }
 0x91f   :  { %8290 = vmatprep.subr.bf16.mxu0 %v11652_v58  ;;  %8317 = vmatprep.subr.bf16.mxu1 %v11655_v28  ;;  %v11713_v36 = vld [vmem:[#allocation16 + $0x6a0] ss:$28 sps:$4 sm:$0xff]   ;;  %v11718_v58 = vld [vmem:[#allocation16 + $0x2ec] ss:$28 sps:$4 sm:$0xff]  }
 0x920   :  { %v11721_v28 = vld [vmem:[#allocation16 + $0x66c] ss:$28 sps:$4 sm:$0xff]  }
 0x922   :  { %8291 = vmatpush2.bf16.msra.mxu0 %v11650_v27  ;;  %8318 = vmatpush1.bf16.msra.mxu1 %v11653_v20  ;;  %v11716_v27 = vld [vmem:[#allocation16 + $0x2e8] ss:$28 sps:$4 sm:$0xff]  }
 0x923   :  { %8346 = vmatprep.subr.bf16.mxu1 %v11658_v22  ;;  %8389 = vmatprep.subr.bf16.mxu0 %v11661_v25  ;;  %v11719_v20 = vld [vmem:[#allocation16 + $0x668] ss:$28 sps:$4 sm:$0xff]   ;;  %v11724_v22 = vld [vmem:[#allocation16 + $0x2b4] ss:$28 sps:$4 sm:$0xff]  }
 0x924   :  { %v11727_v25 = vld [vmem:[#allocation16 + $0x634] ss:$28 sps:$4 sm:$0xff]  }
 0x925   :  { %8293 = vmatmul.mubr.bf16.vlgmr.msra.gmra.mxu0 %v12678_v38  ;;  %8336 = vmatmul.mubr.bf16.vlgmr.msra.gmra.mxu1 %v12668_v55 }
 0x926   :  { %8347 = vmatpush1.bf16.msra.mxu1 %v11656_v62  ;;  %8378 = vmatprep.mubr.bf16.mxu1 %v12642_v49  ;;  %v11722_v62 = vld [vmem:[#allocation16 + $0x2b0] ss:$28 sps:$4 sm:$0xff]  }
 0x927   :  { %8390 = vmatpush1.bf16.msra.mxu0 %v11659_v41  ;;  %8421 = vmatprep.mubr.bf16.mxu0 %v12644_v45  ;;  %v11725_v41 = vld [vmem:[#allocation16 + $0x630] ss:$28 sps:$4 sm:$0xff]  }
 0x928   :  { %8348 = vmatprep.subr.bf16.mxu1 %v11664_v31  ;;  %8391 = vmatprep.subr.bf16.mxu0 %v11667_v54  ;;  %v11730_v31 = vld [vmem:[#allocation16 + $0x27c] ss:$28 sps:$4 sm:$0xff]  }
 0x929   :  { %v11733_v54 = vld [vmem:[#allocation16 + $0x5fc] ss:$28 sps:$4 sm:$0xff]  }
 0x92a   :  { %8349 = vmatpush1.bf16.msra.mxu1 %v11662_v12  ;;  %v11728_v12 = vld [vmem:[#allocation16 + $0x278] ss:$28 sps:$4 sm:$0xff]  }
 0x92b   :  { %8392 = vmatpush1.bf16.msra.mxu0 %v11665_v61  ;;  %8350 = vmatprep.subr.bf16.mxu1 %v11670_v33  ;;  %v11731_v61 = vld [vmem:[#allocation16 + $0x5f8] ss:$28 sps:$4 sm:$0xff]   ;;  %v11736_v33 = vld [vmem:[#allocation16 + $0x244] ss:$28 sps:$4 sm:$0xff]  }
 0x92c   :  { %8393 = vmatprep.subr.bf16.mxu0 %v11673_v56  ;;  %v11739_v56 = vld [vmem:[#allocation16 + $0x5c4] ss:$28 sps:$4 sm:$0xff]  }
 0x92e   :  { %8351 = vmatpush1.bf16.msra.mxu1 %v11668_v35  ;;  %v11734_v35 = vld [vmem:[#allocation16 + $0x240] ss:$28 sps:$4 sm:$0xff]  }
 0x92f   :  { %8394 = vmatpush1.bf16.msra.mxu0 %v11671_v37  ;;  %8352 = vmatprep.subr.bf16.mxu1 %v11676_v39  ;;  %v11737_v37 = vld [vmem:[#allocation16 + $0x5c0] ss:$28 sps:$4 sm:$0xff]   ;;  %v11742_v39 = vld [vmem:[#allocation16 + $0x20c] ss:$28 sps:$4 sm:$0xff]  }
 0x930   :  { %8395 = vmatprep.subr.bf16.mxu0 %v11679_v40  ;;  %v11745_v40 = vld [vmem:[#allocation16 + $0x58c] ss:$28 sps:$4 sm:$0xff]  }
 0x932   :  { %8353 = vmatpush1.bf16.msra.mxu1 %v11674_v43  ;;  %v11740_v43 = vld [vmem:[#allocation16 + $0x208] ss:$28 sps:$4 sm:$0xff]  }
 0x933   :  { %8396 = vmatpush1.bf16.msra.mxu0 %v11677_v47  ;;  %8354 = vmatprep.subr.bf16.mxu1 %v11682_v50  ;;  %v11743_v47 = vld [vmem:[#allocation16 + $0x588] ss:$28 sps:$4 sm:$0xff]   ;;  %v11748_v50 = vld [vmem:[#allocation16 + $0x1d4] ss:$28 sps:$4 sm:$0xff]  }
 0x934   :  { %8397 = vmatprep.subr.bf16.mxu0 %v11685_v53  ;;  %v11751_v53 = vld [vmem:[#allocation16 + $0x554] ss:$28 sps:$4 sm:$0xff]  }
 0x936   :  { %8355 = vmatpush1.bf16.msra.mxu1 %v11680_v57  ;;  %v11746_v57 = vld [vmem:[#allocation16 + $0x1d0] ss:$28 sps:$4 sm:$0xff]  }
 0x937   :  { %8398 = vmatpush1.bf16.msra.mxu0 %v11683_v8  ;;  %8356 = vmatprep.subr.bf16.mxu1 %v11688_v18  ;;  %v11749_v8 = vld [vmem:[#allocation16 + $0x550] ss:$28 sps:$4 sm:$0xff]   ;;  %v11754_v18 = vld [vmem:[#allocation16 + $0x89c] ss:$28 sps:$4 sm:$0xff]  }
 0x938   :  { %8399 = vmatprep.subr.bf16.mxu0 %v11691_v10  ;;  %v11757_v10 = vld [vmem:[#allocation16 + $0xc1c] ss:$28 sps:$4 sm:$0xff]  }
 0x93a   :  { %8357 = vmatpush1.bf16.msra.mxu1 %v11686_v16  ;;  %v11752_v16 = vld [vmem:[#allocation16 + $0x898] ss:$28 sps:$4 sm:$0xff]  }
 0x93b   :  { %8400 = vmatpush1.bf16.msra.mxu0 %v11689_v30  ;;  %8358 = vmatprep.subr.bf16.mxu1 %v11694_v24  ;;  %v11755_v30 = vld [vmem:[#allocation16 + $0xc18] ss:$28 sps:$4 sm:$0xff]   ;;  %v11760_v24 = vld [vmem:[#allocation16 + $0x864] ss:$28 sps:$4 sm:$0xff]  }
 0x93c   :  { %8401 = vmatprep.subr.bf16.mxu0 %v11697_v26  ;;  %v11763_v26 = vld [vmem:[#allocation16 + $0xbe4] ss:$28 sps:$4 sm:$0xff]  }
 0x93e   :  { %8359 = vmatpush1.bf16.msra.mxu1 %v11692_v59  ;;  %v11758_v59 = vld [vmem:[#allocation16 + $0x860] ss:$28 sps:$4 sm:$0xff]  }
 0x93f   :  { %8402 = vmatpush1.bf16.msra.mxu0 %v11695_v63  ;;  %8360 = vmatprep.subr.bf16.mxu1 %v11700_v17  ;;  %v11761_v63 = vld [vmem:[#allocation16 + $0xbe0] ss:$28 sps:$4 sm:$0xff]   ;;  %v11766_v17 = vld [vmem:[#allocation16 + $0x82c] ss:$28 sps:$4 sm:$0xff]  }
 0x940   :  { %8403 = vmatprep.subr.bf16.mxu0 %v11703_v21  ;;  %v11769_v21 = vld [vmem:[#allocation16 + $0xbac] ss:$28 sps:$4 sm:$0xff]  }
 0x942   :  { %8361 = vmatpush1.bf16.msra.mxu1 %v11698_v29  ;;  %v11764_v29 = vld [vmem:[#allocation16 + $0x828] ss:$28 sps:$4 sm:$0xff]  }
 0x943   :  { %8404 = vmatpush1.bf16.msra.mxu0 %v11701_v51  ;;  %8362 = vmatprep.subr.bf16.mxu1 %v11706_v4  ;;  %v11767_v51 = vld [vmem:[#allocation16 + $0xba8] ss:$28 sps:$4 sm:$0xff]   ;;  %v11772_v4 = vld [vmem:[#allocation16 + $0x7f4] ss:$28 sps:$4 sm:$0xff]  }
 0x944   :  { %8405 = vmatprep.subr.bf16.mxu0 %v11709_v7  ;;  %v11775_v7 = vld [vmem:[#allocation16 + $0xb74] ss:$28 sps:$4 sm:$0xff]  }
 0x946   :  { %8363 = vmatpush2.bf16.msra.mxu1 %v11704_v60  ;;  %v11770_v60 = vld [vmem:[#allocation16 + $0x7f0] ss:$28 sps:$4 sm:$0xff]  }
 0x947   :  { %8406 = vmatpush2.bf16.msra.mxu0 %v11707_v11  ;;  %8364 = vmatprep.subr.bf16.mxu1 %v11712_v52  ;;  %v11773_v11 = vld [vmem:[#allocation16 + $0xb70] ss:$28 sps:$4 sm:$0xff]   ;;  %v11778_v52 = vld [vmem:[#allocation16 + $0x7bc] ss:$28 sps:$4 sm:$0xff]  }
 0x948   :  { %8407 = vmatprep.subr.bf16.mxu0 %v11715_v15  ;;  %v11781_v15 = vld [vmem:[#allocation16 + $0xb3c] ss:$28 sps:$4 sm:$0xff]  }
 0x94a   :  { %8365 = vmatpush2.bf16.msra.mxu1 %v11710_v23  ;;  %v11776_v23 = vld [vmem:[#allocation16 + $0x7b8] ss:$28 sps:$4 sm:$0xff]  }
 0x94b   :  { %8408 = vmatpush2.bf16.msra.mxu0 %v11713_v36  ;;  %8366 = vmatprep.subr.bf16.mxu1 %v11718_v58  ;;  %v11779_v36 = vld [vmem:[#allocation16 + $0xb38] ss:$28 sps:$4 sm:$0xff]   ;;  %v11784_v58 = vld [vmem:[#allocation16 + $0x784] ss:$28 sps:$4 sm:$0xff]  }
 0x94c   :  { %8409 = vmatprep.subr.bf16.mxu0 %v11721_v28  ;;  %v11787_v28 = vld [vmem:[#allocation16 + $0xb04] ss:$28 sps:$4 sm:$0xff]  }
 0x94e   :  { %8367 = vmatpush2.bf16.msra.mxu1 %v11716_v27  ;;  %v11782_v27 = vld [vmem:[#allocation16 + $0x780] ss:$28 sps:$4 sm:$0xff]  }
 0x94f   :  { %8410 = vmatpush2.bf16.msra.mxu0 %v11719_v20  ;;  %8368 = vmatprep.subr.bf16.mxu1 %v11724_v22  ;;  %v11785_v20 = vld [vmem:[#allocation16 + $0xb00] ss:$28 sps:$4 sm:$0xff]   ;;  %v11790_v22 = vld [vmem:[#allocation16 + $0x74c] ss:$28 sps:$4 sm:$0xff]  }
 0x950   :  { %8411 = vmatprep.subr.bf16.mxu0 %v11727_v25  ;;  %v11793_v25 = vld [vmem:[#allocation16 + $0xacc] ss:$28 sps:$4 sm:$0xff]  }
 0x952   :  { %8369 = vmatpush2.bf16.msra.mxu1 %v11722_v62  ;;  %v11788_v62 = vld [vmem:[#allocation16 + $0x748] ss:$28 sps:$4 sm:$0xff]  }
 0x953   :  { %8412 = vmatpush2.bf16.msra.mxu0 %v11725_v41  ;;  %8370 = vmatprep.subr.bf16.mxu1 %v11730_v31  ;;  %v11791_v41 = vld [vmem:[#allocation16 + $0xac8] ss:$28 sps:$4 sm:$0xff]   ;;  %v11796_v31 = vld [vmem:[#allocation16 + $0x714] ss:$28 sps:$4 sm:$0xff]  }
 0x954   :  { %8413 = vmatprep.subr.bf16.mxu0 %v11733_v54  ;;  %v11799_v54 = vld [vmem:[#allocation16 + $0xa94] ss:$28 sps:$4 sm:$0xff]  }
 0x956   :  { %8371 = vmatpush2.bf16.msra.mxu1 %v11728_v12  ;;  %v11794_v12 = vld [vmem:[#allocation16 + $0x710] ss:$28 sps:$4 sm:$0xff]  }
 0x957   :  { %8414 = vmatpush2.bf16.msra.mxu0 %v11731_v61  ;;  %8372 = vmatprep.subr.bf16.mxu1 %v11736_v33  ;;  %v11797_v61 = vld [vmem:[#allocation16 + $0xa90] ss:$28 sps:$4 sm:$0xff]   ;;  %v11802_v33 = vld [vmem:[#allocation16 + $0xa5c] ss:$28 sps:$4 sm:$0xff]  }
 0x958   :  { %8415 = vmatprep.subr.bf16.mxu0 %v11739_v56  ;;  %v11803_v56 = vld [vmem:[#allocation16 + $0x360] ss:$28 sps:$4 sm:$0xff]  }
 0x95a   :  { %8373 = vmatpush2.bf16.msra.mxu1 %v11734_v35  ;;  %v11800_v35 = vld [vmem:[#allocation16 + $0xa58] ss:$28 sps:$4 sm:$0xff]  }
 0x95b   :  { %8416 = vmatpush2.bf16.msra.mxu0 %v11737_v37  ;;  %8374 = vmatprep.subr.bf16.mxu1 %v11742_v39  ;;  %v11804_v37 = vld [vmem:[#allocation16 + $0x1a0] ss:$28 sps:$4 sm:$0xff]  }
 0x95c   :  { %8417 = vmatprep.subr.bf16.mxu0 %v11745_v40  ;;  %v11807_v39 = vld [vmem:[#allocation16 + $0xa24] ss:$28 sps:$4 sm:$0xff]  }
 0x95d   :  { %v11808_v40 = vld [vmem:[#allocation16 + $0x328] ss:$28 sps:$4 sm:$0xff]  }
 0x95e   :  { %8375 = vmatpush2.bf16.msra.mxu1 %v11740_v43  ;;  %v11805_v43 = vld [vmem:[#allocation16 + $0xa20] ss:$28 sps:$4 sm:$0xff]  }
 0x95f   :  { %8418 = vmatpush2.bf16.msra.mxu0 %v11743_v47  ;;  %8376 = vmatprep.subr.bf16.mxu1 %v11748_v50  ;;  %v11809_v47 = vld [vmem:[#allocation16 + $0x168] ss:$28 sps:$4 sm:$0xff]  }
 0x960   :  { %8419 = vmatprep.subr.bf16.mxu0 %v11751_v53  ;;  %v11812_v50 = vld [vmem:[#allocation16 + $0x9ec] ss:$28 sps:$4 sm:$0xff]  }
 0x961   :  { %v11813_v53 = vld [vmem:[#allocation16 + $0x2f0] ss:$28 sps:$4 sm:$0xff]  }
 0x962   :  { %8377 = vmatpush2.bf16.msra.mxu1 %v11746_v57  ;;  %v11810_v57 = vld [vmem:[#allocation16 + $0x9e8] ss:$28 sps:$4 sm:$0xff]  }
 0x963   :  { %8420 = vmatpush2.bf16.msra.mxu0 %v11749_v8  ;;  %8432 = vmatprep.subr.bf16.mxu1 %v11754_v18  ;;  %v11814_v8 = vld [vmem:[#allocation16 + $0x130] ss:$28 sps:$4 sm:$0xff]  }
 0x964   :  { %8475 = vmatprep.subr.bf16.mxu0 %v11757_v10  ;;  %v11817_v18 = vld [vmem:[#allocation16 + $0x9b4] ss:$28 sps:$4 sm:$0xff]  }
 0x965   :  { %8379 = vmatmul.mubr.bf16.vlgmr.msra.gmra.mxu1 %v12646_v3  ;;  %v11818_v10 = vld [vmem:[#allocation16 + $0x2b8] ss:$28 sps:$4 sm:$0xff]  }
 0x966   :  { %8422 = vmatmul.mubr.bf16.vlgmr.msra.gmra.mxu0 %v12648_v42  ;;  %8433 = vmatpush1.bf16.msra.mxu1 %v11752_v16  ;;  %v11815_v16 = vld [vmem:[#allocation16 + $0x9b0] ss:$28 sps:$4 sm:$0xff]  }
 0x967   :  { %8464 = vmatprep.mubr.bf16.mxu1 %v12659_v44  ;;  %8476 = vmatpush1.bf16.msra.mxu0 %v11755_v30  ;;  %v11819_v30 = vld [vmem:[#allocation16 + $0xf8] ss:$28 sps:$4 sm:$0xff]  }
 0x968   :  { %8434 = vmatprep.subr.bf16.mxu1 %v11760_v24  ;;  %8477 = vmatprep.subr.bf16.mxu0 %v11763_v26  ;;  %v11822_v24 = vld [vmem:[#allocation16 + $0x97c] ss:$28 sps:$4 sm:$0xff]  }
 0x969   :  { %8507 = vmatprep.mubr.bf16.mxu0 %v12199_v0  ;;  %v11820_v26 = vld [vmem:[#allocation16 + $0x978] ss:$28 sps:$4 sm:$0xff]  }
 0x96a   :  { %8435 = vmatpush1.bf16.msra.mxu1 %v11758_v59  ;;  %v11824_v59 = vld [vmem:[#allocation16 + $0xc0] ss:$28 sps:$4 sm:$0xff]  }
 0x96b   :  { %8478 = vmatpush1.bf16.msra.mxu0 %v11761_v63  ;;  %8436 = vmatprep.subr.bf16.mxu1 %v11766_v17  ;;  %v11827_v63 = vld [vmem:[#allocation16 + $0x944] ss:$28 sps:$4 sm:$0xff]  }
 0x96c   :  { %8479 = vmatprep.subr.bf16.mxu0 %v11769_v21  ;;  %v11828_v17 = vld [vmem:[#allocation16 + $0x248] ss:$28 sps:$4 sm:$0xff]   ;;  %v11825_v21 = vld [vmem:[#allocation16 + $0x940] ss:$28 sps:$4 sm:$0xff]  }
 0x96e   :  { %8437 = vmatpush1.bf16.msra.mxu1 %v11764_v29  ;;  %v11829_v29 = vld [vmem:[#allocation16 + $0x88] ss:$28 sps:$4 sm:$0xff]  }
 0x96f   :  { %8480 = vmatpush1.bf16.msra.mxu0 %v11767_v51  ;;  %8438 = vmatprep.subr.bf16.mxu1 %v11772_v4  ;;  %v11832_v51 = vld [vmem:[#allocation16 + $0x90c] ss:$28 sps:$4 sm:$0xff]  }
 0x970   :  { %8481 = vmatprep.subr.bf16.mxu0 %v11775_v7  ;;  %v11833_v4 = vld [vmem:[#allocation16 + $0x210] ss:$28 sps:$4 sm:$0xff]   ;;  %v11830_v7 = vld [vmem:[#allocation16 + $0x908] ss:$28 sps:$4 sm:$0xff]  }
 0x972   :  { %8439 = vmatpush1.bf16.msra.mxu1 %v11770_v60  ;;  %v11834_v60 = vld [vmem:[#allocation16 + $0x50] ss:$28 sps:$4 sm:$0xff]  }
 0x973   :  { %8482 = vmatpush1.bf16.msra.mxu0 %v11773_v11  ;;  %8440 = vmatprep.subr.bf16.mxu1 %v11778_v52  ;;  %v11837_v11 = vld [vmem:[#allocation16 + $0x8d4] ss:$28 sps:$4 sm:$0xff]  }
 0x974   :  { %8483 = vmatprep.subr.bf16.mxu0 %v11781_v15  ;;  %v11838_v52 = vld [vmem:[#allocation16 + $0x1d8] ss:$28 sps:$4 sm:$0xff]   ;;  %v11835_v15 = vld [vmem:[#allocation16 + $0x8d0] ss:$28 sps:$4 sm:$0xff]  }
 0x976   :  { %8441 = vmatpush1.bf16.msra.mxu1 %v11776_v23  ;;  %v11839_v23 = vld [vmem:[#allocation16 + $0x18] ss:$28 sps:$4 sm:$0xff]  }
 0x977   :  { %8484 = vmatpush1.bf16.msra.mxu0 %v11779_v36  ;;  %8442 = vmatprep.subr.bf16.mxu1 %v11784_v58  ;;  %v11840_v36 = vld [vmem:[#allocation16 + $0x6e0] ss:$28 sps:$4 sm:$0xff]  }
 0x978   :  { %8485 = vmatprep.subr.bf16.mxu0 %v11787_v28  ;;  %v11841_v58 = vld [vmem:[#allocation16 + $0xa60] ss:$28 sps:$4 sm:$0xff]  }
 0x979   :  { %v11842_v28 = vld [vmem:[#allocation16 + $0x520] ss:$28 sps:$4 sm:$0xff]  }
 0x97a   :  { %8443 = vmatpush1.bf16.msra.mxu1 %v11782_v27  ;;  %v8079_v27 = vpop.f32.mrf.mxu0 }
 0x97b   :  { %8486 = vmatpush1.bf16.msra.mxu0 %v11785_v20  ;;  %8444 = vmatprep.subr.bf16.mxu1 %v11790_v22  ;;  %v11843_v20 = vld [vmem:[#allocation16 + $0x8a0] ss:$28 sps:$4 sm:$0xff]   ;;  %v11844_v22 = vld [vmem:[#allocation16 + $0x6a8] ss:$28 sps:$4 sm:$0xff]  }
 0x97c   :  { %8487 = vmatprep.subr.bf16.mxu0 %v11793_v25  ;;  %v8036_v25 = vpop.f32.mrf.mxu1 }
 0x97e   :  { %8445 = vmatpush1.bf16.msra.mxu1 %v11788_v62  ;;  %v11845_v62 = vld [vmem:[#allocation16 + $0xa28] ss:$28 sps:$4 sm:$0xff]  }
 0x97f   :  { %8488 = vmatpush1.bf16.msra.mxu0 %v11791_v41  ;;  %8446 = vmatprep.subr.bf16.mxu1 %v11796_v31  ;;  %v11846_v41 = vld [vmem:[#allocation16 + $0x4e8] ss:$28 sps:$4 sm:$0xff]   ;;  %v8081_v31 = vpop.f32.mrf.mxu0 }
 0x980   :  { %8489 = vmatprep.subr.bf16.mxu0 %v11799_v54  ;;  %v11847_v54 = vld [vmem:[#allocation16 + $0x868] ss:$28 sps:$4 sm:$0xff]  }
 0x982   :  { %8447 = vmatpush1.bf16.msra.mxu1 %v11794_v12  ;;  %v11848_v12 = vld [vmem:[#allocation16 + $0x670] ss:$28 sps:$4 sm:$0xff]  }
 0x983   :  { %8490 = vmatpush1.bf16.msra.mxu0 %v11797_v61  ;;  %8448 = vmatprep.subr.bf16.mxu1 %v11802_v33  ;;  %v11849_v61 = vld [vmem:[#allocation16 + $0x9f0] ss:$28 sps:$4 sm:$0xff]   ;;  %v8038_v33 = vpop.f32.mrf.mxu1 }
 0x984   :  { %10284 = vmatprep.subr.bf16.mxu0 %v11803_v56  ;;  %v11850_v56 = vld [vmem:[#allocation16 + $0x4b0] ss:$28 sps:$4 sm:$0xff]  }
 0x986   :  { %8508 = vmatmul.mubr.bf16.vlgmr.msra.gmra.mxu0 %v12668_v55  ;;  %8449 = vmatpush2.bf16.msra.mxu1 %v11800_v35  ;;  %v12700_v35 = vpop.f32.mrf.mxu0 }
 0x987   :  { %10285 = vmatpush3.bf16.msra.mxu0 %v11804_v37  ;;  %8550 = vmatprep.mubr.bf16.mxu0 %v12642_v49  ;;  %v11823_v49 = vld [vmem:[#allocation16 + $0x280] ss:$28 sps:$4 sm:$0xff]   ;;  %v11852_v37 = vld [vmem:[#allocation16 + $0x638] ss:$28 sps:$4 sm:$0xff]  }
 0x988   :  { %8450 = vmatprep.subr.bf16.mxu1 %v11807_v39  ;;  %10286 = vmatprep.subr.bf16.mxu0 %v11808_v40  ;;  %v11853_v39 = vld [vmem:[#allocation16 + $0x9b8] ss:$28 sps:$4 sm:$0xff]  }
 0x989   :  { %v11854_v40 = vld [vmem:[#allocation16 + $0x478] ss:$28 sps:$4 sm:$0xff]  }
 0x98a   :  { %8451 = vmatpush2.bf16.msra.mxu1 %v11805_v43  ;;  %v12704_v43 = vpop.f32.mrf.mxu0 }
 0x98b   :  { %10287 = vmatpush3.bf16.msra.mxu0 %v11809_v47  ;;  %8452 = vmatprep.subr.bf16.mxu1 %v11812_v50  ;;  %v11856_v47 = vld [vmem:[#allocation16 + $0x600] ss:$28 sps:$4 sm:$0xff]  }
 0x98c   :  { %10288 = vmatprep.subr.bf16.mxu0 %v11813_v53  ;;  %v11857_v50 = vld [vmem:[#allocation16 + $0x980] ss:$28 sps:$4 sm:$0xff]  }
 0x98e   :  { %8453 = vmatpush2.bf16.msra.mxu1 %v11810_v57  ;;  %v8165_v57 = vpop.f32.mrf.mxu0 }
 0x98f   :  { %10289 = vmatpush3.bf16.msra.mxu0 %v11814_v8  ;;  %8454 = vmatprep.subr.bf16.mxu1 %v11817_v18  ;;  %v11858_v8 = vld [vmem:[#allocation16 + $0x440] ss:$28 sps:$4 sm:$0xff]  }
 0x990   :  { %10290 = vmatprep.subr.bf16.mxu0 %v11818_v10  ;;  %v11859_v10 = vld [vmem:[#allocation16 + $0x7c0] ss:$28 sps:$4 sm:$0xff]  }
 0x992   :  { %8455 = vmatpush2.bf16.msra.mxu1 %v11815_v16  ;;  %v11860_v16 = vld [vmem:[#allocation16 + $0x5c8] ss:$28 sps:$4 sm:$0xff]  }
 0x993   :  { %10291 = vmatpush3.bf16.msra.mxu0 %v11819_v30  ;;  %8456 = vmatprep.subr.bf16.mxu1 %v11822_v24  ;;  %v11861_v30 = vld [vmem:[#allocation16 + $0x948] ss:$28 sps:$4 sm:$0xff]   ;;  %v8167_v24 = vpop.f32.mrf.mxu0 }
 0x994   :  { %10292 = vmatprep.subr.bf16.mxu0 %v11823_v49  ;;  %v11862_v49 = vld [vmem:[#allocation16 + $0x408] ss:$28 sps:$4 sm:$0xff]  }
 0x996   :  { %8457 = vmatpush2.bf16.msra.mxu1 %v11820_v26 }
 0x997   :  { %10293 = vmatpush3.bf16.msra.mxu0 %v11824_v59  ;;  %8458 = vmatprep.subr.bf16.mxu1 %v11827_v63  ;;  %v11863_v59 = vld [vmem:[#allocation16 + $0x788] ss:$28 sps:$4 sm:$0xff]   ;;  %v11864_v63 = vld [vmem:[#allocation16 + $0x590] ss:$28 sps:$4 sm:$0xff]  }
 0x998   :  { %10294 = vmatprep.subr.bf16.mxu0 %v11828_v17  ;;  %v8080_v17 = vadd.f32 %v8079_v27, %v8036_v25 }
 0x99a   :  { %8459 = vmatpush2.bf16.msra.mxu1 %v11825_v21  ;;  %v8082_v21 = vadd.f32 %v8081_v31, %v8038_v33  ;;  %v11873_v33 = vld [vmem:[#allocation16 + $0xbe8] ss:$28 sps:$4 sm:$0xff]  }
 0x99b   :  { %10295 = vmatpush3.bf16.msra.mxu0 %v11829_v29  ;;  %8460 = vmatprep.subr.bf16.mxu1 %v11832_v51  ;;  %v11865_v29 = vld [vmem:[#allocation16 + $0x910] ss:$28 sps:$4 sm:$0xff]   ;;  %v12708_v51 = vpop.f32.mrf.mxu0 }
 0x99c   :  { %10296 = vmatprep.subr.bf16.mxu0 %v11833_v4 }
 0x99e   :  { %8461 = vmatpush2.bf16.msra.mxu1 %v11830_v7 }
 0x99f   :  { %10297 = vmatpush3.bf16.msra.mxu0 %v11834_v60  ;;  %8462 = vmatprep.subr.bf16.mxu1 %v11837_v11  ;;  %v11866_v60 = vld [vmem:[#allocation16 + $0x3d0] ss:$28 sps:$4 sm:$0xff]  }
 0x9a0   :  { %10298 = vmatprep.subr.bf16.mxu0 %v11838_v52  ;;  %v11867_v11 = vld [vmem:[#allocation16 + $0x750] ss:$28 sps:$4 sm:$0xff]   ;;  %v11868_v52 = vld [vmem:[#allocation16 + $0x558] ss:$28 sps:$4 sm:$0xff]  }
 0x9a2   :  { %8463 = vmatpush2.bf16.msra.mxu1 %v11835_v15  ;;  %v11869_v15 = vld [vmem:[#allocation16 + $0x8d8] ss:$28 sps:$4 sm:$0xff]  }
 0x9a3   :  { %10299 = vmatpush3.bf16.msra.mxu0 %v11839_v23  ;;  %10306 = vmatprep.subr.bf16.mxu1 %v11840_v36  ;;  %v8171_v23 = vpop.f32.mrf.mxu0 }
 0x9a4   :  { %10328 = vmatprep.subr.bf16.mxu0 %v11841_v58 }
 0x9a5   :  { %8465 = vmatmul.mubr.bf16.vlgmr.msra.gmra.mxu1 %v12678_v38 }
 0x9a6   :  { %8551 = vmatmul.mubr.bf16.vlgmr.msra.gmra.mxu0 %v12646_v3  ;;  %10307 = vmatpush3.bf16.msra.mxu1 %v11842_v28  ;;  %v11851_v3 = vld [vmem:[#allocation16 + $0x830] ss:$28 sps:$4 sm:$0xff]   ;;  %v11870_v28 = vld [vmem:[#allocation16 + $0x398] ss:$28 sps:$4 sm:$0xff]  }
 0x9a7   :  { %8591 = vmatprep.mubr.bf16.mxu1 %v12644_v45  ;;  %10329 = vmatpush3.bf16.msra.mxu0 %v11843_v20  ;;  %v12702_v45 = vpop.f32.mrf.mxu1  ;;  %v8208_v20 = vpop.f32.mrf.mxu0 }
 0x9a8   :  { %8632 = vmatprep.mubr.bf16.mxu0 %v12659_v44  ;;  %10308 = vmatprep.subr.bf16.mxu1 %v11844_v22  ;;  %v11855_v44 = vld [vmem:[#allocation16 + $0x7f8] ss:$28 sps:$4 sm:$0xff]  }
 0x9a9   :  { %10330 = vmatprep.subr.bf16.mxu0 %v11845_v62  ;;  %v12706_v53 = vpop.f32.mrf.mxu1  ;;  %v11871_v22 = vld [vmem:[#allocation16 + $0x718] ss:$28 sps:$4 sm:$0xff]  }
 0x9aa   :  { %10309 = vmatpush3.bf16.msra.mxu1 %v11846_v41  ;;  %v11872_v41 = vld [vmem:[#allocation16 + $0xc20] ss:$28 sps:$4 sm:$0xff]  }
 0x9ab   :  { %10331 = vmatpush3.bf16.msra.mxu0 %v11847_v54  ;;  %10310 = vmatprep.subr.bf16.mxu1 %v11848_v12  ;;  %v8122_v18 = vpop.f32.mrf.mxu1  ;;  %v8210_v54 = vpop.f32.mrf.mxu0 }
 0x9ac   :  { %10332 = vmatprep.subr.bf16.mxu0 %v11849_v61  ;;  %v8123_v4 = vadd.f32 %v8122_v18, %v8080_v17  ;;  %v8086_v18 = vadd.f32 %v12704_v43, %v12706_v53 }
 0x9ad   :  { %v8124_v26 = vpop.f32.mrf.mxu1 }
 0x9ae   :  { %10311 = vmatpush3.bf16.msra.mxu1 %v11850_v56  ;;  %v8125_v7 = vadd.f32 %v8124_v26, %v8082_v21  ;;  %v8166_v36 = vadd.f32 %v8165_v57, %v8123_v4  ;;  %v8212_v56 = vpop.f32.mrf.mxu0  ;;  %v11877_v57 = vld [vmem:[#allocation16 + $0xb08] ss:$28 sps:$4 sm:$0xff]   ;;  %v11879_v26 = vld [vmem:[#allocation16 + $0xa98] ss:$28 sps:$4 sm:$0xff]  }
 0x9af   :  { %10333 = vmatpush3.bf16.msra.mxu0 %v11851_v3  ;;  %10312 = vmatprep.subr.bf16.mxu1 %v11852_v37  ;;  %v8126_v27 = vpop.f32.mrf.mxu1 }
 0x9b0   :  { %10334 = vmatprep.subr.bf16.mxu0 %v11853_v39  ;;  %v8168_v58 = vadd.f32 %v8167_v24, %v8125_v7  ;;  %v8682_v25 = vpack.c.bf16 %v8166_v36, %v8166_v36 }
 0x9b1   :  { %v8128_v31 = vpop.f32.mrf.mxu1 }
 0x9b2   :  { %10313 = vmatpush3.bf16.msra.mxu1 %v11854_v40  ;;  %v8683_v62 = vpack.c.bf16 %v8168_v58, %v8168_v58  ;;  %v8734_v61 = vsel %vm5145_vm1, %v8682_v25, 0  ;;  %v8214_v40 = vpop.f32.mrf.mxu0 }
 0x9b3   :  { %10335 = vmatpush3.bf16.msra.mxu0 %v11855_v44  ;;  %10314 = vmatprep.subr.bf16.mxu1 %v11856_v47  ;;  %v11875_v47 = vld [vmem:[#allocation16 + $0xb78] ss:$28 sps:$4 sm:$0xff]  }
 0x9b4   :  { %10336 = vmatprep.subr.bf16.mxu0 %v11857_v50  ;;  %v11876_v50 = vld [vmem:[#allocation16 + $0xb40] ss:$28 sps:$4 sm:$0xff]  }
 0x9b6   :  { %10315 = vmatpush3.bf16.msra.mxu1 %v11858_v8  ;;  %v8084_v8 = vadd.f32 %v12700_v35, %v12702_v45 }
 0x9b7   :  { %10337 = vmatpush3.bf16.msra.mxu0 %v11859_v10  ;;  %10316 = vmatprep.subr.bf16.mxu1 %v11860_v16  ;;  %v8129_v16 = vadd.f32 %v8128_v31, %v8086_v18 }
 0x9b8   :  { %10338 = vmatprep.subr.bf16.mxu0 %v11861_v30  ;;  %v8127_v10 = vadd.f32 %v8126_v27, %v8084_v8  ;;  %v11878_v30 = vld [vmem:[#allocation16 + $0xad0] ss:$28 sps:$4 sm:$0xff]  }
 0x9ba   :  { %10317 = vmatpush3.bf16.msra.mxu1 %v11862_v49  ;;  %v8170_v24 = vadd.f32 %v12708_v51, %v8127_v10  ;;  %v8172_v49 = vadd.f32 %v8171_v23, %v8129_v16 }
 0x9bb   :  { %10339 = vmatpush3.bf16.msra.mxu0 %v11863_v59  ;;  %10318 = vmatprep.subr.bf16.mxu1 %v11864_v63 }
 0x9bc   :  { %10340 = vmatprep.subr.bf16.mxu0 %v11865_v29  ;;  %v8689_v59 = vpack.c.bf16 %v8170_v24, %v8170_v24  ;;  %v8690_v35 = vpack.c.bf16 %v8172_v49, %v8172_v49 }
 0x9be   :  { %10319 = vmatpush3.bf16.msra.mxu1 %v11866_v60  ;;  %v8918_v63 = vsel %vm5145_vm1, %v8689_v59, 0 }
 0x9bf   :  { %10341 = vmatpush3.bf16.msra.mxu0 %v11867_v11  ;;  %10320 = vmatprep.subr.bf16.mxu1 %v11868_v52 }
 0x9c0   :  { %10342 = vmatprep.subr.bf16.mxu0 %v11869_v15 }
 0x9c2   :  { %10321 = vmatpush3.bf16.msra.mxu1 %v11870_v28 }
 0x9c3   :  { %10343 = vmatpush3.bf16.msra.mxu0 %v11871_v22  ;;  %10412 = vmatprep.subr.bf16.mxu1 %v12200_v9 }
 0x9c4   :  { %10248 = vmatprep.subr.msk.bf16.mxu0 %vm5145_vm1, %v8683_v62 }
 0x9c5   :  { %v8251_v12 = vpop.f32.mrf.mxu1  ;;  %8592 = vmatmul.mubr.bf16.vlgmr.msra.gmra.mxu1 %v12648_v42  ;;  %v11874_v42 = vld [vmem:[#allocation16 + $0xbb0] ss:$28 sps:$4 sm:$0xff]  }
 0x9c6   :  { %8633 = vmatmul.mubr.bf16.vlgmr.msra.gmra.mxu0 %v12678_v38  ;;  %10413 = vmatpush3.bf16.msra.mxu1 %v11872_v41  ;;  %v8252_v45 = vadd.f32 %v8251_v12, %v8208_v20 }
 0x9c7   :  { %8769 = vmatpush1.bf16.msra.mxu0 %v8734_v61  ;;  %v8253_v3 = vpop.f32.mrf.mxu1  ;;  %10414 = vmatprep.subr.bf16.mxu1 %v12200_v9 }
 0x9c8   :  { %8786 = vmatprep.mubr.bf16.mxu0 %v12199_v0  ;;  %10428 = vmatprep.mubr.msk.bf16.mxu1 %vm12201_vm0, %v12200_v9  ;;  %v8254_v17 = vadd.f32 %v8253_v3, %v8210_v54 }
 0x9c9   :  { %v8255_v37 = vpop.f32.mrf.mxu1 }
 0x9ca   :  { %v8256_v39 = vadd.f32 %v8255_v37, %v8212_v56  ;;  %10415 = vmatpush3.bf16.msra.mxu1 %v11873_v33 }
 0x9cb   :  { %v8257_v38 = vpop.f32.mrf.mxu1  ;;  %10416 = vmatprep.subr.bf16.mxu1 %v12200_v9 }
 0x9cc   :  { %v8258_v44 = vadd.f32 %v8257_v38, %v8214_v40 }
 0x9ce   :  { %10249 = vmatmul.mubr.msk.bf16.vlgmr.msra.gmra.mxu0 %vm4625_vm2, %v12563_v14  ;;  %10417 = vmatpush3.bf16.msra.mxu1 %v11874_v42 }
 0x9cf   :  { %10418 = vmatprep.subr.bf16.mxu1 %v12200_v9  ;;  %8827 = vmatprep.mubr.bf16.mxu0 %v12199_v0 }
 0x9d2   :  { %10419 = vmatpush3.bf16.msra.mxu1 %v11875_v47 }
 0x9d3   :  { %10420 = vmatprep.subr.bf16.mxu1 %v12200_v9 }
 0x9d6   :  { %10421 = vmatpush3.bf16.msra.mxu1 %v11876_v50 }
 0x9d7   :  { %10422 = vmatprep.subr.bf16.mxu1 %v12200_v9 }
 0x9da   :  { %10423 = vmatpush3.bf16.msra.mxu1 %v11877_v57 }
 0x9db   :  { %10424 = vmatprep.subr.bf16.mxu1 %v12200_v9 }
 0x9de   :  { %10425 = vmatpush3.bf16.msra.mxu1 %v11878_v30 }
 0x9df   :  { %10426 = vmatprep.subr.bf16.mxu1 %v12200_v9 }
 0x9e2   :  { %10427 = vmatpush3.bf16.msra.mxu1 %v11879_v26 }
 0x9e3   :  { %10255 = vmatprep.subr.msk.bf16.mxu1 %vm5145_vm1, %v8690_v35 }
 0x9e5   :  { %v8294_v43 = vpop.f32.mrf.mxu0  ;;  %v8337_v53 = vpop.f32.mrf.mxu1  ;;  %10429 = vmatmul.mubr.bf16.vlgmr.msra.gmra.mxu1 %v12668_v55 }
 0x9e6   :  { %v8295_v21 = vadd.f32 %v8294_v43, %v8252_v45  ;;  %8953 = vmatpush1.bf16.msra.mxu1 %v8918_v63  ;;  %8970 = vmatprep.mubr.bf16.mxu1 %v12199_v0 }
 0x9e7   :  { %v8296_v29 = vpop.f32.mrf.mxu0  ;;  %v8339_v51 = vpop.f32.mrf.mxu1 }
 0x9e8   :  { %v8338_v4 = vadd.f32 %v8337_v53, %v8295_v21  ;;  %v8297_v7 = vadd.f32 %v8296_v29, %v8254_v17 }
 0x9e9   :  { %v8298_v60 = vpop.f32.mrf.mxu0  ;;  %v8341_v11 = vpop.f32.mrf.mxu1 }
 0x9ea   :  { %v8684_v52 = vpack.c.bf16 %v8338_v4, %v8338_v4  ;;  %v8340_v15 = vadd.f32 %v8339_v51, %v8297_v7  ;;  %v8299_v23 = vadd.f32 %v8298_v60, %v8256_v39 }
 0x9eb   :  { %v8300_v36 = vpop.f32.mrf.mxu0  ;;  %v8343_v27 = vpop.f32.mrf.mxu1 }
 0x9ec   :  { %v8685_v58 = vpack.c.bf16 %v8340_v15, %v8340_v15  ;;  %v12737_v28 = vadd.f32 %v8341_v11, %v8299_v23  ;;  %v8301_v55 = vadd.f32 %v8300_v36, %v8258_v44  ;;  %v8740_v20 = vsel %vm5145_vm1, %v8684_v52, 0  ;;  %v12763_v11 = vld [vmem:[#allocation17] sm:$0xff] }
 0x9ed   :  { %10256 = vmatmul.mubr.msk.bf16.vlgmr.msra.gmra.mxu1 %vm4625_vm2, %v12601_v2  ;;  %v8701_v15 = vrot.slane %v12763_v11, %v5109_v34  ;;  %v8705_v36 = vrot.slane %v12763_v11, %v5113_v19 }
 0x9ee   :  { %v12742_v22 = vadd.f32 %v8343_v27, %v8301_v55  ;;  %10250 = vmatprep.subr.msk.bf16.mxu0 %vm5145_vm1, %v8685_v58  ;;  %9052 = vmatprep.mubr.bf16.mxu1 %v12199_v0 }
 0x9ef   :  { %8810 = vmatpush1.bf16.msra.mxu0 %v8740_v20 }
 0x9f2   :  { %10251 = vmatmul.mubr.msk.bf16.vlgmr.msra.gmra.mxu0 %vm4625_vm2, %v12563_v14 }
 0x9f3   :  { %8868 = vmatprep.mubr.bf16.mxu0 %v12199_v0 }
 0xa25   :  { %v8380_v62 = vpop.f32.mrf.mxu1 }
 0xa26   :  { %v8423_v25 = vpop.f32.mrf.mxu0 }
 0xa27   :  { %v8382_v31 = vpop.f32.mrf.mxu1  ;;  %v8424_v3 = vadd.f32 %v8423_v25, %v8380_v62 }
 0xa28   :  { %v8425_v41 = vpop.f32.mrf.mxu0 }
 0xa29   :  { %v8384_v12 = vpop.f32.mrf.mxu1  ;;  %v8426_v42 = vadd.f32 %v8425_v41, %v8382_v31 }
 0xa2a   :  { %v8427_v54 = vpop.f32.mrf.mxu0 }
 0xa2b   :  { %v8386_v56 = vpop.f32.mrf.mxu1  ;;  %v8428_v44 = vadd.f32 %v8427_v54, %v8384_v12 }
 0xa2c   :  { %v8429_v61 = vpop.f32.mrf.mxu0 }
 0xa2d   :  { %v8430_v18 = vadd.f32 %v8429_v61, %v8386_v56 }
 0xa46   :  { %v8509_v33 = vpop.f32.mrf.mxu0 }
 0xa48   :  { %v8511_v37 = vpop.f32.mrf.mxu0 }
 0xa4a   :  { %v8513_v57 = vpop.f32.mrf.mxu0 }
 0xa4c   :  { %v8515_v35 = vpop.f32.mrf.mxu0 }
 0xa65   :  { %v8466_v39 = vpop.f32.mrf.mxu1 }
 0xa66   :  { %v8467_v40 = vadd.f32 %v8466_v39, %v8424_v3  ;;  %v10300_v21 = vpop.f32.mrf.mxu0 }
 0xa67   :  { %v8468_v38 = vpop.f32.mrf.mxu1 }
 0xa68   :  { %v8510_v47 = vadd.f32 %v8509_v33, %v8467_v40  ;;  %v8469_v50 = vadd.f32 %v8468_v38, %v8426_v42  ;;  %v10301_v29 = vpop.f32.mrf.mxu0 }
 0xa69   :  { %v8470_v8 = vpop.f32.mrf.mxu1  ;;  %v10302_v3 = vadd.f32 %v10301_v29, %v10300_v21 }
 0xa6a   :  { %v8686_v10 = vpack.c.bf16 %v8510_v47, %v8510_v47  ;;  %v8512_v16 = vadd.f32 %v8511_v37, %v8469_v50  ;;  %v8471_v30 = vadd.f32 %v8470_v8, %v8428_v44  ;;  %v10303_v51 = vpop.f32.mrf.mxu0 }
 0xa6b   :  { %v8472_v24 = vpop.f32.mrf.mxu1 }
 0xa6c   :  { %v8687_v49 = vpack.c.bf16 %v8512_v16, %v8512_v16  ;;  %v8514_v26 = vadd.f32 %v8513_v57, %v8471_v30  ;;  %v8473_v59 = vadd.f32 %v8472_v24, %v8430_v18  ;;  %v8746_v53 = vsel %vm5145_vm1, %v8686_v10, 0  ;;  %v10304_v4 = vpop.f32.mrf.mxu0 }
 0xa6d   :  { %v10305_v38 = vadd.f32 %v10304_v4, %v10303_v51  ;;  %v8691_v18 = vpack.c.bf16 %v12737_v28, %v12737_v28  ;;  %v8692_v10 = vpack.c.bf16 %v12742_v22, %v12742_v22  ;;  %v8709_v22 = vrot.slane %v12763_v11, %v5117_v1 }
 0xa6e   :  { %v8693_v45 = vpack.c.bf16 %v8514_v26, %v8514_v26  ;;  %v8516_v43 = vadd.f32 %v8515_v35, %v8473_v59  ;;  %10252 = vmatprep.subr.msk.bf16.mxu0 %vm5145_vm1, %v8687_v49 }
 0xa6f   :  { %8851 = vmatpush1.bf16.msra.mxu0 %v8746_v53  ;;  %v8924_v59 = vsel %vm5145_vm1, %v8691_v18, 0 }
 0xa70   :  { %v8694_v63 = vpack.c.bf16 %v8516_v43, %v8516_v43  ;;  %10432 = vmatprep.subr.bf16.mxu0 %v12200_v9  ;;  %v8930_v17 = vsel %vm5145_vm1, %v8693_v45, 0 }
 0xa72   :  { %10253 = vmatmul.mubr.msk.bf16.vlgmr.msra.gmra.mxu0 %vm4625_vm2, %v12563_v14  ;;  %10259 = vmatprep.subr.msk.bf16.mxu1 %vm5145_vm1, %v8694_v63  ;;  %v8713_v63 = vrot.slane %v12763_v11, %v5121_v32 }
 0xa73   :  { %9035 = vmatpush1.bf16.msra.mxu1 %v8930_v17  ;;  %10434 = vmatprep.mubr.msk.bf16.mxu0 %vm12201_vm0, %v12200_v9 }
 0xa74   :  { %10444 = vmatprep.subr.mxu1 %v12200_v9 }
 0xa76   :  { %10260 = vmatmul.mubr.msk.bf16.vlgmr.msra.gmra.mxu1 %vm4625_vm2, %v12601_v2 }
 0xa77   :  { %10446 = vmatprep.mubr.msk.f32.mxu1 %vm12201_vm0, %v12200_v9 }
 0xa85   :  { %v10322_v54 = vpop.f32.mrf.mxu1 }
 0xa86   :  { %v10344_v7 = vpop.f32.mrf.mxu0 }
 0xa87   :  { %v10323_v61 = vpop.f32.mrf.mxu1 }
 0xa88   :  { %v10345_v60 = vpop.f32.mrf.mxu0  ;;  %v10324_v33 = vadd.f32 %v10323_v61, %v10322_v54 }
 0xa89   :  { %v10325_v56 = vpop.f32.mrf.mxu1  ;;  %v10346_v39 = vadd.f32 %v10345_v60, %v10344_v7 }
 0xa8a   :  { %v10347_v52 = vpop.f32.mrf.mxu0  ;;  %v8594_v34 = vadd.f32 %v10324_v33, %v10302_v3 }
 0xa8b   :  { %v10326_v37 = vpop.f32.mrf.mxu1 }
 0xa8c   :  { %v10348_v23 = vpop.f32.mrf.mxu0  ;;  %v10327_v42 = vadd.f32 %v10326_v37, %v10325_v56  ;;  %v8635_v40 = vadd.f32 %v10346_v39, %v8594_v34 }
 0xa8d   :  { %v10349_v16 = vadd.f32 %v10348_v23, %v10347_v52 }
 0xa8e   :  { %v8788_v58 = vpop.f32.mrf.mxu0  ;;  %v8597_v50 = vadd.f32 %v10327_v42, %v10305_v38 }
 0xa8f   :  { %v8789_v55 = vadd.f32 %v8788_v58, %v8701_v15 }
 0xa90   :  { %v8790_v27 = vpop.f32.mrf.mxu0  ;;  %v8638_v49 = vadd.f32 %v10349_v16, %v8597_v50 }
 0xa91   :  { %v8791_v20 = vadd.f32 %v8790_v27, %v8705_v36  ;;  %v9101_v62 = vmax.f32 %v8789_v55, 0.0 }
 0xa92   :  { %v8792_v25 = vpop.f32.mrf.mxu0 }
 0xa93   :  { %v9102_v41 = vmax.f32 %v8791_v20, 0.0 }
 0xa94   :  { %v8793_v31 = vpop.f32.mrf.mxu0 }
 0xa95   :  { %v9115_v12 = vadd.f32 %v9102_v41, %v9101_v62 }
 0xaa5   :  { %v8675_v19 = vpop.f32.mrf.mxu1 }
 0xaa6   :  { %v8676_v44 = vadd.f32 %v8675_v19, %v8635_v40 }
 0xaa7   :  { %v10430_v47 = vpop.f32.mrf.mxu1 }
 0xaa8   :  { %v8688_v57 = vpack.c.bf16 %v8676_v44, %v8676_v44 }
 0xaa9   :  { %v8678_v8 = vpop.f32.mrf.mxu1 }
 0xaaa   :  { %v8752_v30 = vsel %vm5145_vm1, %v8688_v57, 0  ;;  %v8679_v35 = vadd.f32 %v8678_v8, %v8638_v49 }
 0xaab   :  { %v10431_v24 = vpop.f32.mrf.mxu1  ;;  %10433 = vmatpush3.bf16.msra.mxu0 %v8752_v30 }
 0xaac   :  { %10257 = vmatprep.subr.msk.bf16.mxu0 %vm5145_vm1, %v8692_v10  ;;  %v8695_v17 = vpack.c.bf16 %v8679_v35, %v8679_v35 }
 0xaad   :  { %v8972_v26 = vpop.f32.mrf.mxu1 }
 0xaae   :  { %v8973_v45 = vadd.f32 %v8972_v26, %v8701_v15  ;;  %10435 = vmatmul.mubr.msk.bf16.vlgmr.msra.gmra.mxu0 %vm4625_vm2, %v12563_v14 }
 0xaaf   :  { %v8974_v28 = vpop.f32.mrf.mxu1  ;;  %8994 = vmatpush1.bf16.msra.mxu0 %v8924_v59  ;;  %9011 = vmatprep.mubr.bf16.mxu0 %v12199_v0  ;;  %v8936_v0 = vsel %vm5145_vm1, %v8695_v17, 0 }
 0xab0   :  { %v8975_v43 = vadd.f32 %v8974_v28, %v8705_v36  ;;  %10438 = vmatprep.subr.bf16.mxu0 %v12200_v9  ;;  %v9108_v21 = vmax.f32 %v8973_v45, 0.0 }
 0xab1   :  { %v8976_v53 = vpop.f32.mrf.mxu1 }
 0xab2   :  { %v9109_v29 = vmax.f32 %v8975_v43, 0.0  ;;  %v8829_v14 = vpop.f32.mrf.mxu0 }
 0xab3   :  { %v8830_v51 = vadd.f32 %v8829_v14, %v8709_v22  ;;  %v8977_v4 = vpop.f32.mrf.mxu1 }
 0xab4   :  { %v9123_v7 = vadd.f32 %v9109_v29, %v9108_v21  ;;  %v8831_v60 = vpop.f32.mrf.mxu0  ;;  %v9133_v21 = vld [vmem:[%s12817_s1] sm:$0x3] }
 0xab5   :  { %v9103_v52 = vmax.f32 %v8830_v51, 0.0  ;;  %v8832_v1 = vadd.f32 %v8831_v60, %v8713_v63 }
 0xab6   :  { %v8833_v15 = vpop.f32.mrf.mxu0  ;;  %10258 = vmatmul.mubr.msk.bf16.vlgmr.msra.gmra.mxu0 %vm4625_vm2, %v12601_v2 }
 0xab7   :  { %v9116_v23 = vadd.f32 %v9115_v12, %v9103_v52  ;;  %v9104_v36 = vmax.f32 %v8832_v1, 0.0  ;;  %10439 = vmatpush3.bf16.msra.mxu0 %v8936_v0  ;;  %10440 = vmatprep.mubr.msk.bf16.mxu0 %vm12201_vm0, %v12200_v9  ;;  %v8717_v12 = vrot.slane %v12763_v11, %v5125_v6  ;;  %v8721_v9 = vrot.slane %v12763_v11, %v5129_v46  ;;  %v10262_v1 = vld [vmem:[#allocation19] ss:$0 sm:$0xff] }
 0xab8   :  { %v8834_v32 = vpop.f32.mrf.mxu0 }
 0xab9   :  { %v9117_v58 = vadd.f32 %v9116_v23, %v9104_v36  ;;  %v10264_v36 = vld [vmem:[#allocation20] ss:$0 sm:$0xff] }
 0xabe   :  { %10441 = vmatmul.mubr.msk.bf16.vlgmr.msra.gmra.mxu0 %vm4625_vm2, %v12601_v2  ;;  %v8725_v2 = vrot.slane %v12763_v11, %v5133_v13 }
 0xb32   :  { %v8870_v55 = vpop.f32.mrf.mxu0 }
 0xb33   :  { %v8871_v61 = vadd.f32 %v8870_v55, %v8717_v12 }
 0xb34   :  { %v8872_v27 = vpop.f32.mrf.mxu0 }
 0xb35   :  { %v9105_v33 = vmax.f32 %v8871_v61, 0.0  ;;  %v8873_v56 = vadd.f32 %v8872_v27, %v8721_v9 }
 0xb36   :  { %v8874_v20 = vpop.f32.mrf.mxu0  ;;  %v9054_v25 = vpop.f32.mrf.mxu1 }
 0xb37   :  { %v9118_v3 = vadd.f32 %v9117_v58, %v9105_v33  ;;  %v9106_v34 = vmax.f32 %v8873_v56, 0.0  ;;  %v9055_v57 = vadd.f32 %v9054_v25, %v8717_v12 }
 0xb38   :  { %v8875_v62 = vpop.f32.mrf.mxu0  ;;  %v9056_v41 = vpop.f32.mrf.mxu1 }
 0xb39   :  { %v9119_v40 = vadd.f32 %v9118_v3, %v9106_v34  ;;  %v9057_v10 = vadd.f32 %v9056_v41, %v8721_v9  ;;  %v9112_v30 = vmax.f32 %v9055_v57, 0.0 }
 0xb3a   :  { %v9058_v31 = vpop.f32.mrf.mxu1 }
 0xb3b   :  { %v9113_v26 = vmax.f32 %v9057_v10, 0.0 }
 0xb3c   :  { %v9059_v54 = vpop.f32.mrf.mxu1 }
 0xb6e   :  { %v8911_v37 = vpop.f32.mrf.mxu0 }
 0xb6f   :  { %v8912_v39 = vadd.f32 %v8911_v37, %v8725_v2 }
 0xb70   :  { %v10436_v42 = vpop.f32.mrf.mxu0 }
 0xb71   :  { %v9107_v19 = vmax.f32 %v8912_v39, 0.0 }
 0xb72   :  { %v8914_v38 = vpop.f32.mrf.mxu0 }
 0xb73   :  { %v9120_v6 = vadd.f32 %v9119_v40, %v9107_v19 }
 0xb74   :  { %v10437_v44 = vpop.f32.mrf.mxu0 }
 0xb75   :  { %9121 = vadd.xlane.f32.xlu0 %v9120_v6 }
 0xb76   :  { %v9013_v47 = vpop.f32.mrf.mxu0 }
 0xb77   :  { %v9014_v50 = vadd.f32 %v9013_v47, %v8709_v22 }
 0xb78   :  { %v9015_v46 = vpop.f32.mrf.mxu0 }
 0xb79   :  { %v9110_v8 = vmax.f32 %v9014_v50, 0.0  ;;  %v9016_v18 = vadd.f32 %v9015_v46, %v8713_v63  ;;  %v9147_v63 = vld [vmem:[%s12828_s12] sm:$0xff]  ;;  %s12202_s12 = smov [#allocation22]  }
 0xb7a   :  { %v9017_v5 = vpop.f32.mrf.mxu0  ;;  %10445 = vmatpush3.msra.mxu1 %v9147_v63  ;;  %s9248_s1 = sshll.u32 %s12202_s12, 4  ;;  %s9249_s1 = int_to_ptr.vmem [resolvable:$true] %s9248_s1 }
 0xb7b   :  { %v9124_v13 = vadd.f32 %v9123_v7, %v9110_v8  ;;  %v9111_v11 = vmax.f32 %v9016_v18, 0.0  ;;  %s12147_s21 = scalar_lea.vmem %s9249_s1, 32  ;;  %p12152_p5 = scmp.lt.s32.totalorder %s9249_s1, %s9249_s1 }
 0xb7c   :  { %v9018_v16 = vpop.f32.mrf.mxu0  ;;  %p12148_p4 = scmp.ne.s32.totalorder %s9249_s1, %s12147_s21  ;;  %p12153_p6 = scmp.lt.s32.totalorder %s12147_s21, %s12147_s21 }
 0xb7d   :  { %v9125_v24 = vadd.f32 %v9124_v13, %v9111_v11 }
 0xb7e   :  { %v9095_v49 = vpop.f32.mrf.mxu0  ;;  %p12154_p7 = por %p12153_p6, %p12152_p5 }
 0xb7f   :  { %v9126_v59 = vadd.f32 %v9125_v24, %v9112_v30  ;;  %v9096_v35 = vadd.f32 %v9095_v49, %v8725_v2 }
 0xb80   :  { %v10442_v45 = vpop.f32.mrf.mxu0  ;;  %p12155_p8 = pnand %p12154_p7, %p12148_p4 }
 0xb81   :  { %v9114_v28 = vmax.f32 %v9096_v35, 0.0  ;;  %v9127_v43 = vadd.f32 %v9126_v59, %v9113_v26 }
 0xb82   :  { %v9098_v53 = vpop.f32.mrf.mxu0 }
 0xb83   :  { %v9128_v22 = vadd.f32 %v9127_v43, %v9114_v28 }
 0xb84   :  { %v10443_v17 = vpop.f32.mrf.mxu0 }
 0xb85   :  { %9129 = vadd.xlane.f32.xlu1 %v9128_v22 }
 0xb8b   :  { %9137 = vperm.xlu0 %10469, %v9133_v21  }
 0xbfe   :  { %v9122_v29 = vpop.xlane.xlu0 %9121 }
 0xbff   :  { %v9131_v14 = vmul.f32 0.0011223345, %v9122_v29 }
 0xc01   :  { %v9153_v7 = vrot.slane %v9131_v14, %v12556_v48 }
 0xc06   :  { %v9138_v0 = vpop.permute.xlu0 %9137 }
 0xc07   :  { %v9146_v15 = vmul.f32 %v10262_v1, %v9138_v0 }
 0xc0e   :  { %v9130_v51 = vpop.xlane.xlu1 %9129 }
 0xc0f   :  { %v9132_v4 = vmul.f32 0.0011223345, %v9130_v51 }
 0xc11   :  { %v9157_v60 = vrot.slane %v9132_v4, %v12556_v48 }
 0xc13   :  { %v9158_v52 = vsel %vm5066_vm4, %v9157_v60, %v9153_v7 }
 0xc14   :  { %10447 = vmatmul.mubr.msk.f32.vlgmr.msra.gmra.mxu1 %vm4625_vm2, %v9158_v52 }
 0xcd4   :  { %v9227_v23 = vpop.f32.mrf.mxu1 }
 0xcd5   :  { %v9231_v32 = vadd.f32 %v9227_v23, %v9146_v15 }
 0xcd6   :  { %v10448_v58 = vpop.f32.mrf.mxu1 }
 0xcd7   :  { %v9239_v55 = vadd.f32 %v10264_v36, %v9231_v32 }
 0xcd9   :  { %9241 = vst.msk [vmem:[#allocation22] sm:$0x3] %vm9240_vm5, %v9239_v55 }
 0xcda   :  { %12158 = shalt.err (!%p12155_p8)
}
 0xcdb   :  { %9251 = dma.vmem_to_hbm [thread:$0]  %s9249_s1, 32, %s12830_s14, [#allocation4]  }
 0xcdc   :  { %12181 = dma.done.wait [#allocation4], 32  }
 0xcdd   :  { %12182 = vsyncadd [#allocation4], 4294967264 }
 0xcde   :  { %9255 = vsyncpa [#allocation3], 1 }
 0xcdf   :  { %9256 = vsyncpa [#allocation6], 1 }
 0xce0   :  { %9257 = vsyncpa [#allocation9], 1 }
 0xce1   :  { %9258 = vsyncpa [#allocation12], 1 }
 0xce2   :  { %9259 = vsyncpa [#allocation15], 1 }
 0xce3   :  { %9260 = vsyncpa [#allocation18], 1 }
 0xce4   :  { %9261 = vsyncpa [#allocation21], 1 }
 0xce5   :  { %9262 = vsyncpa [#allocation4], 1 }

</bundles_post_ra>
